<compile_context>
chip_gen: v6e
topology: v6e:2x2x1
jax: 0.10.0
libtpu: 0.0.40
codegen_flags: <defaults>
</compile_context>

<pallas_src>
import functools

import jax
import jax.numpy as jnp
from jax import lax
from jax.experimental import pallas as pl
from jax.experimental.pallas import tpu as pltpu


def _vmem_limit_bytes():
    """~3/4 of physical VMEM: ~96 MiB on v5e/v6e (128 MiB), ~48 MiB on v7x (64 MiB)."""
    try:
        cap = int(pltpu.get_tpu_info().vmem_capacity_bytes)
    except Exception:  # interpret mode / API drift -> conservative default
        cap = 64 * 1024 * 1024
    return max(32 * 1024 * 1024, min(cap * 3 // 4, 112 * 1024 * 1024))


# --------------------------------------------------------------------------
# Fused kernel:
#   conv1(1x1)+bn1+relu -> padded VMEM scratch -> conv2(3x3,dil d)+bn2+relu
#   -> conv3(1x1)+bn3 + identity residual + relu
# --------------------------------------------------------------------------
def _bottleneck_kernel(x_ref, w1_ref, b1_ref, w2_ref, b2_ref, w3_ref, b3_ref,
                       o_ref, z_ref, *, H, W, d, Rc):
    # x_ref : (H*W, Cin) bf16  pixel-major input; also the identity residual.
    # z_ref : (H+2d, W+2d, P) bf16 VMEM scratch -- zero-padded mid activations.
    # o_ref : (H*W, C4) bf16.
    P = w1_ref.shape[1]

    # Zero the padded scratch.  Unconditional (megacore-safe); only the border
    # actually needs the zeros -- the interior is fully overwritten below.
    z_ref[...] = jnp.zeros(z_ref.shape, z_ref.dtype)

    # ---- stage 1: conv1 + bn1 + relu, written directly into the padded
    # interior of z.  h1 never touches HBM and there is no separate pad pass.
    def conv1_chunk(r0, rows):
        xa = x_ref[pl.ds(r0 * W, rows * W), :]                       # (m, Cin)
        h1 = jnp.dot(xa, w1_ref[...], preferred_element_type=jnp.float32)
        h1 = jnp.maximum(h1 + b1_ref[...], 0.0).astype(z_ref.dtype)
        z_ref[pl.ds(r0 + d, rows), pl.ds(d, W), :] = h1.reshape(rows, W, P)

    # ---- stage 2: conv2 as 9 accumulated MXU matmuls over shifted windows of
    # the padded scratch, then bn2+relu, conv3+bn3, residual add and the final
    # relu for one band of output rows; one lane-dense block store per band.
    def out_chunk(r0, rows):
        m = rows * W
        acc = jnp.dot(z_ref[pl.ds(r0, rows), pl.ds(0, W), :].reshape(m, P),
                      w2_ref[0], preferred_element_type=jnp.float32)
        for t in range(1, 9):                     # tap t = 3*ky + kx
            ky, kx = t // 3, t % 3
            zt = z_ref[pl.ds(r0 + ky * d, rows), pl.ds(kx * d, W), :]
            acc = acc + jnp.dot(zt.reshape(m, P), w2_ref[t],
                                preferred_element_type=jnp.float32)
        h2 = jnp.maximum(acc + b2_ref[...], 0.0).astype(jnp.bfloat16)
        y = jnp.dot(h2, w3_ref[...], preferred_element_type=jnp.float32)
        res = x_ref[pl.ds(r0 * W, m), :].astype(jnp.float32)
        o_ref[pl.ds(r0 * W, m), :] = jnp.maximum(
            y + b3_ref[...] + res, 0.0).astype(o_ref.dtype)

    n_full = H // Rc
    tail = H - n_full * Rc

    # conv1 over all rows first (conv2 of a band needs its halo rows).
    if n_full <= 4:
        for c in range(n_full):
            conv1_chunk(c * Rc, Rc)
    else:
        def c1_body(c, carry):
            conv1_chunk(pl.multiple_of(c * Rc, Rc), Rc)
            return carry
        lax.fori_loop(0, n_full, c1_body, None)
    if tail > 0:
        conv1_chunk(n_full * Rc, tail)

    if n_full <= 4:
        for c in range(n_full):
            out_chunk(c * Rc, Rc)
    else:
        def c2_body(c, carry):
            out_chunk(pl.multiple_of(c * Rc, Rc), Rc)
            return carry
        lax.fori_loop(0, n_full, c2_body, None)
    if tail > 0:
        out_chunk(n_full * Rc, tail)


def _fused_forward(x_flat, params, *, H, W, d):
    N, _, Cin = x_flat.shape
    P = params["w1"].shape[1]
    C4 = params["w3"].shape[1]
    Hp, Wp = H + 2 * d, W + 2 * d

    # Row-band size: ~512 output pixels per band bounds the per-band f32
    # intermediates (conv2 accumulator, conv3 output) to a few MiB regardless
    # of image size.
    Rc = max(1, min(H, 512 // max(W, 1)))

    kernel = functools.partial(_bottleneck_kernel, H=H, W=W, d=d, Rc=Rc)
    return pl.pallas_call(
        kernel,
        out_shape=jax.ShapeDtypeStruct((N, H * W, C4), jnp.bfloat16),
        grid=(N,),
        in_specs=[
            pl.BlockSpec((None, H * W, Cin), lambda n: (n, 0, 0)),   # x / residual
            pl.BlockSpec((Cin, P), lambda n: (0, 0)),                # w1 (resident)
            pl.BlockSpec((1, P), lambda n: (0, 0)),                  # b1
            pl.BlockSpec((9, P, P), lambda n: (0, 0, 0)),            # w2 taps
            pl.BlockSpec((1, P), lambda n: (0, 0)),                  # b2
            pl.BlockSpec((P, C4), lambda n: (0, 0)),                 # w3
            pl.BlockSpec((1, C4), lambda n: (0, 0)),                 # b3
        ],
        out_specs=pl.BlockSpec((None, H * W, C4), lambda n: (n, 0, 0)),
        scratch_shapes=[pltpu.VMEM((Hp, Wp, P), jnp.bfloat16)],
        compiler_params=pltpu.CompilerParams(
            dimension_semantics=("parallel",),
            vmem_limit_bytes=_vmem_limit_bytes()),
    )(x_flat, params["w1"], params["b1"], params["w2"], params["b2"],
      params["w3"], params["b3"])


# --------------------------------------------------------------------------
# Parameter folding (inference-mode InPlaceABNSync, activation='none')
# --------------------------------------------------------------------------
def fold_bottleneck_params(w1_oihw, bn1, w2_oihw, bn2, w3_oihw, bn3, eps=1e-5):
    """Fold BN into the conv weights: conv(x)*s + b == x @ (W*s) + b with
    s = gamma/sqrt(var+eps), b = beta - mean*s.  Weights arrive in PyTorch
    OIHW layout and are returned in bf16 matmul layouts."""
    def fold(gamma, beta, mean, var):
        s = gamma / jnp.sqrt(var + eps)
        return s, beta - mean * s

    s1, b1 = fold(*bn1)
    s2, b2 = fold(*bn2)
    s3, b3 = fold(*bn3)
    w1 = jnp.transpose(w1_oihw[:, :, 0, 0], (1, 0)) * s1[None, :]           # (Cin, P)
    w2 = jnp.transpose(w2_oihw, (2, 3, 1, 0)) * s2[None, None, None, :]     # (3,3,ci,co)
    w3 = jnp.transpose(w3_oihw[:, :, 0, 0], (1, 0)) * s3[None, :]           # (P, 4P)
    P = w2.shape[-1]
    return dict(
        w1=w1.astype(jnp.bfloat16),
        w2=w2.reshape(9, P, P).astype(jnp.bfloat16),   # tap index t = 3*ky + kx
        w3=w3.astype(jnp.bfloat16),
        b1=b1.reshape(1, -1).astype(jnp.float32),
        b2=b2.reshape(1, -1).astype(jnp.float32),
        b3=b3.reshape(1, -1).astype(jnp.float32),
    )


# --------------------------------------------------------------------------
# Full Bottleneck forward (stride=1, downsample=None, deform_conv=False)
# --------------------------------------------------------------------------
def bottleneck_forward(x_nchw, params, dilation=1, multi_grid=1):
    N, Cin, H, W = x_nchw.shape
    C4 = params["w3"].shape[1]
    if Cin != C4:
        # TODO(synk): downsample / projection-residual branch not implemented.
        raise ValueError("identity-residual path requires inplanes == planes*4")
    d = int(dilation * multi_grid)

    # NCHW -> pixel-major bf16 once; this single buffer is both the conv1
    # input and the identity residual (read from HBM once per image).
    x_flat = jnp.transpose(x_nchw, (0, 2, 3, 1)).astype(jnp.bfloat16)
    x_flat = x_flat.reshape(N, H * W, Cin)

    out = _fused_forward(x_flat, params, H=H, W=W, d=d)
    out = out.reshape(N, H, W, C4).astype(jnp.float32)
    return jnp.transpose(out, (0, 3, 1, 2))


# --------------------------------------------------------------------------
if __name__ == "__main__":
    key = jax.random.PRNGKey(0)
    N, H, W = 2, 16, 16
    planes = 16
    inplanes = planes * 4           # identity residual: inplanes == planes*expansion
    keys = jax.random.split(key, 16)

    x = jax.random.normal(keys[0], (N, inplanes, H, W), jnp.float32)

    def bn_stats(kg, kb, km, kv, c):
        gamma = 1.0 + 0.1 * jax.random.normal(kg, (c,), jnp.float32)
        beta = 0.1 * jax.random.normal(kb, (c,), jnp.float32)
        mean = 0.1 * jax.random.normal(km, (c,), jnp.float32)
        var = jax.nn.softplus(jax.random.normal(kv, (c,), jnp.float32)) + 0.5
        return gamma, beta, mean, var

    # PyTorch-convention OIHW weights.
    w1_t = 0.1 * jax.random.normal(keys[1], (planes, inplanes, 1, 1), jnp.float32)
    w2_t = 0.1 * jax.random.normal(keys[2], (planes, planes, 3, 3), jnp.float32)
    w3_t = 0.1 * jax.random.normal(keys[3], (planes * 4, planes, 1, 1), jnp.float32)
    bn1 = bn_stats(keys[4], keys[5], keys[6], keys[7], planes)
    bn2 = bn_stats(keys[8], keys[9], keys[10], keys[11], planes)
    bn3 = bn_stats(keys[12], keys[13], keys[14], keys[15], planes * 4)

    params = fold_bottleneck_params(w1_t, bn1, w2_t, bn2, w3_t, bn3)

    out = jax.block_until_ready(jax.jit(bottleneck_forward)(x, params))
    assert out.shape == (N, planes * 4, H, W)

    # ---- check 1 (strict): same folded / bf16-quantised weights, pure-JAX NHWC
    def ref_quantised(x_nchw):
        xq = jnp.transpose(x_nchw, (0, 2, 3, 1)).astype(jnp.bfloat16).astype(jnp.float32)
        w1 = params["w1"].astype(jnp.float32)
        w2 = params["w2"].astype(jnp.float32).reshape(3, 3, planes, planes)
        w3 = params["w3"].astype(jnp.float32)
        h1 = jnp.maximum(xq @ w1 + params["b1"][0], 0.0)
        h1 = h1.astype(jnp.bfloat16).astype(jnp.float32)
        h1p = jnp.pad(h1, ((0, 0), (1, 1), (1, 1), (0, 0)))
        h2 = jnp.zeros((N, H, W, planes), jnp.float32)
        for ky in range(3):
            for kx in range(3):
                h2 = h2 + h1p[:, ky:ky + H, kx:kx + W, :] @ w2[ky, kx]
        h2 = jnp.maximum(h2 + params["b2"][0], 0.0)
        h2 = h2.astype(jnp.bfloat16).astype(jnp.float32)
        y = jnp.maximum(h2 @ w3 + params["b3"][0] + xq, 0.0)
        y = y.astype(jnp.bfloat16).astype(jnp.float32)      # kernel emits bf16
        return jnp.transpose(y, (0, 3, 1, 2))

    ref1 = ref_quantised(x)
    err1 = float(jnp.max(jnp.abs(out - ref1)))
    assert jnp.allclose(out, ref1, atol=1e-2, rtol=1e-2), err1

    # ---- check 2 (loose, semantics sanity): full-f32 lax.conv reference
    def ref_f32(x_nchw):
        dn = ("NCHW", "OIHW", "NCHW")

        def bn(y, stats):
            g, b, m, v = stats
            s = g / jnp.sqrt(v + 1e-5)
            return y * s[None, :, None, None] + (b - m * s)[None, :, None, None]

        y = jax.lax.conv_general_dilated(x_nchw, w1_t, (1, 1), "VALID",
                                         dimension_numbers=dn)
        y = jnp.maximum(bn(y, bn1), 0.0)
        y = jax.lax.conv_general_dilated(y, w2_t, (1, 1), ((1, 1), (1, 1)),
                                         dimension_numbers=dn)
        y = jnp.maximum(bn(y, bn2), 0.0)
        y = jax.lax.conv_general_dilated(y, w3_t, (1, 1), "VALID",
                                         dimension_numbers=dn)
        return jnp.maximum(bn(y, bn3) + x_nchw, 0.0)

    ref2 = ref_f32(x)
    err2 = float(jnp.max(jnp.abs(out - ref2)))
    assert jnp.allclose(out, ref2, atol=1e-1, rtol=1e-1), err2

    print("KERNEL_OK")
</pallas_src>

<mosaic_0001>
module attributes {stable_mosaic.version = 11 : i64} {
  func.func @_bottleneck_kernel(%arg0: i32, %arg1: memref<1x256x64xbf16, #tpu.memory_space<vmem>>, %arg2: memref<64x16xbf16, #tpu.memory_space<vmem>>, %arg3: memref<1x16xf32, #tpu.memory_space<vmem>>, %arg4: memref<9x16x16xbf16, #tpu.memory_space<vmem>>, %arg5: memref<1x16xf32, #tpu.memory_space<vmem>>, %arg6: memref<16x64xbf16, #tpu.memory_space<vmem>>, %arg7: memref<1x64xf32, #tpu.memory_space<vmem>>, %arg8: memref<1x256x64xbf16, #tpu.memory_space<vmem>>, %arg9: memref<18x18x16xbf16, #tpu.memory_space<vmem>>) attributes {dimension_semantics = [#tpu.dimension_semantics<parallel>], iteration_bounds = array<i64: 2>, scalar_prefetch = 0 : i64, scratch_operands = 1 : i64, tpu.core_type = #tpu.core_type<tc>, window_params = [{transform_indices = @transform_0, window_bounds = array<i64: 1, 256, 64>}, {pipeline_mode = #tpu.pipeline_mode<synchronous>, transform_indices = @transform_1, window_bounds = array<i64: 64, 16>}, {pipeline_mode = #tpu.pipeline_mode<synchronous>, transform_indices = @transform_2, window_bounds = array<i64: 1, 16>}, {pipeline_mode = #tpu.pipeline_mode<synchronous>, transform_indices = @transform_3, window_bounds = array<i64: 9, 16, 16>}, {pipeline_mode = #tpu.pipeline_mode<synchronous>, transform_indices = @transform_4, window_bounds = array<i64: 1, 16>}, {pipeline_mode = #tpu.pipeline_mode<synchronous>, transform_indices = @transform_5, window_bounds = array<i64: 16, 64>}, {pipeline_mode = #tpu.pipeline_mode<synchronous>, transform_indices = @transform_6, window_bounds = array<i64: 1, 64>}, {transform_indices = @transform_7, window_bounds = array<i64: 1, 256, 64>}]} {
    %cst = arith.constant 0.000000e+00 : bf16
    %0 = vector.broadcast %cst : bf16 to vector<18x18x16xbf16>
    %c0 = arith.constant 0 : index
    %c0_0 = arith.constant 0 : index
    %c0_1 = arith.constant 0 : index
    %1 = vector.load %arg9[%c0, %c0_0, %c0_1] : memref<18x18x16xbf16, #tpu.memory_space<vmem>>, vector<18x18x16xbf16>
    tpu.vector_store %arg9[%c0, %c0_0, %c0_1], %0 {strides = array<i32>} : memref<18x18x16xbf16, #tpu.memory_space<vmem>>, vector<18x18x16xbf16>,
    %c0_2 = arith.constant 0 : index
    %c0_3 = arith.constant 0 : index
    %c0_4 = arith.constant 0 : index
    %2 = vector.load %arg1[%c0_2, %c0_3, %c0_4] : memref<1x256x64xbf16, #tpu.memory_space<vmem>>, vector<1x256x64xbf16>
    %3 = vector.shape_cast %2 : vector<1x256x64xbf16> to vector<256x64xbf16>
    %c0_5 = arith.constant 0 : index
    %c0_6 = arith.constant 0 : index
    %4 = vector.load %arg2[%c0_5, %c0_6] : memref<64x16xbf16, #tpu.memory_space<vmem>>, vector<64x16xbf16>
    %cst_7 = arith.constant dense<0.000000e+00> : vector<256x16xf32>
    %5 = tpu.matmul %3, %4, %cst_7 {dimension_numbers = #tpu.dot_dimension_numbers<[1], [0], [0], [1], [0, 0, 1, 1], [], []>} : vector<256x64xbf16>, vector<64x16xbf16>, vector<256x16xf32> -> vector<256x16xf32>
    %c0_8 = arith.constant 0 : index
    %c0_9 = arith.constant 0 : index
    %6 = vector.load %arg3[%c0_8, %c0_9] : memref<1x16xf32, #tpu.memory_space<vmem>>, vector<1x16xf32>
    %7 = vector.broadcast %6 : vector<1x16xf32> to vector<256x16xf32>
    %8 = arith.addf %5, %7 : vector<256x16xf32>
    %cst_10 = arith.constant 0.000000e+00 : f32
    %9 = vector.broadcast %cst_10 : f32 to vector<256x16xf32>
    %10 = arith.maximumf %8, %9 : vector<256x16xf32>
    %11 = arith.truncf %10 : vector<256x16xf32> to vector<256x16xbf16>
    %12 = vector.shape_cast %11 : vector<256x16xbf16> to vector<16x16x16xbf16>
    %c1 = arith.constant 1 : index
    %c1_11 = arith.constant 1 : index
    %c0_12 = arith.constant 0 : index
    %13 = vector.load %arg9[%c1, %c1_11, %c0_12] : memref<18x18x16xbf16, #tpu.memory_space<vmem>>, vector<16x16x16xbf16>
    tpu.vector_store %arg9[%c1, %c1_11, %c0_12], %12 {strides = array<i32>} : memref<18x18x16xbf16, #tpu.memory_space<vmem>>, vector<16x16x16xbf16>,
    %c0_13 = arith.constant 0 : index
    %c0_14 = arith.constant 0 : index
    %c0_15 = arith.constant 0 : index
    %14 = vector.load %arg9[%c0_13, %c0_14, %c0_15] : memref<18x18x16xbf16, #tpu.memory_space<vmem>>, vector<16x16x16xbf16>
    %15 = vector.shape_cast %14 : vector<16x16x16xbf16> to vector<256x16xbf16>
    %c0_16 = arith.constant 0 : index
    %c0_17 = arith.constant 0 : index
    %c0_18 = arith.constant 0 : index
    %16 = vector.load %arg4[%c0_16, %c0_17, %c0_18] : memref<9x16x16xbf16, #tpu.memory_space<vmem>>, vector<1x16x16xbf16>
    %17 = vector.shape_cast %16 : vector<1x16x16xbf16> to vector<16x16xbf16>
    %cst_19 = arith.constant dense<0.000000e+00> : vector<256x16xf32>
    %18 = tpu.matmul %15, %17, %cst_19 {dimension_numbers = #tpu.dot_dimension_numbers<[1], [0], [0], [1], [0, 0, 1, 1], [], []>} : vector<256x16xbf16>, vector<16x16xbf16>, vector<256x16xf32> -> vector<256x16xf32>
    %c0_20 = arith.constant 0 : index
    %c1_21 = arith.constant 1 : index
    %c0_22 = arith.constant 0 : index
    %19 = vector.load %arg9[%c0_20, %c1_21, %c0_22] : memref<18x18x16xbf16, #tpu.memory_space<vmem>>, vector<16x16x16xbf16>
    %20 = vector.shape_cast %19 : vector<16x16x16xbf16> to vector<256x16xbf16>
    %c1_23 = arith.constant 1 : index
    %c0_24 = arith.constant 0 : index
    %c0_25 = arith.constant 0 : index
    %21 = vector.load %arg4[%c1_23, %c0_24, %c0_25] : memref<9x16x16xbf16, #tpu.memory_space<vmem>>, vector<1x16x16xbf16>
    %22 = vector.shape_cast %21 : vector<1x16x16xbf16> to vector<16x16xbf16>
    %cst_26 = arith.constant dense<0.000000e+00> : vector<256x16xf32>
    %23 = tpu.matmul %20, %22, %cst_26 {dimension_numbers = #tpu.dot_dimension_numbers<[1], [0], [0], [1], [0, 0, 1, 1], [], []>} : vector<256x16xbf16>, vector<16x16xbf16>, vector<256x16xf32> -> vector<256x16xf32>
    %24 = arith.addf %18, %23 : vector<256x16xf32>
    %c0_27 = arith.constant 0 : index
    %c2 = arith.constant 2 : index
    %c0_28 = arith.constant 0 : index
    %25 = vector.load %arg9[%c0_27, %c2, %c0_28] : memref<18x18x16xbf16, #tpu.memory_space<vmem>>, vector<16x16x16xbf16>
    %26 = vector.shape_cast %25 : vector<16x16x16xbf16> to vector<256x16xbf16>
    %c2_29 = arith.constant 2 : index
    %c0_30 = arith.constant 0 : index
    %c0_31 = arith.constant 0 : index
    %27 = vector.load %arg4[%c2_29, %c0_30, %c0_31] : memref<9x16x16xbf16, #tpu.memory_space<vmem>>, vector<1x16x16xbf16>
    %28 = vector.shape_cast %27 : vector<1x16x16xbf16> to vector<16x16xbf16>
    %cst_32 = arith.constant dense<0.000000e+00> : vector<256x16xf32>
    %29 = tpu.matmul %26, %28, %cst_32 {dimension_numbers = #tpu.dot_dimension_numbers<[1], [0], [0], [1], [0, 0, 1, 1], [], []>} : vector<256x16xbf16>, vector<16x16xbf16>, vector<256x16xf32> -> vector<256x16xf32>
    %30 = arith.addf %24, %29 : vector<256x16xf32>
    %c1_33 = arith.constant 1 : index
    %c0_34 = arith.constant 0 : index
    %c0_35 = arith.constant 0 : index
    %31 = vector.load %arg9[%c1_33, %c0_34, %c0_35] : memref<18x18x16xbf16, #tpu.memory_space<vmem>>, vector<16x16x16xbf16>
    %32 = vector.shape_cast %31 : vector<16x16x16xbf16> to vector<256x16xbf16>
    %c3 = arith.constant 3 : index
    %c0_36 = arith.constant 0 : index
    %c0_37 = arith.constant 0 : index
    %33 = vector.load %arg4[%c3, %c0_36, %c0_37] : memref<9x16x16xbf16, #tpu.memory_space<vmem>>, vector<1x16x16xbf16>
    %34 = vector.shape_cast %33 : vector<1x16x16xbf16> to vector<16x16xbf16>
    %cst_38 = arith.constant dense<0.000000e+00> : vector<256x16xf32>
    %35 = tpu.matmul %32, %34, %cst_38 {dimension_numbers = #tpu.dot_dimension_numbers<[1], [0], [0], [1], [0, 0, 1, 1], [], []>} : vector<256x16xbf16>, vector<16x16xbf16>, vector<256x16xf32> -> vector<256x16xf32>
    %36 = arith.addf %30, %35 : vector<256x16xf32>
    %c1_39 = arith.constant 1 : index
    %c1_40 = arith.constant 1 : index
    %c0_41 = arith.constant 0 : index
    %37 = vector.load %arg9[%c1_39, %c1_40, %c0_41] : memref<18x18x16xbf16, #tpu.memory_space<vmem>>, vector<16x16x16xbf16>
    %38 = vector.shape_cast %37 : vector<16x16x16xbf16> to vector<256x16xbf16>
    %c4 = arith.constant 4 : index
    %c0_42 = arith.constant 0 : index
    %c0_43 = arith.constant 0 : index
    %39 = vector.load %arg4[%c4, %c0_42, %c0_43] : memref<9x16x16xbf16, #tpu.memory_space<vmem>>, vector<1x16x16xbf16>
    %40 = vector.shape_cast %39 : vector<1x16x16xbf16> to vector<16x16xbf16>
    %cst_44 = arith.constant dense<0.000000e+00> : vector<256x16xf32>
    %41 = tpu.matmul %38, %40, %cst_44 {dimension_numbers = #tpu.dot_dimension_numbers<[1], [0], [0], [1], [0, 0, 1, 1], [], []>} : vector<256x16xbf16>, vector<16x16xbf16>, vector<256x16xf32> -> vector<256x16xf32>
    %42 = arith.addf %36, %41 : vector<256x16xf32>
    %c1_45 = arith.constant 1 : index
    %c2_46 = arith.constant 2 : index
    %c0_47 = arith.constant 0 : index
    %43 = vector.load %arg9[%c1_45, %c2_46, %c0_47] : memref<18x18x16xbf16, #tpu.memory_space<vmem>>, vector<16x16x16xbf16>
    %44 = vector.shape_cast %43 : vector<16x16x16xbf16> to vector<256x16xbf16>
    %c5 = arith.constant 5 : index
    %c0_48 = arith.constant 0 : index
    %c0_49 = arith.constant 0 : index
    %45 = vector.load %arg4[%c5, %c0_48, %c0_49] : memref<9x16x16xbf16, #tpu.memory_space<vmem>>, vector<1x16x16xbf16>
    %46 = vector.shape_cast %45 : vector<1x16x16xbf16> to vector<16x16xbf16>
    %cst_50 = arith.constant dense<0.000000e+00> : vector<256x16xf32>
    %47 = tpu.matmul %44, %46, %cst_50 {dimension_numbers = #tpu.dot_dimension_numbers<[1], [0], [0], [1], [0, 0, 1, 1], [], []>} : vector<256x16xbf16>, vector<16x16xbf16>, vector<256x16xf32> -> vector<256x16xf32>
    %48 = arith.addf %42, %47 : vector<256x16xf32>
    %c2_51 = arith.constant 2 : index
    %c0_52 = arith.constant 0 : index
    %c0_53 = arith.constant 0 : index
    %49 = vector.load %arg9[%c2_51, %c0_52, %c0_53] : memref<18x18x16xbf16, #tpu.memory_space<vmem>>, vector<16x16x16xbf16>
    %50 = vector.shape_cast %49 : vector<16x16x16xbf16> to vector<256x16xbf16>
    %c6 = arith.constant 6 : index
    %c0_54 = arith.constant 0 : index
    %c0_55 = arith.constant 0 : index
    %51 = vector.load %arg4[%c6, %c0_54, %c0_55] : memref<9x16x16xbf16, #tpu.memory_space<vmem>>, vector<1x16x16xbf16>
    %52 = vector.shape_cast %51 : vector<1x16x16xbf16> to vector<16x16xbf16>
    %cst_56 = arith.constant dense<0.000000e+00> : vector<256x16xf32>
    %53 = tpu.matmul %50, %52, %cst_56 {dimension_numbers = #tpu.dot_dimension_numbers<[1], [0], [0], [1], [0, 0, 1, 1], [], []>} : vector<256x16xbf16>, vector<16x16xbf16>, vector<256x16xf32> -> vector<256x16xf32>
    %54 = arith.addf %48, %53 : vector<256x16xf32>
    %c2_57 = arith.constant 2 : index
    %c1_58 = arith.constant 1 : index
    %c0_59 = arith.constant 0 : index
    %55 = vector.load %arg9[%c2_57, %c1_58, %c0_59] : memref<18x18x16xbf16, #tpu.memory_space<vmem>>, vector<16x16x16xbf16>
    %56 = vector.shape_cast %55 : vector<16x16x16xbf16> to vector<256x16xbf16>
    %c7 = arith.constant 7 : index
    %c0_60 = arith.constant 0 : index
    %c0_61 = arith.constant 0 : index
    %57 = vector.load %arg4[%c7, %c0_60, %c0_61] : memref<9x16x16xbf16, #tpu.memory_space<vmem>>, vector<1x16x16xbf16>
    %58 = vector.shape_cast %57 : vector<1x16x16xbf16> to vector<16x16xbf16>
    %cst_62 = arith.constant dense<0.000000e+00> : vector<256x16xf32>
    %59 = tpu.matmul %56, %58, %cst_62 {dimension_numbers = #tpu.dot_dimension_numbers<[1], [0], [0], [1], [0, 0, 1, 1], [], []>} : vector<256x16xbf16>, vector<16x16xbf16>, vector<256x16xf32> -> vector<256x16xf32>
    %60 = arith.addf %54, %59 : vector<256x16xf32>
    %c2_63 = arith.constant 2 : index
    %c2_64 = arith.constant 2 : index
    %c0_65 = arith.constant 0 : index
    %61 = vector.load %arg9[%c2_63, %c2_64, %c0_65] : memref<18x18x16xbf16, #tpu.memory_space<vmem>>, vector<16x16x16xbf16>
    %62 = vector.shape_cast %61 : vector<16x16x16xbf16> to vector<256x16xbf16>
    %c8 = arith.constant 8 : index
    %c0_66 = arith.constant 0 : index
    %c0_67 = arith.constant 0 : index
    %63 = vector.load %arg4[%c8, %c0_66, %c0_67] : memref<9x16x16xbf16, #tpu.memory_space<vmem>>, vector<1x16x16xbf16>
    %64 = vector.shape_cast %63 : vector<1x16x16xbf16> to vector<16x16xbf16>
    %cst_68 = arith.constant dense<0.000000e+00> : vector<256x16xf32>
    %65 = tpu.matmul %62, %64, %cst_68 {dimension_numbers = #tpu.dot_dimension_numbers<[1], [0], [0], [1], [0, 0, 1, 1], [], []>} : vector<256x16xbf16>, vector<16x16xbf16>, vector<256x16xf32> -> vector<256x16xf32>
    %66 = arith.addf %60, %65 : vector<256x16xf32>
    %c0_69 = arith.constant 0 : index
    %c0_70 = arith.constant 0 : index
    %67 = vector.load %arg5[%c0_69, %c0_70] : memref<1x16xf32, #tpu.memory_space<vmem>>, vector<1x16xf32>
    %68 = vector.broadcast %67 : vector<1x16xf32> to vector<256x16xf32>
    %69 = arith.addf %66, %68 : vector<256x16xf32>
    %cst_71 = arith.constant 0.000000e+00 : f32
    %70 = vector.broadcast %cst_71 : f32 to vector<256x16xf32>
    %71 = arith.maximumf %69, %70 : vector<256x16xf32>
    %72 = arith.truncf %71 : vector<256x16xf32> to vector<256x16xbf16>
    %c0_72 = arith.constant 0 : index
    %c0_73 = arith.constant 0 : index
    %73 = vector.load %arg6[%c0_72, %c0_73] : memref<16x64xbf16, #tpu.memory_space<vmem>>, vector<16x64xbf16>
    %cst_74 = arith.constant dense<0.000000e+00> : vector<256x64xf32>
    %74 = tpu.matmul %72, %73, %cst_74 {dimension_numbers = #tpu.dot_dimension_numbers<[1], [0], [0], [1], [0, 0, 1, 1], [], []>} : vector<256x16xbf16>, vector<16x64xbf16>, vector<256x64xf32> -> vector<256x64xf32>
    %c0_75 = arith.constant 0 : index
    %c0_76 = arith.constant 0 : index
    %c0_77 = arith.constant 0 : index
    %75 = vector.load %arg1[%c0_75, %c0_76, %c0_77] : memref<1x256x64xbf16, #tpu.memory_space<vmem>>, vector<1x256x64xbf16>
    %76 = vector.shape_cast %75 : vector<1x256x64xbf16> to vector<256x64xbf16>
    %77 = arith.extf %76 : vector<256x64xbf16> to vector<256x64xf32>
    %c0_78 = arith.constant 0 : index
    %c0_79 = arith.constant 0 : index
    %78 = vector.load %arg7[%c0_78, %c0_79] : memref<1x64xf32, #tpu.memory_space<vmem>>, vector<1x64xf32>
    %79 = vector.broadcast %78 : vector<1x64xf32> to vector<256x64xf32>
    %80 = arith.addf %74, %79 : vector<256x64xf32>
    %81 = arith.addf %80, %77 : vector<256x64xf32>
    %cst_80 = arith.constant 0.000000e+00 : f32
    %82 = vector.broadcast %cst_80 : f32 to vector<256x64xf32>
    %83 = arith.maximumf %81, %82 : vector<256x64xf32>
    %84 = arith.truncf %83 : vector<256x64xf32> to vector<256x64xbf16>
    %c0_81 = arith.constant 0 : index
    %c0_82 = arith.constant 0 : index
    %c0_83 = arith.constant 0 : index
    %85 = vector.load %arg8[%c0_81, %c0_82, %c0_83] : memref<1x256x64xbf16, #tpu.memory_space<vmem>>, vector<1x256x64xbf16>
    %86 = vector.shape_cast %85 : vector<1x256x64xbf16> to vector<256x64xbf16>
    %87 = vector.shape_cast %84 : vector<256x64xbf16> to vector<1x256x64xbf16>
    tpu.vector_store %arg8[%c0_81, %c0_82, %c0_83], %87 {strides = array<i32>} : memref<1x256x64xbf16, #tpu.memory_space<vmem>>, vector<1x256x64xbf16>,
    return
  }
  func.func @transform_0(%arg0: i32) -> (i32, i32, i32) {
    %c0_i32 = arith.constant 0 : i32
    %c0_i32_0 = arith.constant 0 : i32
    %c0_i32_1 = arith.constant 0 : i32
    return %arg0, %c0_i32, %c0_i32_0 : i32, i32, i32
  }
  func.func @transform_1(%arg0: i32) -> (i32, i32) {
    %c0_i32 = arith.constant 0 : i32
    %c0_i32_0 = arith.constant 0 : i32
    %c0_i32_1 = arith.constant 0 : i32
    return %c0_i32, %c0_i32_0 : i32, i32
  }
  func.func @transform_2(%arg0: i32) -> (i32, i32) {
    %c0_i32 = arith.constant 0 : i32
    %c0_i32_0 = arith.constant 0 : i32
    %c0_i32_1 = arith.constant 0 : i32
    return %c0_i32, %c0_i32_0 : i32, i32
  }
  func.func @transform_3(%arg0: i32) -> (i32, i32, i32) {
    %c0_i32 = arith.constant 0 : i32
    %c0_i32_0 = arith.constant 0 : i32
    %c0_i32_1 = arith.constant 0 : i32
    %c0_i32_2 = arith.constant 0 : i32
    return %c0_i32, %c0_i32_0, %c0_i32_1 : i32, i32, i32
  }
  func.func @transform_4(%arg0: i32) -> (i32, i32) {
    %c0_i32 = arith.constant 0 : i32
    %c0_i32_0 = arith.constant 0 : i32
    %c0_i32_1 = arith.constant 0 : i32
    return %c0_i32, %c0_i32_0 : i32, i32
  }
  func.func @transform_5(%arg0: i32) -> (i32, i32) {
    %c0_i32 = arith.constant 0 : i32
    %c0_i32_0 = arith.constant 0 : i32
    %c0_i32_1 = arith.constant 0 : i32
    return %c0_i32, %c0_i32_0 : i32, i32
  }
  func.func @transform_6(%arg0: i32) -> (i32, i32) {
    %c0_i32 = arith.constant 0 : i32
    %c0_i32_0 = arith.constant 0 : i32
    %c0_i32_1 = arith.constant 0 : i32
    return %c0_i32, %c0_i32_0 : i32, i32
  }
  func.func @transform_7(%arg0: i32) -> (i32, i32, i32) {
    %c0_i32 = arith.constant 0 : i32
    %c0_i32_0 = arith.constant 0 : i32
    %c0_i32_1 = arith.constant 0 : i32
    return %arg0, %c0_i32, %c0_i32_0 : i32, i32, i32
  }
}

</mosaic_0001>

<bundles_post_ra>
// kernel: bottleneck_forward.1
= control target key start
LH: loop header
LB: loop body
LE: loop exit
PB: predicated region body
PF: predicated region fallthrough
CT: control target
= control target key end

     0   :  { %s7870_s24 = smov 0   ;;  %s10687_s0 = inlined_call_operand.vmem [shape: bf16[2,256,64], index: 0, kind: input, shape index: {}]   ;;  %s10688_s1 = inlined_call_operand.vmem [shape: bf16[64,16], index: 1, kind: input, shape index: {}]   ;;  %s10689_s2 = inlined_call_operand.vmem [shape: f32[1,16], index: 2, kind: input, shape index: {}]   ;;  %s10690_s3 = inlined_call_operand.vmem [shape: bf16[9,16,16], index: 3, kind: input, shape index: {}]   ;;  %s10691_s4 = inlined_call_operand.vmem [shape: f32[1,16], index: 4, kind: input, shape index: {}]   ;;  %s10692_s5 = inlined_call_operand.vmem [shape: bf16[16,64], index: 5, kind: input, shape index: {}]   ;;  %s10693_s6 = inlined_call_operand.vmem [shape: f32[1,64], index: 6, kind: input, shape index: {}]   ;;  %s10694_s7 = inlined_call_operand.vmem [shape: bf16[2,256,64], index: 7, kind: output, shape index: {}]  }
   0x1 LB: > { %s6514_s25 = sadd.s32 4294967295, %s7827_s24   ;;  %p6518_p0 = scmp.ge.s32.totalorder %s7827_s24, 1  ;;  %s7827_s24 = sphi %s7870_s24, %s17_s24  }
   0x2   : > { %p237_p1 = scmp.lt.s32.totalorder %s7827_s24, 3 }
   0x4   : > { %p238_p2 = pnand %p6518_p0, %p237_p1 }
   0x6   : > { %241 = sbr.rel (%p238_p2) target bundleno = 1064 (0x428), region = 48 }
   0xb   : > { %v7732_v0 = vld [vmem:[%s10688_s1 + $0x18] sm:$0xff]   ;;  %p269_p3 = scmp.lt.s32.totalorder %s6514_s25, 1  ;;  %v7733_v1 = vld [vmem:[%s10688_s1 + $0x10] sm:$0xff]   ;;  %vm487_vm0 = vcmask 523264   ;;  %v7734_v2 = vld [vmem:[%s10688_s1 + $0x8] sm:$0xff]   ;;  %vm280_vm1 = vcmask 125952  }
   0xc   : > { %7341 = vmatprep.subr.bf16.mxu0 %v7732_v0  ;;  %v7829_v3 = vmov 0   ;;  %v7735_v5 = vld [vmem:[%s10688_s1] sm:$0xff]   ;;  %vm283_vm2 = vcmask 122880   ;;  %v7752_v21 = vld [vmem:[%s10690_s3 + $0x8] sm:$0xff]   ;;  %vm1316_vm3 = vsmask.f32 3328 }
   0xd   : > { %s10942_s25 = smov (!%p269_p3, %s6514_s25), 1  ;;  %7342 = vmatpush3.bf16.msra.mxu0 %v7732_v0  ;;  %288 = vst.msk [vmem:[#allocation2 + $0x18] sm:$0xf] %vm280_vm1, %v7829_v3  ;;  %281 = vst.msk [vmem:[#allocation2] sm:$0xf] %vm280_vm1, %v7829_v3  ;;  %7721 = vmatprep.subr.bf16.mxu1 %v7752_v21  ;;  %vm1760_vm6 = vcmask 130048  }
   0xe   : > { %7343 = vmatprep.subr.bf16.mxu0 %v7733_v1  ;;  %s7006_s9 = sshll.u32 %s10942_s25, 7  ;;  %282 = vst.msk [vmem:[#allocation2 + $0x4] sm:$0xf] %vm280_vm1, %v7829_v3  ;;  %285 = vst.msk [vmem:[#allocation2 + $0xc] sm:$0xf] %vm280_vm1, %v7829_v3  ;;  %7722 = vmatpush3.bf16.msra.mxu1 %v7752_v21  ;;  %v8055_v43 = vld [vmem:[%s10690_s3 + $0x10] sm:$0xff]  }
   0xf   : > { %s7895_s12 = scalar_lea.vmem %s10687_s0, %s7006_s9  ;;  %286 = vst.msk [vmem:[#allocation2 + $0x10] sm:$0xf] %vm280_vm1, %v7829_v3  ;;  %289 = vst.msk [vmem:[#allocation2 + $0x1c] sm:$0xf] %vm280_vm1, %v7829_v3  ;;  %vm1317_vm4 = vsmask.f32 7440  ;;  %s10577_s30 = scalar_lea.vmem %s10694_s7, %s7006_s9 }
  0x10   : > { %291 = vst.msk [vmem:[#allocation2 + $0x24] sm:$0xf] %vm280_vm1, %v7829_v3  ;;  %292 = vst.msk [vmem:[#allocation2 + $0x28] sm:$0xf] %vm280_vm1, %v7829_v3  ;;  %v7736_v4 = vld [vmem:[%s7895_s12] sm:$0xff]   ;;  %v7737_v6 = vld [vmem:[%s7895_s12 + $0x8] sm:$0xff]  }
  0x11   : > { %294 = vst.msk [vmem:[#allocation2 + $0x30] sm:$0xf] %vm280_vm1, %v7829_v3  ;;  %295 = vst.msk [vmem:[#allocation2 + $0x34] sm:$0xf] %vm280_vm1, %v7829_v3  ;;  %7344 = vmatpush3.bf16.msra.mxu0 %v7733_v1  ;;  %7349 = vmatprep.mubr.msk.bf16.mxu0 %vm487_vm0, %v7736_v4  ;;  %v7738_v7 = vld [vmem:[%s7895_s12 + $0x10] sm:$0xff]   ;;  %v7739_v8 = vld [vmem:[%s7895_s12 + $0x18] sm:$0xff]  }
  0x12   : > { %297 = vst.msk [vmem:[#allocation2 + $0x3c] sm:$0xf] %vm280_vm1, %v7829_v3  ;;  %298 = vst.msk [vmem:[#allocation2 + $0x40] sm:$0xf] %vm280_vm1, %v7829_v3  ;;  %7345 = vmatprep.subr.bf16.mxu0 %v7734_v2  ;;  %v7740_v9 = vld [vmem:[%s7895_s12 + $0x20] sm:$0xff]   ;;  %v7741_v10 = vld [vmem:[%s7895_s12 + $0x28] sm:$0xff]  }
  0x13   : > { %300 = vst.msk [vmem:[#allocation2 + $0x48] sm:$0xf] %vm280_vm1, %v7829_v3  ;;  %301 = vst.msk [vmem:[#allocation2 + $0x4c] sm:$0xf] %vm280_vm1, %v7829_v3  ;;  %v7742_v11 = vld [vmem:[%s7895_s12 + $0x30] sm:$0xff]   ;;  %v7743_v12 = vld [vmem:[%s7895_s12 + $0x38] sm:$0xff]  }
  0x14   : > { %303 = vst.msk [vmem:[#allocation2 + $0x54] sm:$0xf] %vm280_vm1, %v7829_v3  ;;  %304 = vst.msk [vmem:[#allocation2 + $0x58] sm:$0xf] %vm280_vm1, %v7829_v3  ;;  %v7744_v13 = vld [vmem:[%s7895_s12 + $0x40] sm:$0xff]   ;;  %v7745_v14 = vld [vmem:[%s7895_s12 + $0x48] sm:$0xff]  }
  0x15   : > { %306 = vst.msk [vmem:[#allocation2 + $0x60] sm:$0xf] %vm280_vm1, %v7829_v3  ;;  %307 = vst.msk [vmem:[#allocation2 + $0x64] sm:$0xf] %vm280_vm1, %v7829_v3  ;;  %7346 = vmatpush3.bf16.msra.mxu0 %v7734_v2  ;;  %v7746_v15 = vld [vmem:[%s7895_s12 + $0x50] sm:$0xff]   ;;  %v7747_v16 = vld [vmem:[%s7895_s12 + $0x58] sm:$0xff]  }
  0x16   : > { %309 = vst.msk [vmem:[#allocation2 + $0x6c] sm:$0xf] %vm280_vm1, %v7829_v3  ;;  %310 = vst.msk [vmem:[#allocation2 + $0x70] sm:$0xf] %vm280_vm1, %v7829_v3  ;;  %7347 = vmatprep.subr.bf16.mxu0 %v7735_v5  ;;  %v7748_v17 = vld [vmem:[%s7895_s12 + $0x60] sm:$0xff]   ;;  %v7749_v18 = vld [vmem:[%s7895_s12 + $0x68] sm:$0xff]  }
  0x17   : > { %312 = vst.msk [vmem:[#allocation2 + $0x78] sm:$0xf] %vm280_vm1, %v7829_v3  ;;  %313 = vst.msk [vmem:[#allocation2 + $0x7c] sm:$0xf] %vm280_vm1, %v7829_v3  ;;  %v7750_v19 = vld [vmem:[%s7895_s12 + $0x70] sm:$0xff]   ;;  %v7751_v20 = vld [vmem:[%s7895_s12 + $0x78] sm:$0xff]  }
  0x18   : > { %315 = vst.msk [vmem:[#allocation2 + $0x84] sm:$0xf] %vm280_vm1, %v7829_v3  ;;  %316 = vst.msk [vmem:[#allocation2 + $0x88] sm:$0xf] %vm280_vm1, %v7829_v3  ;;  %v1266_v22 = vld [vmem:[#allocation2] sm:$0xf] }
  0x19   : > { %318 = vst.msk [vmem:[#allocation2 + $0x90] sm:$0xf] %vm280_vm1, %v7829_v3  ;;  %319 = vst.msk [vmem:[#allocation2 + $0x94] sm:$0xf] %vm280_vm1, %v7829_v3  ;;  %7348 = vmatpush3.bf16.msra.mxu0 %v7735_v5  ;;  %v1267_v23 = vld [vmem:[#allocation2 + $0x4] sm:$0xf] }
  0x1a   : > { %321 = vst.msk [vmem:[#allocation2 + $0x9c] sm:$0xf] %vm280_vm1, %v7829_v3  ;;  %322 = vst.msk [vmem:[#allocation2 + $0xa0] sm:$0xf] %vm280_vm1, %v7829_v3  ;;  %7381 = vmatprep.subr.bf16.mxu0 %v7752_v21  ;;  %v1320_v24 = vshrl.u32 %v1266_v22, 16  ;;  %v1323_v25 = vshll.u32 %v1266_v22, 16 }
  0x1b   : > { %324 = vst.msk [vmem:[#allocation2 + $0xa8] sm:$0xf] %vm280_vm1, %v7829_v3  ;;  %325 = vst.msk [vmem:[#allocation2 + $0xac] sm:$0xf] %vm280_vm1, %v7829_v3  ;;  %v1329_v26 = vshll.u32 %v1267_v23, 16  ;;  %v1333_v27 = vshrl.u32 %v1267_v23, 16 }
  0x1c   : > { %327 = vst.msk [vmem:[#allocation2 + $0xb4] sm:$0xf] %vm280_vm1, %v7829_v3  ;;  %328 = vst.msk [vmem:[#allocation2 + $0xb8] sm:$0xf] %vm280_vm1, %v7829_v3  ;;  %7350 = vmatmul.mubr.msk.bf16.vlgmr.msra.gmra.mxu0 %vm487_vm0, %v7737_v6  ;;  %v1322_v28 = vrot.slane %v1320_v24, 4  ;;  %v1325_v29 = vrot.slane %v1323_v25, 5 }
  0x1d   : > { %330 = vst.msk [vmem:[#allocation2 + $0xc0] sm:$0xf] %vm280_vm1, %v7829_v3  ;;  %331 = vst.msk [vmem:[#allocation2 + $0xc4] sm:$0xf] %vm280_vm1, %v7829_v3  ;;  %7353 = vmatprep.mubr.msk.bf16.mxu0 %vm487_vm0, %v7738_v7  ;;  %7382 = vmatpush3.bf16.msra.mxu0 %v7752_v21  ;;  %v1331_v30 = vrot.slane %v1329_v26, 5  ;;  %v1335_v31 = vrot.slane %v1333_v27, 4 }
  0x1e   : > { %333 = vst.msk [vmem:[#allocation2 + $0xcc] sm:$0xf] %vm280_vm1, %v7829_v3  ;;  %334 = vst.msk [vmem:[#allocation2 + $0xd0] sm:$0xf] %vm280_vm1, %v7829_v3  ;;  %v1326_v33 = vor.u32 %v1325_v29, %v1322_v28  ;;  %7449 = vmatprep.subr.bf16.mxu0 %v8055_v43  ;;  %v7754_v44 = vld [vmem:[%s10690_s3] sm:$0xff]   ;;  %v2318_v47 = vrot.slane %v1267_v23, 5 }
  0x1f   : > { %290 = vst.msk [vmem:[#allocation2 + $0x20] sm:$0x1] %vm283_vm2, %v7829_v3  ;;  %284 = vst.msk [vmem:[#allocation2 + $0x8] sm:$0x1] %vm283_vm2, %v7829_v3  ;;  %v1336_v34 = vor.u32 %v1335_v31, %v1331_v30  ;;  %7415 = vmatprep.subr.bf16.mxu1 %v7754_v44  ;;  %v8064_v45 = vld [vmem:[%s10689_s2] ss:$0 sm:$0xff] }
  0x20   : > { %287 = vst.msk [vmem:[#allocation2 + $0x14] sm:$0x1] %vm283_vm2, %v7829_v3  ;;  %293 = vst.msk [vmem:[#allocation2 + $0x2c] sm:$0x1] %vm283_vm2, %v7829_v3  ;;  %v1327_v36 = vrot.slane %v1326_v33, 4  ;;  %vm2313_vm7 = vcmask 1042432  }
  0x21   : > { %296 = vst.msk [vmem:[#allocation2 + $0x38] sm:$0x1] %vm283_vm2, %v7829_v3  ;;  %299 = vst.msk [vmem:[#allocation2 + $0x44] sm:$0x1] %vm283_vm2, %v7829_v3  ;;  %v1337_v37 = vrot.slane %v1336_v34, 4  ;;  %vm2314_vm8 = vcmask 1046532  }
  0x22   : > { %302 = vst.msk [vmem:[#allocation2 + $0x50] sm:$0x1] %vm283_vm2, %v7829_v3  ;;  %305 = vst.msk [vmem:[#allocation2 + $0x5c] sm:$0x1] %vm283_vm2, %v7829_v3  ;;  %v2265_v46 = vld [vmem:[#allocation2] sm:$0xe] }
  0x23   : > { %308 = vst.msk [vmem:[#allocation2 + $0x68] sm:$0x1] %vm283_vm2, %v7829_v3  ;;  %311 = vst.msk [vmem:[#allocation2 + $0x74] sm:$0x1] %vm283_vm2, %v7829_v3  ;;  %v6660_v51 = vrot.slane %v2265_v46, 9  ;;  %v2320_v54 = vrot.slane %v2318_v47, 4 }
  0x24   : > { %7354 = vmatmul.mubr.msk.bf16.gmra.mxu0 %vm487_vm0, %v7739_v8  ;;  %314 = vst.msk [vmem:[#allocation2 + $0x80] sm:$0x1] %vm283_vm2, %v7829_v3  ;;  %317 = vst.msk [vmem:[#allocation2 + $0x8c] sm:$0x1] %vm283_vm2, %v7829_v3  ;;  %vm1150_vm10 = vsmask.f32 7938 }
  0x25   : > { %7357 = vmatprep.mubr.msk.bf16.mxu0 %vm487_vm0, %v7740_v9  ;;  %320 = vst.msk [vmem:[#allocation2 + $0x98] sm:$0x1] %vm283_vm2, %v7829_v3  ;;  %323 = vst.msk [vmem:[#allocation2 + $0xa4] sm:$0x1] %vm283_vm2, %v7829_v3  ;;  %vm825_vm11 = vsmask.f32 256 }
  0x26   : > { %326 = vst.msk [vmem:[#allocation2 + $0xb0] sm:$0x1] %vm283_vm2, %v7829_v3  ;;  %329 = vst.msk [vmem:[#allocation2 + $0xbc] sm:$0x1] %vm283_vm2, %v7829_v3  ;;  %v1300_v32 = vld [vmem:[#allocation2 + $0x8] sm:$0x1] }
  0x27   : > { %332 = vst.msk [vmem:[#allocation2 + $0xc8] sm:$0x1] %vm283_vm2, %v7829_v3  ;;  %335 = vst.msk [vmem:[#allocation2 + $0xd4] sm:$0x1] %vm283_vm2, %v7829_v3  ;;  %v1339_v35 = vshll.u32 %v1300_v32, 16  ;;  %v2321_v55 = vrot.slane %v1300_v32, 5 }
  0x28   : > { %vm8043_vm5 = vmor %vm1316_vm3, %vm1317_vm4  ;;  %vm826_vm12 = vsmask.f32 4368  ;;  %v1165_v32 = vld [vmem:[#allocation2 + $0x20] sm:$0x1] }
  0x29   : > { %v1341_v38 = vrot.slane %v1339_v35, 5  ;;  %v1332_v40 = vsel %vm8043_vm5, %v1327_v36, %v1331_v30  ;;  %vm8069_vm9 = vmor %vm2313_vm7, %vm2314_vm8 }
  0x2a   : > { %v8075_v62 = vsel %vm8069_vm9, %v6660_v51, %v2318_v47  ;;  %v8079_v2 = vsel %vm8069_vm9, %v2320_v54, %v2321_v55  ;;  %vm8084_vm13 = vmand %vm280_vm1, %vm1150_vm10 }
  0x2b   : > { %v1342_v41 = vsel %vm8043_vm5, %v1337_v37, %v1341_v38  ;;  %vm8096_vm14 = vmor %vm825_vm11, %vm826_vm12 }
  0x2c   : > { %7358 = vmatmul.mubr.msk.bf16.gmra.mxu0 %vm487_vm0, %v7741_v10  ;;  %v6594_v42 = vcombine.low %v1332_v40, %v1342_v41  ;;  %v1161_v10 = vld [vmem:[#allocation2 + $0x18] sm:$0xf]  ;;  %vm8102_vm15 = vmand %vm283_vm2, %vm825_vm11 }
  0x2d   : > { %7361 = vmatprep.mubr.msk.bf16.mxu0 %vm487_vm0, %v7742_v11 }
  0x34   : > { %7362 = vmatmul.mubr.msk.bf16.gmra.mxu0 %vm487_vm0, %v7743_v12 }
  0x35   : > { %7365 = vmatprep.mubr.msk.bf16.mxu0 %vm487_vm0, %v7744_v13 }
  0x3c   : > { %7366 = vmatmul.mubr.msk.bf16.gmra.mxu0 %vm487_vm0, %v7745_v14 }
  0x3d   : > { %7369 = vmatprep.mubr.msk.bf16.mxu0 %vm487_vm0, %v7746_v15  ;;  %v6678_v15 = vcombine.low %v8075_v62, %v8079_v2 }
  0x44   : > { %7370 = vmatmul.mubr.msk.bf16.gmra.mxu0 %vm487_vm0, %v7747_v16 }
  0x45   : > { %7373 = vmatprep.mubr.msk.bf16.mxu0 %vm487_vm0, %v7748_v17 }
  0x4c   : > { %7374 = vmatmul.mubr.msk.bf16.gmra.mxu0 %vm487_vm0, %v7749_v18 }
  0x4d   : > { %7377 = vmatprep.mubr.msk.bf16.mxu0 %vm487_vm0, %v7750_v19 }
  0x54   : > { %7378 = vmatmul.mubr.msk.bf16.gmra.mxu0 %vm487_vm0, %v7751_v20  ;;  %v1152_v20 = vld [vmem:[#allocation2 + $0xc] sm:$0xf]  ;;  %vm6426_vm0 = vcmask 519168  }
  0x55   : > { %7383 = vmatprep.mubr.msk.bf16.mxu0 %vm1760_vm6, %v6594_v42 }
  0xdc   : > { %v7351_v48 = vpop.f32.mrf.mxu0 }
  0xdd   : > { %v579_v49 = vadd.f32 %v7351_v48, %v8064_v45 }
  0xde   : > { %v570_v50 = vpop.f32.mrf.mxu0 }
  0xdf   : > { %v699_v52 = vmax.f32 %v579_v49, 0.0  ;;  %v571_v53 = vadd.f32 %v8064_v45, %v570_v50 }
  0xe0   : > { %v7352_v56 = vpop.f32.mrf.mxu0 }
  0xe1   : > { %v7010_v57 = vpack.c.bf16 %v699_v52, %v699_v52  ;;  %v697_v58 = vmax.f32 %v571_v53, 0.0  ;;  %v582_v59 = vadd.f32 %v7352_v56, %v8064_v45  ;;  %v1158_v52 = vld [vmem:[#allocation2 + $0x14] sm:$0x1] }
  0xe2   : > { %v573_v61 = vpop.f32.mrf.mxu0 }
  0xe3   : > { %v846_v63 = vshrl.u32 %v7010_v57, 16  ;;  %v7008_v0 = vpack.c.bf16 %v697_v58, %v697_v58  ;;  %v700_v1 = vmax.f32 %v582_v59, 0.0  ;;  %v574_v3 = vadd.f32 %v8064_v45, %v573_v61  ;;  %v1175_v61 = vld [vmem:[#allocation2 + $0x30] sm:$0xf] }
  0xe4   : > { %v7355_v4 = vpop.f32.mrf.mxu0  ;;  %v849_v6 = vshll.u32 %v7010_v57, 16 }
  0xe5   : > { %v848_v5 = vrot.slane %v846_v63, 7  ;;  %v829_v7 = vshrl.u32 %v7008_v0, 16  ;;  %v7011_v8 = vpack.c.bf16 %v700_v1, %v700_v1  ;;  %v832_v11 = vshll.u32 %v7008_v0, 16 }
  0xe6   : > { %v698_v12 = vmax.f32 %v574_v3, 0.0  ;;  %v595_v13 = vadd.f32 %v7355_v4, %v8064_v45  ;;  %v586_v14 = vpop.f32.mrf.mxu0 }
  0xe7   : > { %v851_v16 = vor.u32 %v849_v6, %v848_v5  ;;  %v852_v17 = vrot.slane %v848_v5, 4  ;;  %v831_v18 = vrot.slane %v829_v7, 7  ;;  %v854_v19 = vshrl.u32 %v7011_v8, 16 }
  0xe8   : > { %v857_v21 = vshll.u32 %v7011_v8, 16  ;;  %v7009_v22 = vpack.c.bf16 %v698_v12, %v698_v12  ;;  %v703_v23 = vmax.f32 %v595_v13, 0.0  ;;  %v587_v24 = vadd.f32 %v8064_v45, %v586_v14  ;;  %v7356_v25 = vpop.f32.mrf.mxu0 }
  0xe9   : > { %v1162_v26 = vsel %vm8084_vm13, %v851_v16, %v1161_v10  ;;  %v834_v27 = vor.u32 %v832_v11, %v831_v18  ;;  %v835_v28 = vrot.slane %v831_v18, 4  ;;  %v856_v30 = vrot.slane %v854_v19, 7  ;;  %v1168_v16 = vld [vmem:[#allocation2 + $0x24] sm:$0xf] }
  0xea   : > { %1163 = vst [vmem:[#allocation2 + $0x18] sm:$0xf] %v1162_v26  ;;  %v837_v33 = vshrl.u32 %v7009_v22, 16  ;;  %v840_v34 = vshll.u32 %v7009_v22, 16  ;;  %v7014_v35 = vpack.c.bf16 %v703_v23, %v703_v23  ;;  %v701_v36 = vmax.f32 %v587_v24, 0.0  ;;  %v589_v37 = vpop.f32.mrf.mxu0 }
  0xeb   : > { %v1153_v38 = vsel %vm8084_vm13, %v834_v27, %v1152_v20  ;;  %v859_v40 = vor.u32 %v857_v21, %v856_v30  ;;  %v861_v41 = vrot.slane %v856_v30, 4  ;;  %v598_v42 = vadd.f32 %v7356_v25, %v8064_v45  ;;  %v1179_v25 = vld [vmem:[#allocation2 + $0x38] sm:$0x1] }
  0xec   : > { %1154 = vst [vmem:[#allocation2 + $0xc] sm:$0xf] %v1153_v38  ;;  %v839_v44 = vrot.slane %v837_v33, 7  ;;  %v880_v46 = vshrl.u32 %v7014_v35, 16  ;;  %v883_v47 = vshll.u32 %v7014_v35, 16  ;;  %v7012_v48 = vpack.c.bf16 %v701_v36, %v701_v36  ;;  %v7359_v49 = vpop.f32.mrf.mxu0 }
  0xed   : > { %v860_v50 = vsel %vm8096_vm14, %v852_v17, %v859_v40  ;;  %v1166_v51 = vsel %vm8102_vm15, %v861_v41, %v1165_v32  ;;  %v704_v53 = vmax.f32 %v598_v42, 0.0  ;;  %v590_v54 = vadd.f32 %v8064_v45, %v589_v37  ;;  %v1172_v37 = vld [vmem:[#allocation2 + $0x2c] sm:$0x1] }
  0xee   : > { %1164 = vst.msk [vmem:[#allocation2 + $0x1c] sm:$0xf] %vm280_vm1, %v860_v50  ;;  %1167 = vst [vmem:[#allocation2 + $0x20] sm:$0x1] %v1166_v51  ;;  %v842_v55 = vor.u32 %v840_v34, %v839_v44  ;;  %v844_v56 = vrot.slane %v839_v44, 4  ;;  %v882_v57 = vrot.slane %v880_v46, 7  ;;  %v602_v59 = vpop.f32.mrf.mxu0  ;;  %v611_v3 = vadd.f32 %v7359_v49, %v8064_v45 }
  0xef   : > { %v863_v58 = vshrl.u32 %v7012_v48, 16  ;;  %v866_v63 = vshll.u32 %v7012_v48, 16  ;;  %v7015_v0 = vpack.c.bf16 %v704_v53, %v704_v53  ;;  %v702_v1 = vmax.f32 %v590_v54, 0.0 }
  0xf0   : > { %v843_v4 = vsel %vm8096_vm14, %v835_v28, %v842_v55  ;;  %v1159_v5 = vsel %vm8102_vm15, %v844_v56, %v1158_v52  ;;  %v885_v6 = vor.u32 %v883_v47, %v882_v57  ;;  %v886_v7 = vrot.slane %v882_v57, 4  ;;  %v7360_v8 = vpop.f32.mrf.mxu0  ;;  %v1189_v57 = vld [vmem:[#allocation2 + $0x48] sm:$0xf] }
  0xf1   : > { %1155 = vst.msk [vmem:[#allocation2 + $0x10] sm:$0xf] %vm280_vm1, %v843_v4  ;;  %1160 = vst [vmem:[#allocation2 + $0x14] sm:$0x1] %v1159_v5  ;;  %v865_v10 = vrot.slane %v863_v58, 7  ;;  %v888_v11 = vshrl.u32 %v7015_v0, 16  ;;  %v7013_v13 = vpack.c.bf16 %v702_v1, %v702_v1  ;;  %v603_v18 = vadd.f32 %v8064_v45, %v602_v59 }
  0xf2   : > { %v891_v12 = vshll.u32 %v7015_v0, 16  ;;  %v1176_v14 = vsel %vm8084_vm13, %v885_v6, %v1175_v61  ;;  %v707_v17 = vmax.f32 %v611_v3, 0.0  ;;  %v614_v19 = vadd.f32 %v7360_v8, %v8064_v45  ;;  %v605_v20 = vpop.f32.mrf.mxu0  ;;  %v1182_v4 = vld [vmem:[#allocation2 + $0x3c] sm:$0xf] }
  0xf3   : > { %1177 = vst [vmem:[#allocation2 + $0x30] sm:$0xf] %v1176_v14  ;;  %v868_v21 = vor.u32 %v866_v63, %v865_v10  ;;  %v869_v22 = vrot.slane %v865_v10, 4  ;;  %v890_v23 = vrot.slane %v888_v11, 7  ;;  %v871_v24 = vshrl.u32 %v7013_v13, 16 }
  0xf4   : > { %v874_v26 = vshll.u32 %v7013_v13, 16  ;;  %v7018_v27 = vpack.c.bf16 %v707_v17, %v707_v17  ;;  %v705_v28 = vmax.f32 %v603_v18, 0.0  ;;  %v708_v30 = vmax.f32 %v614_v19, 0.0  ;;  %v7363_v32 = vpop.f32.mrf.mxu0  ;;  %v1193_v14 = vld [vmem:[#allocation2 + $0x50] sm:$0x1] }
  0xf5   : > { %v1169_v33 = vsel %vm8084_vm13, %v868_v21, %v1168_v16  ;;  %v893_v34 = vor.u32 %v891_v12, %v890_v23  ;;  %v895_v35 = vrot.slane %v890_v23, 4  ;;  %v873_v36 = vrot.slane %v871_v24, 7 }
  0xf6   : > { %1170 = vst [vmem:[#allocation2 + $0x24] sm:$0xf] %v1169_v33  ;;  %v914_v38 = vshrl.u32 %v7018_v27, 16  ;;  %v917_v40 = vshll.u32 %v7018_v27, 16  ;;  %v7016_v41 = vpack.c.bf16 %v705_v28, %v705_v28  ;;  %v7019_v42 = vpack.c.bf16 %v708_v30, %v708_v30  ;;  %v618_v44 = vpop.f32.mrf.mxu0 }
  0xf7   : > { %v894_v46 = vsel %vm8096_vm14, %v886_v7, %v893_v34  ;;  %v1180_v47 = vsel %vm8102_vm15, %v895_v35, %v1179_v25  ;;  %v876_v48 = vor.u32 %v874_v26, %v873_v36  ;;  %v878_v49 = vrot.slane %v873_v36, 4 }
  0xf8   : > { %1178 = vst.msk [vmem:[#allocation2 + $0x34] sm:$0xf] %vm280_vm1, %v894_v46  ;;  %1181 = vst [vmem:[#allocation2 + $0x38] sm:$0x1] %v1180_v47  ;;  %v916_v50 = vrot.slane %v914_v38, 7  ;;  %v897_v51 = vshrl.u32 %v7016_v41, 16  ;;  %v7364_v54 = vpop.f32.mrf.mxu0  ;;  %v606_v59 = vadd.f32 %v8064_v45, %v605_v20  ;;  %v627_v6 = vadd.f32 %v7363_v32, %v8064_v45 }
  0xf9   : > { %v900_v52 = vshll.u32 %v7016_v41, 16  ;;  %v922_v53 = vshrl.u32 %v7019_v42, 16  ;;  %v877_v55 = vsel %vm8096_vm14, %v869_v22, %v876_v48  ;;  %v1173_v56 = vsel %vm8102_vm15, %v878_v49, %v1172_v37  ;;  %v1186_v41 = vld [vmem:[#allocation2 + $0x44] sm:$0x1] }
  0xfa   : > { %v925_v58 = vshll.u32 %v7019_v42, 16  ;;  %1171 = vst.msk [vmem:[#allocation2 + $0x28] sm:$0xf] %vm280_vm1, %v877_v55  ;;  %1174 = vst [vmem:[#allocation2 + $0x2c] sm:$0x1] %v1173_v56  ;;  %v919_v61 = vor.u32 %v917_v40, %v916_v50  ;;  %v920_v63 = vrot.slane %v916_v50, 4  ;;  %v621_v3 = vpop.f32.mrf.mxu0  ;;  %v619_v7 = vadd.f32 %v8064_v45, %v618_v44 }
  0xfb   : > { %v899_v0 = vrot.slane %v897_v51, 7  ;;  %v924_v1 = vrot.slane %v922_v53, 7  ;;  %v706_v5 = vmax.f32 %v606_v59, 0.0  ;;  %v630_v8 = vadd.f32 %v7364_v54, %v8064_v45  ;;  %v1203_v53 = vld [vmem:[#allocation2 + $0x60] sm:$0xf] }
  0xfc   : > { %v1190_v10 = vsel %vm8084_vm13, %v919_v61, %v1189_v57  ;;  %v7367_v16 = vpop.f32.mrf.mxu0  ;;  %v711_v19 = vmax.f32 %v627_v6, 0.0  ;;  %v709_v20 = vmax.f32 %v619_v7, 0.0  ;;  %v622_v24 = vadd.f32 %v8064_v45, %v621_v3 }
  0xfd   : > { %v902_v11 = vor.u32 %v900_v52, %v899_v0  ;;  %v903_v12 = vrot.slane %v899_v0, 4  ;;  %v927_v13 = vor.u32 %v925_v58, %v924_v1  ;;  %1191 = vst [vmem:[#allocation2 + $0x48] sm:$0xf] %v1190_v10  ;;  %v929_v17 = vrot.slane %v924_v1, 4  ;;  %v1196_v0 = vld [vmem:[#allocation2 + $0x54] sm:$0xf] }
  0xfe   : > { %v7017_v18 = vpack.c.bf16 %v706_v5, %v706_v5  ;;  %v712_v23 = vmax.f32 %v630_v8, 0.0  ;;  %v634_v25 = vpop.f32.mrf.mxu0  ;;  %v7022_v30 = vpack.c.bf16 %v711_v19, %v711_v19  ;;  %v7020_v32 = vpack.c.bf16 %v709_v20, %v709_v20  ;;  %v1207_v1 = vld [vmem:[#allocation2 + $0x68] sm:$0x1] }
  0xff   : > { %v1183_v21 = vsel %vm8084_vm13, %v902_v11, %v1182_v4  ;;  %v928_v22 = vsel %vm8096_vm14, %v920_v63, %v927_v13  ;;  %v1194_v26 = vsel %vm8102_vm15, %v929_v17, %v1193_v14  ;;  %v710_v34 = vmax.f32 %v622_v24, 0.0  ;;  %v1268_v13 = vld [vmem:[#allocation2 + $0xc] sm:$0xf] }
 0x100   : > { %1184 = vst [vmem:[#allocation2 + $0x3c] sm:$0xf] %v1183_v21  ;;  %1192 = vst.msk [vmem:[#allocation2 + $0x4c] sm:$0xf] %vm280_vm1, %v928_v22  ;;  %v905_v27 = vshrl.u32 %v7017_v18, 16  ;;  %v908_v28 = vshll.u32 %v7017_v18, 16  ;;  %v7023_v33 = vpack.c.bf16 %v712_v23, %v712_v23  ;;  %v643_v35 = vadd.f32 %v7367_v16, %v8064_v45  ;;  %v7368_v52 = vpop.f32.mrf.mxu0 }
 0x101   : > { %1195 = vst [vmem:[#allocation2 + $0x50] sm:$0x1] %v1194_v26  ;;  %v948_v37 = vshrl.u32 %v7022_v30, 16  ;;  %v951_v38 = vshll.u32 %v7022_v30, 16  ;;  %v635_v40 = vadd.f32 %v8064_v45, %v634_v25  ;;  %v931_v42 = vshrl.u32 %v7020_v32, 16 }
 0x102   : > { %v907_v36 = vrot.slane %v905_v27, 7  ;;  %v934_v44 = vshll.u32 %v7020_v32, 16  ;;  %v956_v46 = vshrl.u32 %v7023_v33, 16  ;;  %v959_v47 = vshll.u32 %v7023_v33, 16  ;;  %v1200_v23 = vld [vmem:[#allocation2 + $0x5c] sm:$0x1] }
 0x103   : > { %v950_v50 = vrot.slane %v948_v37, 7  ;;  %v7021_v51 = vpack.c.bf16 %v710_v34, %v710_v34  ;;  %v933_v54 = vrot.slane %v931_v42, 7  ;;  %v715_v56 = vmax.f32 %v643_v35, 0.0  ;;  %v1217_v33 = vld [vmem:[#allocation2 + $0x78] sm:$0xf] }
 0x104   : > { %v910_v48 = vor.u32 %v908_v28, %v907_v36  ;;  %v912_v49 = vrot.slane %v907_v36, 4  ;;  %v958_v55 = vrot.slane %v956_v46, 7  ;;  %v713_v57 = vmax.f32 %v635_v40, 0.0  ;;  %v8169_v37 = vld [vmem:[#allocation2 + $0x10] sm:$0xf] }
 0x105   : > { %v953_v61 = vor.u32 %v951_v38, %v950_v50  ;;  %v954_v63 = vrot.slane %v950_v50, 4  ;;  %v936_v3 = vor.u32 %v934_v44, %v933_v54  ;;  %v937_v4 = vrot.slane %v933_v54, 4  ;;  %v8178_v54 = vld [vmem:[#allocation2 + $0x14] sm:$0x1] }
 0x106   : > { %v911_v58 = vsel %vm8096_vm14, %v903_v12, %v910_v48  ;;  %v1187_v59 = vsel %vm8102_vm15, %v912_v49, %v1186_v41  ;;  %v961_v5 = vor.u32 %v959_v47, %v958_v55  ;;  %v963_v6 = vrot.slane %v958_v55, 4  ;;  %v637_v12 = vpop.f32.mrf.mxu0  ;;  %v1210_v48 = vld [vmem:[#allocation2 + $0x6c] sm:$0xf] }
 0x107   : > { %1185 = vst.msk [vmem:[#allocation2 + $0x40] sm:$0xf] %vm280_vm1, %v911_v58  ;;  %1188 = vst [vmem:[#allocation2 + $0x44] sm:$0x1] %v1187_v59  ;;  %v1204_v7 = vsel %vm8084_vm13, %v953_v61, %v1203_v53  ;;  %v939_v8 = vshrl.u32 %v7021_v51, 16  ;;  %v942_v10 = vshll.u32 %v7021_v51, 16  ;;  %v7026_v11 = vpack.c.bf16 %v715_v56, %v715_v56 }
 0x108   : > { %1205 = vst [vmem:[#allocation2 + $0x60] sm:$0xf] %v1204_v7  ;;  %v1197_v14 = vsel %vm8084_vm13, %v936_v3, %v1196_v0  ;;  %v962_v16 = vsel %vm8096_vm14, %v954_v63, %v961_v5  ;;  %v1208_v17 = vsel %vm8102_vm15, %v963_v6, %v1207_v1  ;;  %v7024_v18 = vpack.c.bf16 %v713_v57, %v713_v57  ;;  %v7371_v41 = vpop.f32.mrf.mxu0  ;;  %v1270_v0 = vld [vmem:[#allocation2 + $0x18] sm:$0xf] }
 0x109   : > { %1198 = vst [vmem:[#allocation2 + $0x54] sm:$0xf] %v1197_v14  ;;  %1206 = vst.msk [vmem:[#allocation2 + $0x64] sm:$0xf] %vm280_vm1, %v962_v16  ;;  %v941_v19 = vrot.slane %v939_v8, 7  ;;  %v982_v20 = vshrl.u32 %v7026_v11, 16  ;;  %v646_v22 = vadd.f32 %v7368_v52, %v8064_v45  ;;  %v638_v26 = vadd.f32 %v8064_v45, %v637_v12 }
 0x10a   : > { %1209 = vst [vmem:[#allocation2 + $0x68] sm:$0x1] %v1208_v17  ;;  %v985_v21 = vshll.u32 %v7026_v11, 16  ;;  %v965_v24 = vshrl.u32 %v7024_v18, 16  ;;  %v968_v25 = vshll.u32 %v7024_v18, 16  ;;  %v1344_v27 = vshrl.u32 %v1268_v13, 16  ;;  %v650_v1 = vpop.f32.mrf.mxu0 }
 0x10b   : > { %v944_v28 = vor.u32 %v942_v10, %v941_v19  ;;  %v946_v30 = vrot.slane %v941_v19, 4  ;;  %v984_v32 = vrot.slane %v982_v20, 7  ;;  %v716_v34 = vmax.f32 %v646_v22, 0.0  ;;  %v1221_v8 = vld [vmem:[#allocation2 + $0x80] sm:$0x1] }
 0x10c   : > { %v967_v35 = vrot.slane %v965_v24, 7  ;;  %v714_v36 = vmax.f32 %v638_v26, 0.0  ;;  %v1346_v38 = vrot.slane %v1344_v27, 4  ;;  %v1347_v40 = vshll.u32 %v1268_v13, 16  ;;  %v1214_v13 = vld [vmem:[#allocation2 + $0x74] sm:$0x1]  ;;  %v7372_v24 = vpop.f32.mrf.mxu0 }
 0x10d   : > { %v945_v42 = vsel %vm8096_vm14, %v937_v4, %v944_v28  ;;  %v1201_v44 = vsel %vm8102_vm15, %v946_v30, %v1200_v23  ;;  %v987_v46 = vor.u32 %v985_v21, %v984_v32  ;;  %v988_v47 = vrot.slane %v984_v32, 4  ;;  %v8186_v23 = vld [vmem:[#allocation2 + $0x1c] sm:$0xf]  ;;  %v8190_v30 = vld [vmem:[#allocation2 + $0x20] sm:$0x1] }
 0x10e   : > { %1199 = vst.msk [vmem:[#allocation2 + $0x58] sm:$0xf] %vm280_vm1, %v945_v42  ;;  %1202 = vst [vmem:[#allocation2 + $0x5c] sm:$0x1] %v1201_v44  ;;  %v970_v49 = vor.u32 %v968_v25, %v967_v35  ;;  %v971_v50 = vrot.slane %v967_v35, 4  ;;  %v7027_v51 = vpack.c.bf16 %v716_v34, %v716_v34  ;;  %v7025_v52 = vpack.c.bf16 %v714_v36, %v714_v36 }
 0x10f   : > { %v1218_v53 = vsel %vm8084_vm13, %v987_v46, %v1217_v33  ;;  %v1349_v55 = vrot.slane %v1347_v40, 5  ;;  %v1353_v56 = vshll.u32 %v8169_v37, 16  ;;  %v1357_v57 = vshrl.u32 %v8169_v37, 16 }
 0x110   : > { %1219 = vst [vmem:[#allocation2 + $0x78] sm:$0xf] %v1218_v53  ;;  %v1211_v58 = vsel %vm8084_vm13, %v970_v49, %v1210_v48  ;;  %v990_v59 = vshrl.u32 %v7027_v51, 16  ;;  %v993_v61 = vshll.u32 %v7027_v51, 16  ;;  %v973_v63 = vshrl.u32 %v7025_v52, 16  ;;  %v653_v48 = vpop.f32.mrf.mxu0  ;;  %v8210_v49 = vld [vmem:[%s10690_s3 + $0x20] sm:$0xff]  }
 0x111   : > { %1212 = vst [vmem:[#allocation2 + $0x6c] sm:$0xf] %v1211_v58  ;;  %v976_v3 = vshll.u32 %v7025_v52, 16  ;;  %v1350_v4 = vor.u32 %v1349_v55, %v1346_v38  ;;  %v1355_v5 = vrot.slane %v1353_v56, 5  ;;  %v1359_v6 = vrot.slane %v1357_v57, 4 }
 0x112   : > { %v992_v7 = vrot.slane %v990_v59, 7  ;;  %v975_v10 = vrot.slane %v973_v63, 7  ;;  %v1363_v11 = vshll.u32 %v8178_v54, 16  ;;  %v659_v12 = vadd.f32 %v7371_v41, %v8064_v45  ;;  %v1272_v55 = vld [vmem:[#allocation2 + $0x24] sm:$0xf] }
 0x113   : > { %v1351_v14 = vrot.slane %v1350_v4, 4  ;;  %v1360_v16 = vor.u32 %v1359_v6, %v1355_v5  ;;  %v1368_v17 = vshrl.u32 %v1270_v0, 16  ;;  %v1371_v18 = vshll.u32 %v1270_v0, 16  ;;  %v1231_v4 = vld [vmem:[#allocation2 + $0x90] sm:$0xf] }
 0x114   : > { %v995_v19 = vor.u32 %v993_v61, %v992_v7  ;;  %v997_v20 = vrot.slane %v992_v7, 4  ;;  %v978_v21 = vor.u32 %v976_v3, %v975_v10  ;;  %v980_v22 = vrot.slane %v975_v10, 4 }
 0x115   : > { %v1356_v25 = vsel %vm8043_vm5, %v1351_v14, %v1355_v5  ;;  %v1361_v26 = vrot.slane %v1360_v16, 4  ;;  %v1365_v27 = vrot.slane %v1363_v11, 5  ;;  %v719_v28 = vmax.f32 %v659_v12, 0.0 }
 0x116   : > { %v996_v32 = vsel %vm8096_vm14, %v988_v47, %v995_v19  ;;  %v1222_v33 = vsel %vm8102_vm15, %v997_v20, %v1221_v8  ;;  %v979_v34 = vsel %vm8096_vm14, %v971_v50, %v978_v21  ;;  %v1215_v35 = vsel %vm8102_vm15, %v980_v22, %v1214_v13 }
 0x117   : > { %1220 = vst.msk [vmem:[#allocation2 + $0x7c] sm:$0xf] %vm280_vm1, %v996_v32  ;;  %1223 = vst [vmem:[#allocation2 + $0x80] sm:$0x1] %v1222_v33  ;;  %v1366_v36 = vsel %vm8043_vm5, %v1361_v26, %v1365_v27  ;;  %v7030_v38 = vpack.c.bf16 %v719_v28, %v719_v28  ;;  %v1370_v40 = vrot.slane %v1368_v17, 4  ;;  %v1373_v41 = vrot.slane %v1371_v18, 5 }
 0x118   : > { %1213 = vst.msk [vmem:[#allocation2 + $0x70] sm:$0xf] %vm280_vm1, %v979_v34  ;;  %1216 = vst [vmem:[#allocation2 + $0x74] sm:$0x1] %v1215_v35  ;;  %v6595_v42 = vcombine.low %v1356_v25, %v1366_v36  ;;  %v1377_v44 = vshll.u32 %v8186_v23, 16  ;;  %v1381_v46 = vshrl.u32 %v8186_v23, 16  ;;  %v651_v53 = vadd.f32 %v8064_v45, %v650_v1 }
 0x119   : > { %v1387_v47 = vshll.u32 %v8190_v30, 16  ;;  %v1016_v50 = vshrl.u32 %v7030_v38, 16  ;;  %v1019_v51 = vshll.u32 %v7030_v38, 16  ;;  %v1374_v52 = vor.u32 %v1373_v41, %v1370_v40  ;;  %v8220_v17 = vld [vmem:[#allocation2 + $0x28] sm:$0xf] }
 0x11a   : > { %7384 = vmatmul.mubr.msk.bf16.vlgmr.msra.gmra.mxu0 %vm1760_vm6, %v6595_v42  ;;  %v1379_v56 = vrot.slane %v1377_v44, 5  ;;  %v1383_v57 = vrot.slane %v1381_v46, 4  ;;  %v662_v59 = vadd.f32 %v7372_v24, %v8064_v45  ;;  %v717_v0 = vmax.f32 %v651_v53, 0.0  ;;  %v1224_v33 = vld [vmem:[#allocation2 + $0x84] sm:$0xf] }
 0x11b   : > { %v1389_v58 = vrot.slane %v1387_v47, 5  ;;  %v1018_v61 = vrot.slane %v1016_v50, 7  ;;  %v1375_v63 = vrot.slane %v1374_v52, 4  ;;  %v654_v3 = vadd.f32 %v8064_v45, %v653_v48  ;;  %7450 = vmatpush3.bf16.msra.mxu0 %v8055_v43  ;;  %v7375_v43 = vpop.f32.mrf.mxu0  ;;  %v1235_v34 = vld [vmem:[#allocation2 + $0x98] sm:$0x1] }
 0x11c   : > { %v1384_v5 = vor.u32 %v1383_v57, %v1379_v56  ;;  %v720_v6 = vmax.f32 %v662_v59, 0.0  ;;  %v1392_v7 = vshrl.u32 %v1272_v55, 16  ;;  %v1395_v1 = vshll.u32 %v1272_v55, 16  ;;  %7517 = vmatprep.subr.bf16.mxu0 %v8210_v49  ;;  %v8227_v42 = vld [vmem:[#allocation2 + $0x2c] sm:$0x1] }
 0x11d   : > { %v1021_v8 = vor.u32 %v1019_v51, %v1018_v61  ;;  %v1022_v10 = vrot.slane %v1018_v61, 4  ;;  %v1380_v11 = vsel %vm8043_vm5, %v1375_v63, %v1379_v56  ;;  %v7028_v12 = vpack.c.bf16 %v717_v0, %v717_v0  ;;  %v666_v46 = vpop.f32.mrf.mxu0  ;;  %v1228_v50 = vld [vmem:[#allocation2 + $0x8c] sm:$0x1]  ;;  %v1274_v53 = vld [vmem:[#allocation2 + $0x30] sm:$0xf] }
 0x11e   : > { %v1385_v13 = vrot.slane %v1384_v5, 4  ;;  %v7031_v14 = vpack.c.bf16 %v720_v6, %v720_v6  ;;  %v718_v16 = vmax.f32 %v654_v3, 0.0  ;;  %v1394_v18 = vrot.slane %v1392_v7, 4  ;;  %v8231_v59 = vld [vmem:[#allocation2 + $0x34] sm:$0xf] }
 0x11f   : > { %v1232_v19 = vsel %vm8084_vm13, %v1021_v8, %v1231_v4  ;;  %v999_v20 = vshrl.u32 %v7028_v12, 16  ;;  %v1002_v21 = vshll.u32 %v7028_v12, 16  ;;  %v1397_v22 = vrot.slane %v1395_v1, 5  ;;  %v7376_v1 = vpop.f32.mrf.mxu0  ;;  %v8365_v29 = vld [vmem:[#allocation2 + $0x6c] sm:$0xf] }
 0x120   : > { %1233 = vst [vmem:[#allocation2 + $0x90] sm:$0xf] %v1232_v19  ;;  %v1390_v24 = vsel %vm8043_vm5, %v1385_v13, %v1389_v58  ;;  %v1024_v25 = vshrl.u32 %v7031_v14, 16  ;;  %v1027_v26 = vshll.u32 %v7031_v14, 16  ;;  %v7029_v27 = vpack.c.bf16 %v718_v16, %v718_v16  ;;  %v8244_v13 = vld [vmem:[#allocation2 + $0x38] sm:$0x1] }
 0x121   : > { %v6596_v28 = vcombine.low %v1380_v11, %v1390_v24  ;;  %v1001_v32 = vrot.slane %v999_v20, 7  ;;  %v1398_v35 = vor.u32 %v1397_v22, %v1394_v18  ;;  %v1401_v36 = vshll.u32 %v8220_v17, 16 }
 0x122   : > { %v1026_v38 = vrot.slane %v1024_v25, 7  ;;  %v1007_v40 = vshrl.u32 %v7029_v27, 16  ;;  %v1010_v41 = vshll.u32 %v7029_v27, 16  ;;  %v1405_v44 = vshrl.u32 %v8220_v17, 16 }
 0x123   : > { %7387 = vmatprep.mubr.msk.bf16.mxu0 %vm1760_vm6, %v6596_v28  ;;  %v1004_v47 = vor.u32 %v1002_v21, %v1001_v32  ;;  %v1005_v48 = vrot.slane %v1001_v32, 4  ;;  %v1399_v51 = vrot.slane %v1398_v35, 4  ;;  %v1403_v52 = vrot.slane %v1401_v36, 5  ;;  %v1278_v28 = vld [vmem:[#allocation2 + $0x48] sm:$0xf]  ;;  %v669_v32 = vpop.f32.mrf.mxu0 }
 0x124   : > { %v1029_v55 = vor.u32 %v1027_v26, %v1026_v38  ;;  %v1031_v56 = vrot.slane %v1026_v38, 4  ;;  %v1009_v57 = vrot.slane %v1007_v40, 7  ;;  %v1407_v58 = vrot.slane %v1405_v44, 4  ;;  %v8257_v38 = vld [vmem:[#allocation2 + $0x4c] sm:$0xf] }
 0x125   : > { %v1225_v61 = vsel %vm8084_vm13, %v1004_v47, %v1224_v33  ;;  %v1404_v63 = vsel %vm8043_vm5, %v1399_v51, %v1403_v52  ;;  %v1411_v0 = vshll.u32 %v8227_v42, 16  ;;  %v675_v3 = vadd.f32 %v7375_v43, %v8064_v45 }
 0x126   : > { %1226 = vst [vmem:[#allocation2 + $0x84] sm:$0xf] %v1225_v61  ;;  %v1030_v4 = vsel %vm8096_vm14, %v1022_v10, %v1029_v55  ;;  %v1236_v5 = vsel %vm8102_vm15, %v1031_v56, %v1235_v34  ;;  %v1012_v6 = vor.u32 %v1010_v41, %v1009_v57  ;;  %v1014_v7 = vrot.slane %v1009_v57, 4 }
 0x127   : > { %1234 = vst.msk [vmem:[#allocation2 + $0x94] sm:$0xf] %vm280_vm1, %v1030_v4  ;;  %1237 = vst [vmem:[#allocation2 + $0x98] sm:$0x1] %v1236_v5  ;;  %v1408_v8 = vor.u32 %v1407_v58, %v1403_v52  ;;  %v1413_v11 = vrot.slane %v1411_v0, 5  ;;  %v723_v12 = vmax.f32 %v675_v3, 0.0  ;;  %v667_v27 = vadd.f32 %v8064_v45, %v666_v46  ;;  %v8264_v58 = vpop.f32.mrf.mxu0 }
 0x128   : > { %v1416_v14 = vshrl.u32 %v1274_v53, 16  ;;  %v1013_v16 = vsel %vm8096_vm14, %v1005_v48, %v1012_v6  ;;  %v1229_v10 = vsel %vm8102_vm15, %v1014_v7, %v1228_v50  ;;  %v1419_v18 = vshll.u32 %v1274_v53, 16  ;;  %v1245_v52 = vld [vmem:[#allocation2 + $0xa8] sm:$0xf]  ;;  %v8270_v7 = vld [vmem:[#allocation2 + $0x50] sm:$0x1] }
 0x129   : > { %v1425_v43 = vshll.u32 %v8231_v59, 16  ;;  %1227 = vst.msk [vmem:[#allocation2 + $0x88] sm:$0xf] %vm280_vm1, %v1013_v16  ;;  %1230 = vst [vmem:[#allocation2 + $0x8c] sm:$0x1] %v1229_v10  ;;  %v1409_v19 = vrot.slane %v1408_v8, 4  ;;  %v7034_v20 = vpack.c.bf16 %v723_v12, %v723_v12  ;;  %v678_v51 = vadd.f32 %v7376_v1, %v8064_v45 }
 0x12a   : > { %v1418_v21 = vrot.slane %v1416_v14, 4  ;;  %v1429_v22 = vshrl.u32 %v8231_v59, 16  ;;  %v1421_v24 = vrot.slane %v1419_v18, 5  ;;  %v1435_v26 = vshll.u32 %v8244_v13, 16  ;;  %v1238_v18 = vld [vmem:[#allocation2 + $0x9c] sm:$0xf] }
 0x12b   : > { %v1427_v25 = vrot.slane %v1425_v43, 5  ;;  %v1414_v33 = vsel %vm8043_vm5, %v1409_v19, %v1413_v11  ;;  %v1050_v34 = vshrl.u32 %v7034_v20, 16  ;;  %v1053_v35 = vshll.u32 %v7034_v20, 16  ;;  %v682_v20 = vpop.f32.mrf.mxu0 }
 0x12c   : > { %v1431_v36 = vrot.slane %v1429_v22, 4  ;;  %v6597_v40 = vcombine.low %v1404_v63, %v1414_v33  ;;  %v1422_v41 = vor.u32 %v1421_v24, %v1418_v21  ;;  %v1437_v44 = vrot.slane %v1435_v26, 5  ;;  %v8280_v26 = vld [vmem:[#allocation2 + $0x3c] sm:$0xf]  ;;  %v1249_v33 = vld [vmem:[#allocation2 + $0xb0] sm:$0x1] }
 0x12d   : > { %v721_v47 = vmax.f32 %v667_v27, 0.0  ;;  %v8259_v48 = vrot.slane %v1050_v34, 7  ;;  %v1464_v46 = vshrl.u32 %v1278_v28, 16  ;;  %v1467_v56 = vshll.u32 %v1278_v28, 16 }
 0x12e   : > { %v1432_v50 = vor.u32 %v1431_v36, %v1427_v25  ;;  %7388 = vmatmul.mubr.msk.bf16.gmra.mxu0 %vm1760_vm6, %v6597_v40  ;;  %v1423_v53 = vrot.slane %v1422_v41, 4  ;;  %v1473_v57 = vshll.u32 %v8257_v38, 16  ;;  %v724_v3 = vmax.f32 %v678_v51, 0.0  ;;  %v8291_v51 = vld [vmem:[#allocation2 + $0x44] sm:$0x1] }
 0x12f   : > { %v7032_v55 = vpack.c.bf16 %v721_v47, %v721_v47  ;;  %v1055_v61 = vor.u32 %v1053_v35, %v8259_v48  ;;  %v1056_v63 = vrot.slane %v8259_v48, 4  ;;  %v1466_v1 = vrot.slane %v1464_v46, 4  ;;  %v8287_v47 = vld [vmem:[#allocation2 + $0x40] sm:$0xf] }
 0x130   : > { %v1433_v0 = vrot.slane %v1432_v50, 4  ;;  %v1428_v4 = vsel %vm8043_vm5, %v1423_v53, %v1427_v25  ;;  %v7035_v12 = vpack.c.bf16 %v724_v3, %v724_v3  ;;  %v1469_v14 = vrot.slane %v1467_v56, 5  ;;  %v7380_v53 = vpop.f32.mrf.mxu0 }
 0x131   : > { %v1033_v5 = vshrl.u32 %v7032_v55, 16  ;;  %v1036_v6 = vshll.u32 %v7032_v55, 16  ;;  %v1246_v8 = vsel %vm8084_vm13, %v1055_v61, %v1245_v52  ;;  %v1475_v43 = vrot.slane %v1473_v57, 5 }
 0x132   : > { %v1438_v11 = vsel %vm8043_vm5, %v1433_v0, %v1437_v44  ;;  %1247 = vst [vmem:[#allocation2 + $0xa8] sm:$0xf] %v1246_v8  ;;  %v1477_v19 = vshrl.u32 %v8257_v38, 16  ;;  %v1058_v21 = vshrl.u32 %v7035_v12, 16  ;;  %v1061_v22 = vshll.u32 %v7035_v12, 16 }
 0x133   : > { %v6598_v16 = vcombine.low %v1428_v4, %v1438_v11  ;;  %v8276_v10 = vrot.slane %v1033_v5, 7  ;;  %v1470_v24 = vor.u32 %v1469_v14, %v1466_v1  ;;  %v1483_v25 = vshll.u32 %v8270_v7, 16 }
 0x134   : > { %v1479_v34 = vrot.slane %v1477_v19, 4  ;;  %v2363_v35 = vrot.slane %v8270_v7, 5  ;;  %v1060_v36 = vrot.slane %v1058_v21, 7  ;;  %v670_v44 = vadd.f32 %v8064_v45, %v669_v32 }
 0x135   : > { %7391 = vmatprep.mubr.msk.bf16.mxu0 %vm1760_vm6, %v6598_v16  ;;  %v1038_v27 = vor.u32 %v1036_v6, %v8276_v10  ;;  %v1039_v28 = vrot.slane %v8276_v10, 4  ;;  %v1471_v40 = vrot.slane %v1470_v24, 4  ;;  %v1485_v41 = vrot.slane %v1483_v25, 5  ;;  %v685_v16 = vpop.f32.mrf.mxu0  ;;  %v7803_v25 = vld [vmem:[%s10689_s2] ss:$0 sm:$0xff] }
 0x136   : > { %v1480_v50 = vor.u32 %v1479_v34, %v1475_v43  ;;  %v1440_v46 = vshrl.u32 %v8280_v26, 16  ;;  %v1443_v52 = vshll.u32 %v8280_v26, 16  ;;  %v1063_v55 = vor.u32 %v1061_v22, %v1060_v36  ;;  %v1259_v10 = vld [vmem:[#allocation2 + $0xc0] sm:$0xf] }
 0x137   : > { %v1239_v48 = vsel %vm8084_vm13, %v1038_v27, %v1238_v18  ;;  %v1065_v56 = vrot.slane %v1060_v36, 4  ;;  %v1476_v57 = vsel %vm8043_vm5, %v1471_v40, %v1475_v43  ;;  %v722_v45 = vmax.f32 %v670_v44, 0.0  ;;  %v8307_v18 = vld [vmem:[#allocation2 + $0x54] sm:$0xf]  ;;  %v1242_v44 = vld [vmem:[#allocation2 + $0xa4] sm:$0x1] }
 0x138   : > { %1240 = vst [vmem:[#allocation2 + $0x9c] sm:$0xf] %v1239_v48  ;;  %v1481_v32 = vrot.slane %v1480_v50, 4  ;;  %v1442_v61 = vrot.slane %v1440_v46, 4  ;;  %v1445_v0 = vrot.slane %v1443_v52, 5  ;;  %v1449_v3 = vshll.u32 %v8287_v47, 16 }
 0x139   : > { %v1064_v4 = vsel %vm8096_vm14, %v1056_v63, %v1063_v55  ;;  %v1250_v5 = vsel %vm8102_vm15, %v1065_v56, %v1249_v33  ;;  %v7033_v6 = vpack.c.bf16 %v722_v45, %v722_v45  ;;  %v1453_v1 = vshrl.u32 %v8287_v47, 16 }
 0x13a   : > { %1248 = vst.msk [vmem:[#allocation2 + $0xac] sm:$0xf] %vm280_vm1, %v1064_v4  ;;  %1251 = vst [vmem:[#allocation2 + $0xb0] sm:$0x1] %v1250_v5  ;;  %v1486_v8 = vsel %vm8043_vm5, %v1481_v32, %v1485_v41  ;;  %v1446_v11 = vor.u32 %v1445_v0, %v1442_v61  ;;  %v1451_v12 = vrot.slane %v1449_v3, 5  ;;  %v1459_v14 = vshll.u32 %v8291_v51, 16 }
 0x13b   : > { %v6600_v63 = vcombine.low %v1476_v57, %v1486_v8  ;;  %v1041_v43 = vshrl.u32 %v7033_v6, 16  ;;  %v1044_v19 = vshll.u32 %v7033_v6, 16  ;;  %v1455_v21 = vrot.slane %v1453_v1, 4  ;;  %v8327_v5 = vld [vmem:[#allocation2 + $0x58] sm:$0xf] }
 0x13c   : > { %v1447_v22 = vrot.slane %v1446_v11, 4  ;;  %v1461_v24 = vrot.slane %v1459_v14, 5  ;;  %v691_v27 = vadd.f32 %v7803_v25, %v8264_v58  ;;  %v683_v33 = vadd.f32 %v7803_v25, %v682_v20  ;;  %v1252_v14 = vld [vmem:[#allocation2 + $0xb4] sm:$0xf] }
 0x13d   : > { %7395 = vmatprep.mubr.msk.bf16.mxu1 %vm1760_vm6, %v6600_v63  ;;  %v1043_v34 = vrot.slane %v1041_v43, 7  ;;  %v1456_v36 = vor.u32 %v1455_v21, %v1451_v12  ;;  %v694_v40 = vadd.f32 %v7803_v25, %v7380_v53  ;;  %v686_v41 = vadd.f32 %v7803_v25, %v685_v16  ;;  %v1263_v21 = vld [vmem:[#allocation2 + $0xc8] sm:$0x1] }
 0x13e   : > { %v1452_v48 = vsel %vm8043_vm5, %v1447_v22, %v1451_v12  ;;  %v727_v50 = vmax.f32 %v691_v27, 0.0  ;;  %v725_v46 = vmax.f32 %v683_v33, 0.0  ;;  %v1488_v52 = vshrl.u32 %v8307_v18, 16 }
 0x13f   : > { %v1046_v55 = vor.u32 %v1044_v19, %v1043_v34  ;;  %v1048_v56 = vrot.slane %v1043_v34, 4  ;;  %v1457_v57 = vrot.slane %v1456_v36, 4  ;;  %v728_v45 = vmax.f32 %v694_v40, 0.0  ;;  %v8337_v34 = vld [vmem:[#allocation2 + $0x5c] sm:$0x1] }
 0x140   : > { %v7038_v58 = vpack.c.bf16 %v727_v50, %v727_v50  ;;  %v7036_v20 = vpack.c.bf16 %v725_v46, %v725_v46  ;;  %v726_v32 = vmax.f32 %v686_v41, 0.0  ;;  %v8317_v61 = vrot.slane %v1488_v52, 4  ;;  %v2266_v40 = vld [vmem:[#allocation2 + $0xc] sm:$0xe]  ;;  %v1256_v46 = vld [vmem:[#allocation2 + $0xbc] sm:$0x1] }
 0x141   : > { %v1047_v53 = vsel %vm8096_vm14, %v1039_v28, %v1046_v55  ;;  %v1243_v0 = vsel %vm8102_vm15, %v1048_v56, %v1242_v44  ;;  %v1462_v3 = vsel %vm8043_vm5, %v1457_v57, %v1461_v24  ;;  %v7039_v4 = vpack.c.bf16 %v728_v45, %v728_v45 }
 0x142   : > { %1241 = vst.msk [vmem:[#allocation2 + $0xa0] sm:$0xf] %vm280_vm1, %v1047_v53  ;;  %1244 = vst [vmem:[#allocation2 + $0xa4] sm:$0x1] %v1243_v0  ;;  %v6599_v6 = vcombine.low %v1452_v48, %v1462_v3  ;;  %v1084_v1 = vshrl.u32 %v7038_v58, 16  ;;  %v1087_v8 = vshll.u32 %v7038_v58, 16  ;;  %v7037_v63 = vpack.c.bf16 %v726_v32, %v726_v32 }
 0x143   : > { %v1067_v11 = vshrl.u32 %v7036_v20, 16  ;;  %v1070_v12 = vshll.u32 %v7036_v20, 16  ;;  %v1092_v28 = vshrl.u32 %v7039_v4, 16  ;;  %v1095_v16 = vshll.u32 %v7039_v4, 16  ;;  %v8348_v0 = vld [vmem:[#allocation2 + $0x60] sm:$0xf] }
 0x144   : > { %7392 = vmatmul.mubr.msk.bf16.gmra.mxu0 %vm1760_vm6, %v6599_v6  ;;  %v1086_v43 = vrot.slane %v1084_v1, 7  ;;  %v1491_v22 = vshll.u32 %v8307_v18, 16  ;;  %v1497_v24 = vshll.u32 %v8327_v5, 16  ;;  %v1075_v27 = vshrl.u32 %v7037_v63, 16  ;;  %v8353_v1 = vld [vmem:[#allocation2 + $0x64] sm:$0xf] }
 0x145   : > { %v1069_v19 = vrot.slane %v1067_v11, 7  ;;  %v1094_v25 = vrot.slane %v1092_v28, 7  ;;  %v1078_v33 = vshll.u32 %v7037_v63, 16  ;;  %7451 = vmatprep.mubr.msk.bf16.mxu0 %vm1760_vm6, %v6678_v15  ;;  %v1501_v36 = vshrl.u32 %v8327_v5, 16  ;;  %v2267_v28 = vld [vmem:[#allocation2 + $0x18] sm:$0xe] }
 0x146   : > { %v1089_v41 = vor.u32 %v1087_v8, %v1086_v43  ;;  %v1090_v44 = vrot.slane %v1086_v43, 4  ;;  %v1077_v56 = vrot.slane %v1075_v27, 7  ;;  %v1493_v57 = vrot.slane %v1491_v22, 5  ;;  %v8376_v22 = vld [vmem:[%s10690_s3 + $0x18] sm:$0xff]  }
 0x147   : > { %v1072_v48 = vor.u32 %v1070_v12, %v1069_v19  ;;  %v1073_v50 = vrot.slane %v1069_v19, 4  ;;  %v1097_v52 = vor.u32 %v1095_v16, %v1094_v25  ;;  %v1099_v55 = vrot.slane %v1094_v25, 4 }
 0x148   : > { %v1260_v45 = vsel %vm8084_vm13, %v1089_v41, %v1259_v10  ;;  %v1499_v2 = vrot.slane %v1497_v24, 5  ;;  %v1503_v15 = vrot.slane %v1501_v36, 4  ;;  %v1080_v32 = vor.u32 %v1078_v33, %v1077_v56 }
 0x149   : > { %v1253_v62 = vsel %vm8084_vm13, %v1072_v48, %v1252_v14  ;;  %1261 = vst [vmem:[#allocation2 + $0xc0] sm:$0xf] %v1260_v45  ;;  %v1098_v58 = vsel %vm8096_vm14, %v1090_v44, %v1097_v52  ;;  %v1264_v20 = vsel %vm8102_vm15, %v1099_v55, %v1263_v21  ;;  %v1082_v53 = vrot.slane %v1077_v56, 4  ;;  %v8361_v14 = vld [vmem:[#allocation2 + $0x68] sm:$0x1]  ;;  %v8389_v55 = vld [vmem:[%s10690_s3 + $0x30] sm:$0xff]  }
 0x14a   : > { %1254 = vst [vmem:[#allocation2 + $0xb4] sm:$0xf] %v1253_v62  ;;  %1262 = vst.msk [vmem:[#allocation2 + $0xc4] sm:$0xf] %vm280_vm1, %v1098_v58  ;;  %v1494_v9 = vor.u32 %v1493_v57, %v8317_v61  ;;  %v1504_v3 = vor.u32 %v1503_v15, %v1499_v2  ;;  %v1507_v4 = vshll.u32 %v8337_v34, 16  ;;  %v6661_v6 = vrot.slane %v2266_v40, 9 }
 0x14b   : > { %1265 = vst [vmem:[#allocation2 + $0xc8] sm:$0x1] %v1264_v20  ;;  %v1081_v8 = vsel %vm8096_vm14, %v1073_v50, %v1080_v32  ;;  %v1257_v11 = vsel %vm8102_vm15, %v1082_v53, %v1256_v46  ;;  %v2325_v10 = vrot.slane %v8169_v37, 5  ;;  %v2328_v12 = vrot.slane %v8178_v54, 5  ;;  %v8371_v21 = vld [vmem:[#allocation2 + $0x70] sm:$0xf] }
 0x14c   : > { %1255 = vst.msk [vmem:[#allocation2 + $0xb8] sm:$0xf] %vm280_vm1, %v1081_v8  ;;  %1258 = vst [vmem:[#allocation2 + $0xbc] sm:$0x1] %v1257_v11  ;;  %v1495_v61 = vrot.slane %v1494_v9, 4  ;;  %v1505_v16 = vrot.slane %v1504_v3, 4 }
 0x14d   : > { %v1509_v63 = vrot.slane %v1507_v4, 5  ;;  %v1512_v43 = vshrl.u32 %v8348_v0, 16  ;;  %v2326_v31 = vsel %vm8069_vm9, %v6661_v6, %v2325_v10  ;;  %v2327_v19 = vrot.slane %v2325_v10, 4  ;;  %v7804_v15 = vld [vmem:[%s10690_s3] sm:$0xff]   ;;  %v8399_v32 = vld [vmem:[#allocation2 + $0x74] sm:$0x1] }
 0x14e   : > { %v1515_v37 = vshll.u32 %v8348_v0, 16  ;;  %v1521_v54 = vshll.u32 %v8353_v1, 16  ;;  %v1500_v24 = vsel %vm8043_vm5, %v1495_v61, %v1499_v2  ;;  %v1525_v33 = vshrl.u32 %v8353_v1, 16  ;;  %v2268_v2 = vld [vmem:[#allocation2 + $0x24] sm:$0xe] }
 0x14f   : > { %v1510_v25 = vsel %vm8043_vm5, %v1505_v16, %v1509_v63  ;;  %v1514_v27 = vrot.slane %v1512_v43, 4  ;;  %v2329_v40 = vsel %vm8069_vm9, %v2327_v19, %v2328_v12  ;;  %v1531_v46 = vshll.u32 %v8361_v14, 16  ;;  %v8414_v63 = vld [vmem:[#allocation2 + $0x78] sm:$0xf] }
 0x150   : > { %v6601_v36 = vcombine.low %v1500_v24, %v1510_v25  ;;  %v1517_v41 = vrot.slane %v1515_v37, 5  ;;  %v1523_v44 = vrot.slane %v1521_v54, 5  ;;  %v6679_v48 = vcombine.low %v2326_v31, %v2329_v40  ;;  %v8418_v37 = vld [vmem:[#allocation2 + $0x7c] sm:$0xf] }
 0x151   : > { %v1527_v50 = vrot.slane %v1525_v33, 4  ;;  %v6662_v52 = vrot.slane %v2267_v28, 9  ;;  %v2332_v57 = vrot.slane %v8186_v23, 5  ;;  %v2335_v45 = vrot.slane %v8190_v30, 5  ;;  %v8422_v33 = vld [vmem:[#allocation2 + $0x80] sm:$0x1] }
 0x152   : > { %7396 = vmatmul.mubr.msk.bf16.vlgmr.msra.gmra.mxu1 %vm1760_vm6, %v6601_v36  ;;  %v1518_v56 = vor.u32 %v1517_v41, %v1514_v27  ;;  %v1536_v62 = vshrl.u32 %v8365_v29, 16  ;;  %7452 = vmatmul.mubr.msk.bf16.vlgmr.msra.gmra.mxu0 %vm1760_vm6, %v6679_v48  ;;  %v1533_v20 = vrot.slane %v1531_v46, 5  ;;  %v1539_v53 = vshll.u32 %v8365_v29, 16  ;;  %v2269_v36 = vld [vmem:[#allocation2 + $0x30] sm:$0xe] }
 0x153   : > { %7416 = vmatpush3.bf16.msra.mxu1 %v7804_v15  ;;  %v1528_v58 = vor.u32 %v1527_v50, %v1523_v44  ;;  %v1545_v23 = vshll.u32 %v8371_v21, 16  ;;  %v2333_v30 = vsel %vm8069_vm9, %v6662_v52, %v2332_v57  ;;  %v2334_v3 = vrot.slane %v2332_v57, 4  ;;  %7518 = vmatpush3.bf16.msra.mxu0 %v8210_v49  ;;  %v8432_v52 = vld [vmem:[#allocation2 + $0x84] sm:$0xf] }
 0x154   : > { %v1519_v9 = vrot.slane %v1518_v56, 4  ;;  %v1538_v4 = vrot.slane %v1536_v62, 4  ;;  %7483 = vmatprep.subr.bf16.mxu1 %v8376_v22  ;;  %v1541_v8 = vrot.slane %v1539_v53, 5  ;;  %v1549_v10 = vshrl.u32 %v8371_v21, 16  ;;  %7585 = vmatprep.subr.bf16.mxu0 %v8389_v55 }
 0x155   : > { %v1529_v6 = vrot.slane %v1528_v58, 4  ;;  %v1547_v11 = vrot.slane %v1545_v23, 5  ;;  %v2336_v28 = vsel %vm8069_vm9, %v2334_v3, %v2335_v45  ;;  %v1555_v61 = vshll.u32 %v8399_v32, 16 }
 0x156   : > { %v1524_v12 = vsel %vm8043_vm5, %v1519_v9, %v1523_v44  ;;  %v6663_v16 = vrot.slane %v2268_v2, 9  ;;  %v6680_v43 = vcombine.low %v2333_v30, %v2336_v28  ;;  %v1542_v31 = vor.u32 %v1541_v8, %v1538_v4  ;;  %v8436_v2 = vld [vmem:[#allocation2 + $0x88] sm:$0xf]  ;;  %v8443_v4 = vld [vmem:[#allocation2 + $0x8c] sm:$0x1] }
 0x157   : > { %v1534_v49 = vsel %vm8043_vm5, %v1529_v6, %v1533_v20  ;;  %v1551_v19 = vrot.slane %v1549_v10, 4  ;;  %v1557_v24 = vrot.slane %v1555_v61, 5  ;;  %v2339_v25 = vrot.slane %v8220_v17, 5 }
 0x158   : > { %v6602_v54 = vcombine.low %v1524_v12, %v1534_v49  ;;  %v2342_v27 = vrot.slane %v8227_v42, 5  ;;  %7455 = vmatprep.mubr.msk.bf16.mxu0 %vm1760_vm6, %v6680_v43  ;;  %v1543_v40 = vrot.slane %v1542_v31, 4  ;;  %v1560_v44 = vshrl.u32 %v8414_v63, 16  ;;  %v2270_v49 = vld [vmem:[#allocation2 + $0x3c] sm:$0xe] }
 0x159   : > { %v1552_v41 = vor.u32 %v1551_v19, %v1547_v11  ;;  %v1563_v48 = vshll.u32 %v8414_v63, 16  ;;  %v2340_v50 = vsel %vm8069_vm9, %v6663_v16, %v2339_v25  ;;  %v2341_v46 = vrot.slane %v2339_v25, 4 }
 0x15a   : > { %7399 = vmatprep.mubr.msk.bf16.mxu1 %vm1760_vm6, %v6602_v54  ;;  %v1569_v17 = vshll.u32 %v8418_v37, 16  ;;  %v1573_v42 = vshrl.u32 %v8418_v37, 16  ;;  %v1548_v56 = vsel %vm8043_vm5, %v1543_v40, %v1547_v11  ;;  %v1562_v45 = vrot.slane %v1560_v44, 4 }
 0x15b   : > { %v1553_v57 = vrot.slane %v1552_v41, 4  ;;  %v1565_v62 = vrot.slane %v1563_v48, 5  ;;  %v2343_v15 = vsel %vm8069_vm9, %v2341_v46, %v2342_v27  ;;  %v1579_v53 = vshll.u32 %v8422_v33, 16  ;;  %v8464_v48 = vld [vmem:[#allocation2 + $0x94] sm:$0xf] }
 0x15c   : > { %v1571_v58 = vrot.slane %v1569_v17, 5  ;;  %v1575_v20 = vrot.slane %v1573_v42, 4  ;;  %v6681_v9 = vcombine.low %v2340_v50, %v2343_v15  ;;  %v6664_v3 = vrot.slane %v2269_v36, 9  ;;  %v8468_v15 = vld [vmem:[#allocation2 + $0x98] sm:$0x1] }
 0x15d   : > { %v1558_v23 = vsel %vm8043_vm5, %v1553_v57, %v1557_v24  ;;  %v1566_v30 = vor.u32 %v1565_v62, %v1562_v45  ;;  %v1581_v11 = vrot.slane %v1579_v53, 5  ;;  %v2346_v10 = vrot.slane %v8231_v59, 5  ;;  %v8454_v59 = vld [vmem:[#allocation2 + $0x90] sm:$0xf] }
 0x15e   : > { %v6603_v6 = vcombine.low %v1548_v56, %v1558_v23  ;;  %v1576_v8 = vor.u32 %v1575_v20, %v1571_v58  ;;  %7456 = vmatmul.mubr.msk.bf16.gmra.mxu0 %vm1760_vm6, %v6681_v9  ;;  %v2349_v28 = vrot.slane %v8244_v13, 5  ;;  %v1584_v61 = vshrl.u32 %v8432_v52, 16 }
 0x15f   : > { %v1567_v12 = vrot.slane %v1566_v30, 4  ;;  %v1587_v16 = vshll.u32 %v8432_v52, 16  ;;  %v2347_v31 = vsel %vm8069_vm9, %v6664_v3, %v2346_v10  ;;  %v2348_v19 = vrot.slane %v2346_v10, 4 }
 0x160   : > { %7400 = vmatmul.mubr.msk.bf16.gmra.mxu1 %vm1760_vm6, %v6603_v6  ;;  %v1577_v43 = vrot.slane %v1576_v8, 4  ;;  %v1593_v54 = vshll.u32 %v8436_v2, 16  ;;  %v1586_v13 = vrot.slane %v1584_v61, 4  ;;  %v1597_v27 = vshrl.u32 %v8436_v2, 16  ;;  %v8478_v8 = vld [vmem:[#allocation2 + $0x9c] sm:$0xf] }
 0x161   : > { %v1572_v24 = vsel %vm8043_vm5, %v1567_v12, %v1571_v58  ;;  %v1589_v25 = vrot.slane %v1587_v16, 5  ;;  %v2350_v40 = vsel %vm8069_vm9, %v2348_v19, %v2349_v28  ;;  %v1603_v44 = vshll.u32 %v8443_v4, 16  ;;  %v2271_v58 = vld [vmem:[#allocation2 + $0x48] sm:$0xe]  ;;  %v8482_v61 = vld [vmem:[#allocation2 + $0xa0] sm:$0xf] }
 0x162   : > { %v1582_v36 = vsel %vm8043_vm5, %v1577_v43, %v1581_v11  ;;  %v1595_v41 = vrot.slane %v1593_v54, 5  ;;  %v6682_v46 = vcombine.low %v2347_v31, %v2350_v40  ;;  %v1599_v42 = vrot.slane %v1597_v27, 4 }
 0x163   : > { %v6604_v50 = vcombine.low %v1572_v24, %v1582_v36  ;;  %v1590_v17 = vor.u32 %v1589_v25, %v1586_v13  ;;  %v1605_v56 = vrot.slane %v1603_v44, 5  ;;  %v6665_v57 = vrot.slane %v2270_v49, 9 }
 0x164   : > { %v2353_v45 = vrot.slane %v8287_v47, 5  ;;  %v2356_v62 = vrot.slane %v8291_v51, 5  ;;  %7459 = vmatprep.mubr.msk.bf16.mxu0 %vm1760_vm6, %v6682_v46  ;;  %v1600_v53 = vor.u32 %v1599_v42, %v1595_v41  ;;  %v1608_v23 = vshrl.u32 %v8454_v59, 16 }
 0x165   : > { %7403 = vmatprep.mubr.msk.bf16.mxu1 %vm1760_vm6, %v6604_v50  ;;  %v1591_v20 = vrot.slane %v1590_v17, 4  ;;  %v1611_v9 = vshll.u32 %v8454_v59, 16  ;;  %v1617_v6 = vshll.u32 %v8464_v48, 16  ;;  %v1621_v51 = vshrl.u32 %v8464_v48, 16  ;;  %v8491_v50 = vld [vmem:[#allocation2 + $0xa4] sm:$0x1] }
 0x166   : > { %v2354_v30 = vsel %vm8069_vm9, %v6665_v57, %v2353_v45  ;;  %v2355_v3 = vrot.slane %v2353_v45, 4  ;;  %v1601_v10 = vrot.slane %v1600_v53, 4  ;;  %v1610_v12 = vrot.slane %v1608_v23, 4 }
 0x167   : > { %v1596_v11 = vsel %vm8043_vm5, %v1591_v20, %v1595_v41  ;;  %v1613_v28 = vrot.slane %v1611_v9, 5  ;;  %v1619_v49 = vrot.slane %v1617_v6, 5  ;;  %v1623_v43 = vrot.slane %v1621_v51, 4  ;;  %v2272_v41 = vld [vmem:[#allocation2 + $0x54] sm:$0xe] }
 0x168   : > { %v2357_v16 = vsel %vm8069_vm9, %v2355_v3, %v2356_v62  ;;  %v1627_v31 = vshll.u32 %v8468_v15, 16  ;;  %v1606_v19 = vsel %vm8043_vm5, %v1601_v10, %v1605_v56  ;;  %v6666_v13 = vrot.slane %v2271_v58, 9  ;;  %v8509_v6 = vld [vmem:[#allocation2 + $0xa8] sm:$0xf]  ;;  %v8511_v51 = vld [vmem:[#allocation2 + $0xac] sm:$0xf] }
 0x169   : > { %v6683_v54 = vcombine.low %v2354_v30, %v2357_v16  ;;  %v1614_v24 = vor.u32 %v1613_v28, %v1610_v12  ;;  %v6605_v25 = vcombine.low %v1596_v11, %v1606_v19  ;;  %v1624_v27 = vor.u32 %v1623_v43, %v1619_v49 }
 0x16a   : > { %v1629_v36 = vrot.slane %v1627_v31, 5  ;;  %v2360_v40 = vrot.slane %v8257_v38, 5  ;;  %v1632_v46 = vshrl.u32 %v8478_v8, 16  ;;  %v1635_v17 = vshll.u32 %v8478_v8, 16  ;;  %v8517_v31 = vld [vmem:[#allocation2 + $0xb0] sm:$0x1] }
 0x16b   : > { %7460 = vmatmul.mubr.msk.bf16.gmra.mxu0 %vm1760_vm6, %v6683_v54  ;;  %v1615_v44 = vrot.slane %v1614_v24, 4  ;;  %v1641_v42 = vshll.u32 %v8482_v61, 16  ;;  %7404 = vmatmul.mubr.msk.bf16.gmra.mxu1 %vm1760_vm6, %v6605_v25  ;;  %v1625_v56 = vrot.slane %v1624_v27, 4  ;;  %v1645_v38 = vshrl.u32 %v8482_v61, 16 }
 0x16c   : > { %v2361_v57 = vsel %vm8069_vm9, %v6666_v13, %v2360_v40  ;;  %v2362_v45 = vrot.slane %v2360_v40, 4  ;;  %v1634_v58 = vrot.slane %v1632_v46, 4  ;;  %v1637_v20 = vrot.slane %v1635_v17, 5 }
 0x16d   : > { %v1620_v62 = vsel %vm8043_vm5, %v1615_v44, %v1619_v49  ;;  %v1643_v53 = vrot.slane %v1641_v42, 5  ;;  %v1630_v23 = vsel %vm8043_vm5, %v1625_v56, %v1629_v36  ;;  %v1647_v30 = vrot.slane %v1645_v38, 4  ;;  %v2273_v36 = vld [vmem:[#allocation2 + $0x60] sm:$0xe]  ;;  %v8534_v38 = vld [vmem:[#allocation2 + $0xb8] sm:$0xf] }
 0x16e   : > { %v2364_v9 = vsel %vm8069_vm9, %v2362_v45, %v2363_v35  ;;  %v1651_v3 = vshll.u32 %v8491_v50, 16  ;;  %v6606_v11 = vcombine.low %v1620_v62, %v1630_v23  ;;  %v1638_v12 = vor.u32 %v1637_v20, %v1634_v58  ;;  %v8532_v45 = vld [vmem:[#allocation2 + $0xb4] sm:$0xf] }
 0x16f   : > { %v6684_v10 = vcombine.low %v2361_v57, %v2364_v9  ;;  %v6667_v28 = vrot.slane %v2272_v41, 9  ;;  %v1648_v16 = vor.u32 %v1647_v30, %v1643_v53  ;;  %v2367_v43 = vrot.slane %v8327_v5, 5 }
 0x170   : > { %v1653_v49 = vrot.slane %v1651_v3, 5  ;;  %v2370_v7 = vrot.slane %v8337_v34, 5  ;;  %7407 = vmatprep.mubr.msk.bf16.mxu1 %vm1760_vm6, %v6606_v11  ;;  %v1639_v35 = vrot.slane %v1638_v12, 4  ;;  %v1656_v19 = vshrl.u32 %v8509_v6, 16 }
 0x171   : > { %7463 = vmatprep.mubr.msk.bf16.mxu0 %vm1760_vm6, %v6684_v10  ;;  %v1659_v54 = vshll.u32 %v8509_v6, 16  ;;  %v1665_v24 = vshll.u32 %v8511_v51, 16  ;;  %v1649_v13 = vrot.slane %v1648_v16, 4  ;;  %v2368_v25 = vsel %vm8069_vm9, %v6667_v28, %v2367_v43  ;;  %v8540_v10 = vld [vmem:[#allocation2 + $0xbc] sm:$0x1] }
 0x172   : > { %v2369_v27 = vrot.slane %v2367_v43, 4  ;;  %v1669_v34 = vshrl.u32 %v8511_v51, 16  ;;  %v1644_v40 = vsel %vm8043_vm5, %v1639_v35, %v1643_v53  ;;  %v1658_v41 = vrot.slane %v1656_v19, 4 }
 0x173   : > { %v1661_v44 = vrot.slane %v1659_v54, 5  ;;  %v1667_v46 = vrot.slane %v1665_v24, 5  ;;  %v1654_v17 = vsel %vm8043_vm5, %v1649_v13, %v1653_v49  ;;  %v1675_v57 = vshll.u32 %v8517_v31, 16  ;;  %v2274_v13 = vld [vmem:[#allocation2 + $0x6c] sm:$0xe] }
 0x174   : > { %v2371_v42 = vsel %vm8069_vm9, %v2369_v27, %v2370_v7  ;;  %v1671_v56 = vrot.slane %v1669_v34, 4  ;;  %v6607_v62 = vcombine.low %v1644_v40, %v1654_v17  ;;  %v6668_v53 = vrot.slane %v2273_v36, 9  ;;  %v2275_v40 = vld [vmem:[#allocation2 + $0x78] sm:$0xe] }
 0x175   : > { %v6685_v58 = vcombine.low %v2368_v25, %v2371_v42  ;;  %v1662_v20 = vor.u32 %v1661_v44, %v1658_v41  ;;  %v1677_v9 = vrot.slane %v1675_v57, 5  ;;  %v2374_v30 = vrot.slane %v8353_v1, 5 }
 0x176   : > { %v1672_v23 = vor.u32 %v1671_v56, %v1667_v46  ;;  %v2377_v3 = vrot.slane %v8361_v14, 5  ;;  %7408 = vmatmul.mubr.msk.bf16.gmra.mxu1 %vm1760_vm6, %v6607_v62  ;;  %v1680_v12 = vshrl.u32 %v8532_v45, 16  ;;  %v1683_v28 = vshll.u32 %v8532_v45, 16 }
 0x177   : > { %7464 = vmatmul.mubr.msk.bf16.gmra.mxu0 %vm1760_vm6, %v6685_v58  ;;  %v1663_v11 = vrot.slane %v1662_v20, 4  ;;  %v1689_v16 = vshll.u32 %v8534_v38, 16  ;;  %v2375_v43 = vsel %vm8069_vm9, %v6668_v53, %v2374_v30  ;;  %v2376_v7 = vrot.slane %v2374_v30, 4 }
 0x178   : > { %v1673_v49 = vrot.slane %v1672_v23, 4  ;;  %v1693_v14 = vshrl.u32 %v8534_v38, 16  ;;  %v1682_v19 = vrot.slane %v1680_v12, 4  ;;  %v1685_v54 = vrot.slane %v1683_v28, 5  ;;  %v2276_v23 = vld [vmem:[#allocation2 + $0x84] sm:$0xe] }
 0x179   : > { %v1668_v35 = vsel %vm8043_vm5, %v1663_v11, %v1667_v46  ;;  %v1691_v24 = vrot.slane %v1689_v16, 5  ;;  %v2378_v27 = vsel %vm8069_vm9, %v2376_v7, %v2377_v3  ;;  %v1699_v36 = vshll.u32 %v8540_v10, 16 }
 0x17a   : > { %v1678_v25 = vsel %vm8043_vm5, %v1673_v49, %v1677_v9  ;;  %v1695_v34 = vrot.slane %v1693_v14, 4  ;;  %v6686_v44 = vcombine.low %v2375_v43, %v2378_v27  ;;  %v1686_v17 = vor.u32 %v1685_v54, %v1682_v19  ;;  %v7805_v49 = vld [vmem:[#allocation2] sm:$0xf]  ;;  %v7808_v27 = vld [vmem:[#allocation2 + $0x10] sm:$0xf] }
 0x17b   : > { %v6608_v41 = vcombine.low %v1668_v35, %v1678_v25  ;;  %v1701_v56 = vrot.slane %v1699_v36, 5  ;;  %v6669_v46 = vrot.slane %v2274_v13, 9  ;;  %v2381_v57 = vrot.slane %v8371_v21, 5  ;;  %v7807_v25 = vld [vmem:[#allocation2 + $0xc] sm:$0xf] }
 0x17c   : > { %v1696_v42 = vor.u32 %v1695_v34, %v1691_v24  ;;  %7467 = vmatprep.mubr.msk.bf16.mxu0 %vm1760_vm6, %v6686_v44  ;;  %v1687_v62 = vrot.slane %v1686_v17, 4  ;;  %v2384_v58 = vrot.slane %v8399_v32, 5  ;;  %v6670_v20 = vrot.slane %v2275_v40, 9  ;;  %v7806_v32 = vld [vmem:[#allocation2 + $0x4] sm:$0xf] }
 0x17d   : > { %7411 = vmatprep.mubr.msk.bf16.mxu1 %vm1760_vm6, %v6608_v41  ;;  %v2388_v53 = vrot.slane %v8418_v37, 5  ;;  %v2382_v30 = vsel %vm8069_vm9, %v6669_v46, %v2381_v57  ;;  %v2383_v3 = vrot.slane %v2381_v57, 4  ;;  %v2391_v11 = vrot.slane %v8422_v33, 5  ;;  %v2277_v33 = vld [vmem:[#allocation2 + $0x90] sm:$0xe] }
 0x17e   : > { %v1697_v9 = vrot.slane %v1696_v42, 4  ;;  %v1692_v12 = vsel %vm8043_vm5, %v1687_v62, %v1691_v24  ;;  %v6627_v43 = vcombine.low %v7805_v49, %v7806_v32  ;;  %v6671_v35 = vrot.slane %v2276_v23, 9  ;;  %v2278_v36 = vld [vmem:[#allocation2 + $0x9c] sm:$0xe]  ;;  %v7809_v42 = vld [vmem:[#allocation2 + $0x18] sm:$0xf] }
 0x17f   : > { %v2389_v28 = vsel %vm8069_vm9, %v6670_v20, %v2388_v53  ;;  %v2390_v16 = vrot.slane %v2388_v53, 4  ;;  %v2385_v14 = vsel %vm8069_vm9, %v2383_v3, %v2384_v58  ;;  %v2395_v19 = vrot.slane %v8436_v2, 5  ;;  %v8587_v53 = vld [vmem:[#allocation2 + $0x28] sm:$0xf] }
 0x180   : > { %v1702_v7 = vsel %vm8043_vm5, %v1697_v9, %v1701_v56  ;;  %v6687_v13 = vcombine.low %v2382_v30, %v2385_v14  ;;  %v6628_v34 = vcombine.low %v7807_v25, %v7808_v27  ;;  %v2398_v17 = vrot.slane %v8443_v4, 5  ;;  %v7810_v56 = vld [vmem:[#allocation2 + $0x1c] sm:$0xf]  ;;  %v8585_v4 = vld [vmem:[#allocation2 + $0x24] sm:$0xf] }
 0x181   : > { %v6609_v54 = vcombine.low %v1692_v12, %v1702_v7  ;;  %v2392_v24 = vsel %vm8069_vm9, %v2390_v16, %v2391_v11  ;;  %v2396_v41 = vsel %vm8069_vm9, %v6671_v35, %v2395_v19  ;;  %v2397_v44 = vrot.slane %v2395_v19, 4  ;;  %v2279_v3 = vld [vmem:[#allocation2 + $0xa8] sm:$0xe]  ;;  %v2280_v16 = vld [vmem:[#allocation2 + $0xb4] sm:$0xe] }
 0x182   : > { %v6688_v40 = vcombine.low %v2389_v28, %v2392_v24  ;;  %7468 = vmatmul.mubr.msk.bf16.gmra.mxu0 %vm1760_vm6, %v6687_v13  ;;  %v6629_v46 = vcombine.low %v7809_v42, %v7810_v56  ;;  %v6672_v57 = vrot.slane %v2277_v33, 9  ;;  %v2402_v62 = vrot.slane %v8464_v48, 5  ;;  %v8601_v7 = vld [vmem:[#allocation2 + $0x34] sm:$0xf]  ;;  %v3088_v13 = vld [vmem:[#allocation2 + $0xc] sm:$0xf] }
 0x183   : > { %7412 = vmatmul.mubr.msk.bf16.gmra.mxu1 %vm1760_vm6, %v6609_v54  ;;  %v2405_v58 = vrot.slane %v8468_v15, 5  ;;  %v2399_v20 = vsel %vm8069_vm9, %v2397_v44, %v2398_v17  ;;  %v6630_v23 = vcombine.low %v8585_v4, %v8587_v53  ;;  %v6673_v9 = vrot.slane %v2278_v36, 9  ;;  %v3089_v24 = vld [vmem:[#allocation2 + $0x10] sm:$0xf]  ;;  %v3090_v42 = vld [vmem:[#allocation2 + $0x14] sm:$0x1] }
 0x184   : > { %7471 = vmatprep.mubr.msk.bf16.mxu0 %vm1760_vm6, %v6688_v40  ;;  %7417 = vmatprep.mubr.msk.bf16.mxu1 %vm1760_vm6, %v6627_v43  ;;  %v2409_v30 = vrot.slane %v8482_v61, 5  ;;  %v6689_v11 = vcombine.low %v2396_v41, %v2399_v20  ;;  %v2403_v15 = vsel %vm8069_vm9, %v6672_v57, %v2402_v62  ;;  %v2404_v12 = vrot.slane %v2402_v62, 4  ;;  %v8599_v43 = vld [vmem:[#allocation2 + $0x30] sm:$0xf]  ;;  %v8623_v56 = vld [vmem:[%s10690_s3 + $0x28] sm:$0xff]  }
 0x185   : > { %v2412_v28 = vrot.slane %v8491_v50, 5  ;;  %v6631_v14 = vcombine.low %v8599_v43, %v8601_v7  ;;  %v2416_v35 = vrot.slane %v8511_v51, 5  ;;  %v6674_v33 = vrot.slane %v2279_v3, 9  ;;  %v8630_v3 = vld [vmem:[#allocation2 + $0x48] sm:$0xf] }
 0x186   : > { %v8597_v49 = vsel %vm8069_vm9, %v6673_v9, %v2409_v30  ;;  %v2411_v32 = vrot.slane %v2409_v30, 4  ;;  %v2406_v19 = vsel %vm8069_vm9, %v2404_v12, %v2405_v58  ;;  %v2419_v50 = vrot.slane %v8517_v31, 5  ;;  %v3091_v9 = vld [vmem:[#allocation2 + $0x18] sm:$0xf] }
 0x187   : > { %v6632_v54 = vcombine.low %v8280_v26, %v8287_v47  ;;  %v6690_v25 = vcombine.low %v2403_v15, %v2406_v19  ;;  %v2418_v36 = vrot.slane %v2416_v35, 4  ;;  %v6675_v40 = vrot.slane %v2280_v16, 9  ;;  %v8632_v15 = vld [vmem:[#allocation2 + $0x4c] sm:$0xf]  ;;  %v8679_v7 = vld [vmem:[#allocation2 + $0x38] sm:$0x1] }
 0x188   : > { %v2413_v27 = vsel %vm8069_vm9, %v2411_v32, %v2412_v28  ;;  %v8616_v44 = vsel %vm8069_vm9, %v6674_v33, %v2416_v35  ;;  %v2423_v17 = vrot.slane %v8534_v38, 5  ;;  %v2426_v31 = vrot.slane %v8540_v10, 5 }
 0x189   : > { %v6691_v41 = vcombine.low %v8597_v49, %v2413_v27  ;;  %v2420_v57 = vsel %vm8069_vm9, %v2418_v36, %v2419_v50  ;;  %v3137_v62 = vshrl.u32 %v3088_v13, 16  ;;  %v3140_v58 = vshll.u32 %v3088_v13, 16  ;;  %v3093_v50 = vld [vmem:[#allocation2 + $0x20] sm:$0x1]  ;;  %v3094_v27 = vld [vmem:[#allocation2 + $0x24] sm:$0xf] }
 0x18a   : > { %v3146_v20 = vshll.u32 %v3089_v24, 16  ;;  %7472 = vmatmul.mubr.msk.bf16.gmra.mxu0 %vm1760_vm6, %v6689_v11  ;;  %v6692_v30 = vcombine.low %v8616_v44, %v2420_v57  ;;  %v2425_v10 = vrot.slane %v2423_v17, 4  ;;  %v3150_v28 = vshrl.u32 %v3089_v24, 16  ;;  %v3092_v11 = vld [vmem:[#allocation2 + $0x1c] sm:$0xf] }
 0x18b   : > { %7418 = vmatmul.mubr.msk.bf16.vlgmr.msra.gmra.mxu1 %vm1760_vm6, %v6628_v34  ;;  %v3139_v16 = vrot.slane %v3137_v62, 4  ;;  %v3142_v49 = vrot.slane %v3140_v58, 5  ;;  %v3156_v32 = vshll.u32 %v3090_v42, 16  ;;  %7475 = vmatprep.mubr.msk.bf16.mxu0 %vm1760_vm6, %v6690_v25  ;;  %v8641_v35 = vsel %vm8069_vm9, %v6675_v40, %v2423_v17  ;;  %v8652_v58 = vld [vmem:[#allocation2 + $0x28] sm:$0xf] }
 0x18c   : > { %7484 = vmatpush3.bf16.msra.mxu1 %v8376_v22  ;;  %7421 = vmatprep.mubr.msk.bf16.mxu1 %vm1760_vm6, %v6629_v46  ;;  %v3148_v34 = vrot.slane %v3146_v20, 5  ;;  %v8645_v19 = vsel %vm8069_vm9, %v2425_v10, %v2426_v31  ;;  %v3152_v33 = vrot.slane %v3150_v28, 4  ;;  %v3161_v22 = vshrl.u32 %v3091_v9, 16 }
 0x18d   : > { %7551 = vmatprep.subr.bf16.mxu1 %v8623_v56  ;;  %v6693_v46 = vcombine.low %v8641_v35, %v8645_v19  ;;  %v3143_v13 = vor.u32 %v3142_v49, %v3139_v16  ;;  %v6634_v24 = vcombine.low %v8307_v18, %v8327_v5  ;;  %v3164_v25 = vshll.u32 %v3091_v9, 16  ;;  %v3103_v19 = vld [vmem:[#allocation2 + $0x48] sm:$0xf] }
 0x18e   : > { %v3153_v36 = vor.u32 %v3152_v33, %v3148_v34  ;;  %v3163_v40 = vrot.slane %v3161_v22, 4  ;;  %v3170_v44 = vshll.u32 %v3092_v11, 16  ;;  %v3174_v17 = vshrl.u32 %v3092_v11, 16  ;;  %v8658_v33 = vld [vmem:[#allocation2 + $0x2c] sm:$0x1] }
 0x18f   : > { %v3144_v31 = vrot.slane %v3143_v13, 4  ;;  %v3158_v42 = vrot.slane %v3156_v32, 5  ;;  %v3166_v57 = vrot.slane %v3164_v25, 5  ;;  %v3180_v62 = vshll.u32 %v3093_v50, 16  ;;  %v3097_v13 = vld [vmem:[#allocation2 + $0x30] sm:$0xf] }
 0x190   : > { %v3154_v20 = vrot.slane %v3153_v36, 4  ;;  %v3172_v10 = vrot.slane %v3170_v44, 5  ;;  %v3176_v28 = vrot.slane %v3174_v17, 4  ;;  %v3185_v12 = vshrl.u32 %v3094_v27, 16  ;;  %v8674_v25 = vld [vmem:[#allocation2 + $0x34] sm:$0xf] }
 0x191   : > { %v3149_v16 = vsel %vm8043_vm5, %v3144_v31, %v3148_v34  ;;  %v3167_v49 = vor.u32 %v3166_v57, %v3163_v40  ;;  %v6635_v9 = vcombine.low %v8348_v0, %v8353_v1  ;;  %v3188_v11 = vshll.u32 %v3094_v27, 16  ;;  %v3109_v0 = vld [vmem:[#allocation2 + $0x60] sm:$0xf] }
 0x192   : > { %7476 = vmatmul.mubr.msk.bf16.gmra.mxu0 %vm1760_vm6, %v6691_v41  ;;  %v3159_v32 = vsel %vm8043_vm5, %v3154_v20, %v3158_v42  ;;  %v3177_v50 = vor.u32 %v3176_v28, %v3172_v10  ;;  %v3187_v22 = vrot.slane %v3185_v12, 4  ;;  %v3194_v34 = vshll.u32 %v8652_v58, 16 }
 0x193   : > { %7422 = vmatmul.mubr.msk.bf16.gmra.mxu1 %vm1760_vm6, %v6630_v23  ;;  %7479 = vmatprep.mubr.msk.bf16.mxu0 %vm1760_vm6, %v6692_v30  ;;  %v3168_v4 = vrot.slane %v3167_v49, 4  ;;  %v3182_v53 = vrot.slane %v3180_v62, 5  ;;  %v3190_v23 = vrot.slane %v3188_v11, 5  ;;  %v3198_v41 = vshrl.u32 %v8652_v58, 16  ;;  %v3100_v62 = vld [vmem:[#allocation2 + $0x3c] sm:$0xf] }
 0x194   : > { %7425 = vmatprep.mubr.msk.bf16.mxu1 %vm1760_vm6, %v6631_v14  ;;  %v6748_v27 = vcombine.low %v3149_v16, %v3159_v32  ;;  %v3178_v36 = vrot.slane %v3177_v50, 4  ;;  %v3196_v12 = vrot.slane %v3194_v34, 5  ;;  %v3204_v40 = vshll.u32 %v8658_v33, 16  ;;  %v8688_v34 = vld [vmem:[#allocation2 + $0x40] sm:$0xf] }
 0x195   : > { %v3191_v44 = vor.u32 %v3190_v23, %v3187_v22  ;;  %v3200_v17 = vrot.slane %v3198_v41, 4  ;;  %v6636_v43 = vcombine.low %v8365_v29, %v8371_v21  ;;  %v3209_v14 = vshrl.u32 %v3097_v13, 16 }
 0x196   : > { %v3173_v30 = vsel %vm8043_vm5, %v3168_v4, %v3172_v10  ;;  %v3183_v31 = vsel %vm8043_vm5, %v3178_v36, %v3182_v53  ;;  %v3212_v42 = vshll.u32 %v3097_v13, 16  ;;  %v3218_v57 = vshll.u32 %v8674_v25, 16 }
 0x197   : > { %v3192_v20 = vrot.slane %v3191_v44, 4  ;;  %v3201_v28 = vor.u32 %v3200_v17, %v3196_v12  ;;  %v3206_v16 = vrot.slane %v3204_v40, 5  ;;  %v3211_v49 = vrot.slane %v3209_v14, 4  ;;  %v8702_v40 = vld [vmem:[#allocation2 + $0x44] sm:$0x1] }
 0x198   : > { %v3214_v11 = vrot.slane %v3212_v42, 5  ;;  %v3220_v32 = vrot.slane %v3218_v57, 5  ;;  %v3222_v50 = vshrl.u32 %v8674_v25, 16  ;;  %v3228_v22 = vshll.u32 %v8679_v7, 16 }
 0x199   : > { %v6749_v10 = vcombine.low %v3173_v30, %v3183_v31  ;;  %v3197_v4 = vsel %vm8043_vm5, %v3192_v20, %v3196_v12  ;;  %v3202_v13 = vrot.slane %v3201_v28, 4  ;;  %v3233_v53 = vshrl.u32 %v3100_v62, 16  ;;  %v8713_v31 = vld [vmem:[#allocation2 + $0x4c] sm:$0xf] }
 0x19a   : > { %7480 = vmatmul.mubr.msk.bf16.gmra.mxu0 %vm1760_vm6, %v6693_v46  ;;  %v3215_v23 = vor.u32 %v3214_v11, %v3211_v49  ;;  %v3224_v41 = vrot.slane %v3222_v50, 4  ;;  %v6637_v36 = vcombine.low %v8414_v63, %v8418_v37  ;;  %v3236_v12 = vshll.u32 %v3100_v62, 16  ;;  %v8720_v11 = vld [vmem:[#allocation2 + $0x50] sm:$0x1] }
 0x19b   : > { %7426 = vmatmul.mubr.msk.bf16.gmra.mxu1 %vm1760_vm6, %v6632_v54  ;;  %v10728_v44 = vcombine.low %v8630_v3, %v8632_v15  ;;  %7519 = vmatprep.mubr.msk.bf16.mxu0 %vm1760_vm6, %v6748_v27  ;;  %v3207_v26 = vsel %vm8043_vm5, %v3202_v13, %v3206_v16  ;;  %v3235_v47 = vrot.slane %v3233_v53, 4  ;;  %v3242_v54 = vshll.u32 %v8688_v34, 16  ;;  %v3106_v13 = vld [vmem:[#allocation2 + $0x54] sm:$0xf] }
 0x19c   : > { %v3246_v35 = vshrl.u32 %v8688_v34, 16  ;;  %v3216_v46 = vrot.slane %v3215_v23, 4  ;;  %v3225_v17 = vor.u32 %v3224_v41, %v3220_v32  ;;  %v3230_v14 = vrot.slane %v3228_v22, 5 }
 0x19d   : > { %7429 = vmatprep.mubr.msk.bf16.mxu1 %vm1760_vm6, %v10728_v44  ;;  %v3238_v30 = vrot.slane %v3236_v12, 5  ;;  %v3244_v3 = vrot.slane %v3242_v54, 5  ;;  %v3252_v42 = vshll.u32 %v8702_v40, 16  ;;  %v6638_v27 = vcombine.low %v8432_v52, %v8436_v2  ;;  %v8726_v12 = vld [vmem:[#allocation2 + $0x58] sm:$0xf]  ;;  %v8731_v54 = vld [vmem:[%s10690_s3 + $0x40] sm:$0xff]  }
 0x19e   : > { %v3248_v15 = vrot.slane %v3246_v35, 4  ;;  %v6750_v57 = vcombine.low %v3197_v4, %v3207_v26  ;;  %v3226_v62 = vrot.slane %v3225_v17, 4  ;;  %v3257_v28 = vshrl.u32 %v3103_v19, 16 }
 0x19f   : > { %v3239_v20 = vor.u32 %v3238_v30, %v3235_v47  ;;  %v3221_v16 = vsel %vm8043_vm5, %v3216_v46, %v3220_v32  ;;  %v3260_v50 = vshll.u32 %v3103_v19, 16  ;;  %v3266_v22 = vshll.u32 %v8713_v31, 16 }
 0x1a0   : > { %v3249_v49 = vor.u32 %v3248_v15, %v3244_v3  ;;  %v3231_v53 = vsel %vm8043_vm5, %v3226_v62, %v3230_v14  ;;  %v3259_v41 = vrot.slane %v3257_v28, 4  ;;  %v3270_v4 = vshrl.u32 %v8713_v31, 16 }
 0x1a1   : > { %v3240_v23 = vrot.slane %v3239_v20, 4  ;;  %v3254_v26 = vrot.slane %v3252_v42, 5  ;;  %v3262_v47 = vrot.slane %v3260_v50, 5  ;;  %v3268_v32 = vrot.slane %v3266_v22, 5  ;;  %v8755_v20 = vld [vmem:[#allocation2 + $0x64] sm:$0xf] }
 0x1a2   : > { %v3250_v44 = vrot.slane %v3249_v49, 4  ;;  %7520 = vmatmul.mubr.msk.bf16.vlgmr.msra.gmra.mxu0 %vm1760_vm6, %v6749_v10  ;;  %v6751_v35 = vcombine.low %v3221_v16, %v3231_v53  ;;  %v3272_v19 = vrot.slane %v3270_v4, 4  ;;  %v3276_v46 = vshll.u32 %v8720_v11, 16 }
 0x1a3   : > { %7430 = vmatmul.mubr.msk.bf16.gmra.mxu1 %vm1760_vm6, %v6634_v24  ;;  %v6639_v17 = vcombine.low %v8454_v59, %v8464_v48  ;;  %7523 = vmatprep.mubr.msk.bf16.mxu0 %vm1760_vm6, %v6750_v57  ;;  %v3245_v18 = vsel %vm8043_vm5, %v3240_v23, %v3244_v3  ;;  %v3263_v5 = vor.u32 %v3262_v47, %v3259_v41  ;;  %v8748_v24 = vld [vmem:[#allocation2 + $0x5c] sm:$0x1]  ;;  %v3281_v10 = vshrl.u32 %v3106_v13, 16  ;;  %v3112_v47 = vld [vmem:[#allocation2 + $0x6c] sm:$0xf] }
 0x1a4   : > { %7433 = vmatprep.mubr.msk.bf16.mxu1 %vm1760_vm6, %v6635_v9  ;;  %v3284_v14 = vshll.u32 %v3106_v13, 16  ;;  %v3255_v30 = vsel %vm8043_vm5, %v3250_v44, %v3254_v26  ;;  %v3273_v15 = vor.u32 %v3272_v19, %v3268_v32  ;;  %v3278_v42 = vrot.slane %v3276_v46, 5  ;;  %7586 = vmatpush3.bf16.msra.mxu0 %v8389_v55  ;;  %v8761_v55 = vld [vmem:[#allocation2 + $0x68] sm:$0x1] }
 0x1a5   : > { %v3290_v62 = vshll.u32 %v8726_v12, 16  ;;  %v3264_v1 = vrot.slane %v3263_v5, 4  ;;  %v3283_v9 = vrot.slane %v3281_v10, 4  ;;  %v3294_v3 = vshrl.u32 %v8726_v12, 16  ;;  %7653 = vmatprep.subr.bf16.mxu0 %v8731_v54 }
 0x1a6   : > { %v3286_v57 = vrot.slane %v3284_v14, 5  ;;  %v3274_v28 = vrot.slane %v3273_v15, 4  ;;  %v3300_v49 = vshll.u32 %v8748_v24, 16  ;;  %v6640_v50 = vcombine.low %v8478_v8, %v8482_v61  ;;  %v8775_v15 = vld [vmem:[#allocation2 + $0x70] sm:$0xf] }
 0x1a7   : > { %v3292_v16 = vrot.slane %v3290_v62, 5  ;;  %v6752_v22 = vcombine.low %v3245_v18, %v3255_v30  ;;  %v3296_v53 = vrot.slane %v3294_v3, 4  ;;  %v3305_v23 = vshrl.u32 %v3109_v0, 16  ;;  %v3115_v3 = vld [vmem:[#allocation2 + $0x78] sm:$0xf] }
 0x1a8   : > { %v3287_v13 = vor.u32 %v3286_v57, %v3283_v9  ;;  %v3269_v41 = vsel %vm8043_vm5, %v3264_v1, %v3268_v32  ;;  %v3279_v4 = vsel %vm8043_vm5, %v3274_v28, %v3278_v42  ;;  %v3308_v44 = vshll.u32 %v3109_v0, 16  ;;  %v8786_v1 = vld [vmem:[#allocation2 + $0x74] sm:$0x1] }
 0x1a9   : > { %v3314_v26 = vshll.u32 %v8755_v20, 16  ;;  %v3297_v46 = vor.u32 %v3296_v53, %v3292_v16  ;;  %v3302_v5 = vrot.slane %v3300_v49, 5  ;;  %v3307_v10 = vrot.slane %v3305_v23, 4  ;;  %v8792_v53 = vld [vmem:[#allocation2 + $0x7c] sm:$0xf] }
 0x1aa   : > { %v3288_v19 = vrot.slane %v3287_v13, 4  ;;  %7524 = vmatmul.mubr.msk.bf16.gmra.mxu0 %vm1760_vm6, %v6751_v35  ;;  %v3310_v18 = vrot.slane %v3308_v44, 5  ;;  %v3318_v14 = vshrl.u32 %v8755_v20, 16  ;;  %v3324_v30 = vshll.u32 %v8761_v55, 16 }
 0x1ab   : > { %7434 = vmatmul.mubr.msk.bf16.gmra.mxu1 %vm1760_vm6, %v6636_v43  ;;  %v3316_v32 = vrot.slane %v3314_v26, 5  ;;  %7527 = vmatprep.mubr.msk.bf16.mxu0 %vm1760_vm6, %v6752_v22  ;;  %v6753_v29 = vcombine.low %v3269_v41, %v3279_v4  ;;  %v3298_v21 = vrot.slane %v3297_v46, 4  ;;  %v6641_v43 = vcombine.low %v8509_v6, %v8511_v51  ;;  %v8849_v6 = vld [vmem:[#allocation2 + $0xa4] sm:$0x1] }
 0x1ac   : > { %7437 = vmatprep.mubr.msk.bf16.mxu1 %vm1760_vm6, %v6637_v36  ;;  %v3329_v35 = vshrl.u32 %v3112_v47, 16  ;;  %v3293_v42 = vsel %vm8043_vm5, %v3288_v19, %v3292_v16  ;;  %v3311_v62 = vor.u32 %v3310_v18, %v3307_v10  ;;  %v3320_v0 = vrot.slane %v3318_v14, 4  ;;  %v8799_v10 = vld [vmem:[#allocation2 + $0x80] sm:$0x1] }
 0x1ad   : > { %v3332_v9 = vshll.u32 %v3112_v47, 16  ;;  %v3303_v63 = vsel %vm8043_vm5, %v3298_v21, %v3302_v5  ;;  %v3338_v36 = vshll.u32 %v8775_v15, 16  ;;  %v3342_v57 = vshrl.u32 %v8775_v15, 16 }
 0x1ae   : > { %v3331_v37 = vrot.slane %v3329_v35, 4  ;;  %v3312_v28 = vrot.slane %v3311_v62, 4  ;;  %v3321_v49 = vor.u32 %v3320_v0, %v3316_v32  ;;  %v3326_v22 = vrot.slane %v3324_v30, 5  ;;  %v3118_v30 = vld [vmem:[#allocation2 + $0x84] sm:$0xf] }
 0x1af   : > { %v3334_v13 = vrot.slane %v3332_v9, 5  ;;  %v3340_v16 = vrot.slane %v3338_v36, 5  ;;  %v3344_v23 = vrot.slane %v3342_v57, 4  ;;  %v3348_v41 = vshll.u32 %v8786_v1, 16  ;;  %v8810_v62 = vld [vmem:[#allocation2 + $0x88] sm:$0xf] }
 0x1b0   : > { %v6642_v4 = vcombine.low %v8532_v45, %v8534_v38  ;;  %v6754_v44 = vcombine.low %v3293_v42, %v3303_v63  ;;  %v3322_v26 = vrot.slane %v3321_v49, 4  ;;  %v3353_v19 = vshrl.u32 %v3115_v3, 16  ;;  %v3130_v45 = vld [vmem:[#allocation2 + $0xb4] sm:$0xf] }
 0x1b1   : > { %v3335_v47 = vor.u32 %v3334_v13, %v3331_v37  ;;  %v3317_v46 = vsel %vm8043_vm5, %v3312_v28, %v3316_v32  ;;  %v3345_v5 = vor.u32 %v3344_v23, %v3340_v16  ;;  %v3356_v18 = vshll.u32 %v3115_v3, 16  ;;  %v8820_v3 = vld [vmem:[#allocation2 + $0x8c] sm:$0x1]  ;;  %v8825_v23 = vld [vmem:[#allocation2 + $0x94] sm:$0xf] }
 0x1b2   : > { %v3362_v14 = vshll.u32 %v8792_v53, 16  ;;  %7528 = vmatmul.mubr.msk.bf16.gmra.mxu0 %vm1760_vm6, %v6753_v29  ;;  %v3327_v21 = vsel %vm8043_vm5, %v3322_v26, %v3326_v22  ;;  %v3355_v42 = vrot.slane %v3353_v19, 4  ;;  %v3366_v32 = vshrl.u32 %v8792_v53, 16 }
 0x1b3   : > { %7438 = vmatmul.mubr.msk.bf16.gmra.mxu1 %vm1760_vm6, %v6638_v27  ;;  %v3336_v35 = vrot.slane %v3335_v47, 4  ;;  %7531 = vmatprep.mubr.msk.bf16.mxu0 %vm1760_vm6, %v6754_v44  ;;  %v3346_v52 = vrot.slane %v3345_v5, 4  ;;  %v3350_v2 = vrot.slane %v3348_v41, 5  ;;  %v3358_v27 = vrot.slane %v3356_v18, 5 }
 0x1b4   : > { %7441 = vmatprep.mubr.msk.bf16.mxu1 %vm1760_vm6, %v6639_v17  ;;  %v3364_v29 = vrot.slane %v3362_v14, 5  ;;  %v6755_v0 = vcombine.low %v3317_v46, %v3327_v21  ;;  %v3368_v9 = vrot.slane %v3366_v32, 4  ;;  %v3372_v63 = vshll.u32 %v8799_v10, 16  ;;  %v3121_v17 = vld [vmem:[#allocation2 + $0x90] sm:$0xf] }
 0x1b5   : > { %v3377_v37 = vshrl.u32 %v3118_v30, 16  ;;  %v3341_v36 = vsel %vm8043_vm5, %v3336_v35, %v3340_v16  ;;  %v3359_v57 = vor.u32 %v3358_v27, %v3355_v42  ;;  %v3380_v59 = vshll.u32 %v3118_v30, 16  ;;  %v3124_v35 = vld [vmem:[#allocation2 + $0x9c] sm:$0xf] }
 0x1b6   : > { %v3386_v48 = vshll.u32 %v8810_v62, 16  ;;  %v3351_v28 = vsel %vm8043_vm5, %v3346_v52, %v3350_v2  ;;  %v3369_v49 = vor.u32 %v3368_v9, %v3364_v29  ;;  %v3374_v22 = vrot.slane %v3372_v63, 5  ;;  %v8837_v2 = vld [vmem:[#allocation2 + $0xa0] sm:$0xf] }
 0x1b7   : > { %v3379_v13 = vrot.slane %v3377_v37, 4  ;;  %v3360_v41 = vrot.slane %v3359_v57, 4  ;;  %v3382_v44 = vrot.slane %v3380_v59, 5  ;;  %v3390_v16 = vshrl.u32 %v8810_v62, 16 }
 0x1b8   : > { %v3388_v26 = vrot.slane %v3386_v48, 5  ;;  %v3370_v47 = vrot.slane %v3369_v49, 4  ;;  %v3396_v19 = vshll.u32 %v8820_v3, 16  ;;  %v3401_v46 = vshrl.u32 %v3121_v17, 16  ;;  %v3127_v49 = vld [vmem:[#allocation2 + $0xa8] sm:$0xf] }
 0x1b9   : > { %v3404_v5 = vshll.u32 %v3121_v17, 16  ;;  %v6756_v18 = vcombine.low %v3341_v36, %v3351_v28  ;;  %v3383_v14 = vor.u32 %v3382_v44, %v3379_v13  ;;  %v3392_v30 = vrot.slane %v3390_v16, 4  ;;  %v8858_v16 = vld [vmem:[#allocation2 + $0xac] sm:$0xf] }
 0x1ba   : > { %v3410_v21 = vshll.u32 %v8825_v23, 16  ;;  %7532 = vmatmul.mubr.msk.bf16.gmra.mxu0 %vm1760_vm6, %v6755_v0  ;;  %v3375_v42 = vsel %vm8043_vm5, %v3370_v47, %v3374_v22  ;;  %v3403_v32 = vrot.slane %v3401_v46, 4  ;;  %v3365_v8 = vsel %vm8043_vm5, %v3360_v41, %v3364_v29  ;;  %v8846_v0 = vld [vmem:[#allocation2 + $0x98] sm:$0x1] }
 0x1bb   : > { %7442 = vmatmul.mubr.msk.bf16.gmra.mxu1 %vm1760_vm6, %v6640_v50  ;;  %v3406_v52 = vrot.slane %v3404_v5, 5  ;;  %7535 = vmatprep.mubr.msk.bf16.mxu0 %vm1760_vm6, %v6756_v18  ;;  %v3384_v61 = vrot.slane %v3383_v14, 4  ;;  %v3393_v50 = vor.u32 %v3392_v30, %v3388_v26  ;;  %v3398_v27 = vrot.slane %v3396_v19, 5 }
 0x1bc   : > { %7445 = vmatprep.mubr.msk.bf16.mxu1 %vm1760_vm6, %v6641_v43  ;;  %v3412_v63 = vrot.slane %v3410_v21, 5  ;;  %v3414_v37 = vshrl.u32 %v8825_v23, 16  ;;  %v3425_v36 = vshrl.u32 %v3124_v35, 16  ;;  %v6757_v57 = vcombine.low %v3365_v8, %v3375_v42  ;;  %v8866_v42 = vld [vmem:[#allocation2 + $0xb0] sm:$0x1] }
 0x1bd   : > { %v3407_v9 = vor.u32 %v3406_v52, %v3403_v32  ;;  %v3394_v59 = vrot.slane %v3393_v50, 4  ;;  %v3428_v51 = vshll.u32 %v3124_v35, 16  ;;  %v3434_v43 = vshll.u32 %v8837_v2, 16 }
 0x1be   : > { %v3389_v29 = vsel %vm8043_vm5, %v3384_v61, %v3388_v26  ;;  %v3416_v48 = vrot.slane %v3414_v37, 4  ;;  %v3420_v17 = vshll.u32 %v8846_v0, 16  ;;  %v3427_v28 = vrot.slane %v3425_v36, 4  ;;  %v7766_v26 = vld [vmem:[#allocation2 + $0xc] sm:$0xff]   ;;  %v8872_v37 = vld [vmem:[#allocation2 + $0xb8] sm:$0xf] }
 0x1bf   : > { %v3399_v22 = vsel %vm8043_vm5, %v3394_v59, %v3398_v27  ;;  %v3430_v13 = vrot.slane %v3428_v51, 5  ;;  %v3436_v41 = vrot.slane %v3434_v43, 5  ;;  %v3438_v44 = vshrl.u32 %v8837_v2, 16 }
 0x1c0   : > { %v6758_v47 = vcombine.low %v3389_v29, %v3399_v22  ;;  %v3408_v19 = vrot.slane %v3407_v9, 4  ;;  %v3417_v46 = vor.u32 %v3416_v48, %v3412_v63  ;;  %v3444_v5 = vshll.u32 %v8849_v6, 16  ;;  %v8879_v48 = vld [vmem:[#allocation2 + $0xbc] sm:$0x1] }
 0x1c1   : > { %v3431_v18 = vor.u32 %v3430_v13, %v3427_v28  ;;  %v3440_v14 = vrot.slane %v3438_v44, 4  ;;  %v3449_v30 = vshrl.u32 %v3127_v49, 16  ;;  %v3452_v21 = vshll.u32 %v3127_v49, 16  ;;  %v3133_v44 = vld [vmem:[#allocation2 + $0xc0] sm:$0xf] }
 0x1c2   : > { %7536 = vmatmul.mubr.msk.bf16.gmra.mxu0 %vm1760_vm6, %v6757_v57  ;;  %v3418_v35 = vrot.slane %v3417_v46, 4  ;;  %v3458_v32 = vshll.u32 %v8858_v16, 16  ;;  %v3462_v52 = vshrl.u32 %v8858_v16, 16  ;;  %v3422_v8 = vrot.slane %v3420_v17, 5 }
 0x1c3   : > { %7446 = vmatmul.mubr.msk.bf16.gmra.mxu1 %vm1760_vm6, %v6642_v4  ;;  %7539 = vmatprep.mubr.msk.bf16.mxu0 %vm1760_vm6, %v6758_v47  ;;  %v3441_v61 = vor.u32 %v3440_v14, %v3436_v41  ;;  %v3451_v50 = vrot.slane %v3449_v30, 4  ;;  %v3454_v27 = vrot.slane %v3452_v21, 5  ;;  %v3432_v38 = vrot.slane %v3431_v18, 4  ;;  %v7768_v47 = vld [vmem:[#allocation2 + $0x18] sm:$0xff]   ;;  %v8887_v18 = vld [vmem:[#allocation2 + $0xc4] sm:$0xf] }
 0x1c4   : > { %7485 = vmatprep.mubr.msk.bf16.mxu1 %vm1760_vm6, %v7766_v26  ;;  %v3460_v4 = vrot.slane %v3458_v32, 5  ;;  %v3464_v9 = vrot.slane %v3462_v52, 4  ;;  %v3413_v36 = vsel %vm8043_vm5, %v3408_v19, %v3412_v63  ;;  %v3423_v57 = vsel %vm8043_vm5, %v3418_v35, %v3422_v8  ;;  %v8892_v14 = vld [vmem:[%s10690_s3 + $0x38] sm:$0xff]   ;;  %v7769_v30 = vld [vmem:[#allocation2 + $0x24] sm:$0xff]  }
 0x1c5   : > { %v3442_v59 = vrot.slane %v3441_v61, 4  ;;  %v3446_v51 = vrot.slane %v3444_v5, 5  ;;  %v3468_v29 = vshll.u32 %v8866_v42, 16  ;;  %v3473_v17 = vshrl.u32 %v3130_v45, 16 }
 0x1c6   : > { %v3465_v43 = vor.u32 %v3464_v9, %v3460_v4  ;;  %v3476_v28 = vshll.u32 %v3130_v45, 16  ;;  %v3455_v22 = vor.u32 %v3454_v27, %v3451_v50  ;;  %v3482_v13 = vshll.u32 %v8872_v37, 16 }
 0x1c7   : > { %v3447_v49 = vsel %vm8043_vm5, %v3442_v59, %v3446_v51  ;;  %v3486_v63 = vshrl.u32 %v8872_v37, 16  ;;  %v6759_v19 = vcombine.low %v3413_v36, %v3423_v57  ;;  %v3437_v46 = vsel %vm8043_vm5, %v3432_v38, %v3436_v41  ;;  %v8901_v57 = vld [vmem:[#allocation2 + $0xc8] sm:$0x1] }
 0x1c8   : > { %v3475_v5 = vrot.slane %v3473_v17, 4  ;;  %v3478_v26 = vrot.slane %v3476_v28, 5  ;;  %v3466_v21 = vrot.slane %v3465_v43, 4  ;;  %v3484_v35 = vrot.slane %v3482_v13, 5 }
 0x1c9   : > { %v3488_v32 = vrot.slane %v3486_v63, 4  ;;  %v3492_v52 = vshll.u32 %v8879_v48, 16  ;;  %v6760_v41 = vcombine.low %v3437_v46, %v3447_v49  ;;  %v3497_v61 = vshrl.u32 %v3133_v44, 16 }
 0x1ca   : > { %7540 = vmatmul.mubr.msk.bf16.gmra.mxu0 %vm1760_vm6, %v6759_v19  ;;  %v3479_v8 = vor.u32 %v3478_v26, %v3475_v5  ;;  %v3500_v50 = vshll.u32 %v3133_v44, 16  ;;  %v3456_v27 = vrot.slane %v3455_v22, 4  ;;  %v3470_v45 = vrot.slane %v3468_v29, 5  ;;  %v7772_v26 = vld [vmem:[#allocation2 + $0x3c] sm:$0xff]  }
 0x1cb   : > { %7486 = vmatmul.mubr.msk.bf16.vlgmr.msra.gmra.mxu1 %vm1760_vm6, %v7768_v47  ;;  %v3489_v38 = vor.u32 %v3488_v32, %v3484_v35  ;;  %v3506_v9 = vshll.u32 %v8887_v18, 16  ;;  %7543 = vmatprep.mubr.msk.bf16.mxu0 %vm1760_vm6, %v6760_v41  ;;  %v3499_v59 = vrot.slane %v3497_v61, 4  ;;  %v3510_v43 = vshrl.u32 %v8887_v18, 16  ;;  %v7771_v47 = vld [vmem:[#allocation2 + $0x30] sm:$0xff]  }
 0x1cc   : > { %7552 = vmatpush3.bf16.msra.mxu1 %v8623_v56  ;;  %7489 = vmatprep.mubr.msk.bf16.mxu1 %vm1760_vm6, %v7769_v30  ;;  %v3480_v36 = vrot.slane %v3479_v8, 4  ;;  %v3502_v51 = vrot.slane %v3500_v50, 5  ;;  %v3471_v56 = vsel %vm8043_vm5, %v3466_v21, %v3470_v45  ;;  %v3494_v28 = vrot.slane %v3492_v52, 5  ;;  %v3820_v21 = vld [vmem:[#allocation2 + $0x24] sm:$0xe] }
 0x1cd   : > { %7619 = vmatprep.subr.bf16.mxu1 %v8892_v14  ;;  %v3490_v17 = vrot.slane %v3489_v38, 4  ;;  %v3508_v29 = vrot.slane %v3506_v9, 5  ;;  %v3512_v22 = vrot.slane %v3510_v43, 4  ;;  %v3461_v13 = vsel %vm8043_vm5, %v3456_v27, %v3460_v4  ;;  %v3821_v8 = vld [vmem:[#allocation2 + $0x30] sm:$0xe] }
 0x1ce   : > { %v3503_v49 = vor.u32 %v3502_v51, %v3499_v59  ;;  %v3516_v44 = vshll.u32 %v8901_v57, 16  ;;  %v6761_v19 = vcombine.low %v3461_v13, %v3471_v56  ;;  %v3485_v46 = vsel %vm8043_vm5, %v3480_v36, %v3484_v35  ;;  %v3822_v38 = vld [vmem:[#allocation2 + $0x3c] sm:$0xe]  ;;  %v3823_v51 = vld [vmem:[#allocation2 + $0x48] sm:$0xe] }
 0x1cf   : > { %v3495_v63 = vsel %vm8043_vm5, %v3490_v17, %v3494_v28  ;;  %v3513_v5 = vor.u32 %v3512_v22, %v3508_v29  ;;  %v3898_v52 = vrot.slane %v8652_v58, 5  ;;  %v6783_v61 = vrot.slane %v3820_v21, 9  ;;  %v7773_v17 = vld [vmem:[#allocation2 + $0x48] sm:$0xff]   ;;  %v3824_v13 = vld [vmem:[#allocation2 + $0x54] sm:$0xe] }
 0x1d0   : > { %v6762_v30 = vcombine.low %v3485_v46, %v3495_v63  ;;  %v3504_v32 = vrot.slane %v3503_v49, 4  ;;  %v3518_v41 = vrot.slane %v3516_v44, 5  ;;  %v3901_v50 = vrot.slane %v8658_v33, 5  ;;  %v7774_v63 = vld [vmem:[#allocation2 + $0x54] sm:$0xff]   ;;  %v9182_v46 = vld [vmem:[#allocation2 + $0x70] sm:$0xf] }
 0x1d1   : > { %v3514_v4 = vrot.slane %v3513_v5, 4  ;;  %v3900_v35 = vrot.slane %v3898_v52, 4  ;;  %v3905_v45 = vrot.slane %v8674_v25, 5  ;;  %v8927_v58 = vsel %vm8069_vm9, %v6783_v61, %v3898_v52  ;;  %v7775_v44 = vld [vmem:[#allocation2 + $0x18] sm:$0xff]   ;;  %10746 = vst [vmem:[#allocation20_spill] sm:$0xff] %v9182_v46 }
 0x1d2   : > { %7544 = vmatmul.mubr.msk.bf16.gmra.mxu0 %vm1760_vm6, %v6761_v19  ;;  %v3509_v9 = vsel %vm8043_vm5, %v3504_v32, %v3508_v29  ;;  %v6784_v59 = vrot.slane %v3821_v8, 9  ;;  %v3908_v25 = vrot.slane %v8679_v7, 5  ;;  %v3912_v56 = vrot.slane %v8688_v34, 5  ;;  %v3825_v8 = vld [vmem:[#allocation2 + $0x60] sm:$0xe] }
 0x1d3   : > { %7490 = vmatmul.mubr.msk.bf16.gmra.mxu1 %vm1760_vm6, %v7771_v47  ;;  %7547 = vmatprep.mubr.msk.bf16.mxu0 %vm1760_vm6, %v6762_v30  ;;  %v3519_v27 = vsel %vm8043_vm5, %v3514_v4, %v3518_v41  ;;  %v8931_v36 = vsel %vm8069_vm9, %v3900_v35, %v3901_v50  ;;  %v3907_v43 = vrot.slane %v3905_v45, 4  ;;  %v6785_v49 = vrot.slane %v3822_v38, 9  ;;  %v7776_v38 = vld [vmem:[#allocation2 + $0x60] sm:$0xff]  }
 0x1d4   : > { %7493 = vmatprep.mubr.msk.bf16.mxu1 %vm1760_vm6, %v7772_v26  ;;  %v6801_v33 = vcombine.low %v8927_v58, %v8931_v36  ;;  %v6763_v28 = vcombine.low %v3509_v9, %v3519_v27  ;;  %v8939_v29 = vsel %vm8069_vm9, %v6784_v59, %v3905_v45  ;;  %v3919_v22 = vrot.slane %v8713_v31, 5  ;;  %v7777_v27 = vld [vmem:[#allocation2 + $0x24] sm:$0xff]   ;;  %v9174_v45 = vld [vmem:[#allocation2 + $0x58] sm:$0xf] }
 0x1d5   : > { %v8944_v47 = vsel %vm8069_vm9, %v3907_v43, %v3908_v25  ;;  %v3914_v19 = vrot.slane %v3912_v56, 4  ;;  %v3915_v7 = vrot.slane %v8702_v40, 5  ;;  %v6786_v34 = vrot.slane %v3823_v51, 9  ;;  %v3826_v51 = vld [vmem:[#allocation2 + $0x6c] sm:$0xe]  ;;  %v7779_v25 = vld [vmem:[#allocation2 + $0x30] sm:$0xff]  }
 0x1d6   : > { %v3921_v5 = vrot.slane %v3919_v22, 4  ;;  %v3922_v31 = vrot.slane %v8720_v11, 5  ;;  %v3926_v26 = vrot.slane %v8726_v12, 5  ;;  %v8957_v40 = vsel %vm8069_vm9, %v6785_v49, %v3912_v56  ;;  %v7778_v43 = vld [vmem:[#allocation2 + $0x6c] sm:$0xff]   ;;  %v9176_v58 = vld [vmem:[#allocation2 + $0x64] sm:$0xf] }
 0x1d7   : > { %v8961_v30 = vsel %vm8069_vm9, %v3914_v19, %v3915_v7  ;;  %v8965_v21 = vsel %vm8069_vm9, %v6786_v34, %v3919_v22  ;;  %v6787_v32 = vrot.slane %v3824_v13, 9  ;;  %v3929_v52 = vrot.slane %v8748_v24, 5  ;;  %v3827_v13 = vld [vmem:[#allocation2 + $0x78] sm:$0xe]  ;;  %v9180_v11 = vld [vmem:[#allocation2 + $0x44] sm:$0x1] }
 0x1d8   : > { %v8971_v12 = vsel %vm8069_vm9, %v3921_v5, %v3922_v31  ;;  %v3928_v4 = vrot.slane %v3926_v26, 4  ;;  %v3933_v50 = vrot.slane %v8755_v20, 5  ;;  %v6788_v24 = vrot.slane %v3825_v8, 9  ;;  %v3828_v31 = vld [vmem:[#allocation2 + $0x84] sm:$0xe]  ;;  %v7783_v8 = vld [vmem:[#allocation2 + $0x48] sm:$0xff]  }
 0x1d9   : > { %v8978_v61 = vsel %vm8069_vm9, %v6787_v32, %v3926_v26  ;;  %v3936_v59 = vrot.slane %v8761_v55, 5  ;;  %v3940_v56 = vrot.slane %v8775_v15, 5  ;;  %v6789_v15 = vrot.slane %v3826_v51, 9  ;;  %v7781_v26 = vld [vmem:[#allocation2 + $0x3c] sm:$0xff]   ;;  %v9171_v55 = vld [vmem:[#allocation2 + $0x4c] sm:$0xf] }
 0x1da   : > { %7548 = vmatmul.mubr.msk.bf16.gmra.mxu0 %vm1760_vm6, %v6763_v28  ;;  %v8982_v35 = vsel %vm8069_vm9, %v3928_v4, %v3929_v52  ;;  %v3935_v9 = vrot.slane %v3933_v50, 4  ;;  %v8993_v20 = vsel %vm8069_vm9, %v6788_v24, %v3933_v50  ;;  %v3943_v49 = vrot.slane %v8786_v1, 5  ;;  %v9004_v22 = vpop.f32.mrf.mxu0  ;;  %v7782_v52 = vld [vmem:[#allocation2 + $0x84] sm:$0xff]   ;;  %v3829_v24 = vld [vmem:[#allocation2 + $0x90] sm:$0xe] }
 0x1db   : > { %7494 = vmatmul.mubr.msk.bf16.gmra.mxu1 %vm1760_vm6, %v7773_v17  ;;  %7587 = vmatprep.mubr.msk.bf16.mxu0 %vm1760_vm6, %v7775_v44  ;;  %v3942_v28 = vrot.slane %v3940_v56, 4  ;;  %10729 = vst [vmem:[#allocation3_spill] sm:$0xff] %v9004_v22  ;;  %v3947_v19 = vrot.slane %v8792_v53, 5  ;;  %v6790_v34 = vrot.slane %v3827_v13, 9  ;;  %v3950_v5 = vrot.slane %v8799_v10, 5  ;;  %v7784_v13 = vld [vmem:[#allocation2 + $0x90] sm:$0xff]  }
 0x1dc   : > { %7497 = vmatprep.mubr.msk.bf16.mxu1 %vm1760_vm6, %v7774_v63  ;;  %v8997_v17 = vsel %vm8069_vm9, %v3935_v9, %v3936_v59  ;;  %v9009_v63 = vsel %vm8069_vm9, %v6789_v15, %v3940_v56  ;;  %v9019_v32 = vpop.f32.mrf.mxu0  ;;  %v3954_v4 = vrot.slane %v8810_v62, 5  ;;  %v3957_v62 = vrot.slane %v8820_v3, 5  ;;  %v9152_v3 = vld [vmem:[#allocation2 + $0x40] sm:$0xf]  ;;  %v5387_v10 = vld [vmem:[#allocation2 + $0x30] sm:$0xe] }
 0x1dd   : > { %v9013_v44 = vsel %vm8069_vm9, %v3942_v28, %v3943_v49  ;;  %v3949_v1 = vrot.slane %v3947_v19, 4  ;;  %10730 = vst [vmem:[#allocation4_spill] sm:$0xff] %v9019_v32  ;;  %v9024_v50 = vsel %vm8069_vm9, %v6790_v34, %v3947_v19  ;;  %v3964_v15 = vrot.slane %v8846_v0, 5  ;;  %v3830_v28 = vld [vmem:[#allocation2 + $0x9c] sm:$0xe]  ;;  %v7785_v19 = vld [vmem:[#allocation2 + $0x54] sm:$0xff]  }
 0x1de   : > { %v9037_v9 = vpop.f32.mrf.mxu0  ;;  %v3968_v49 = vrot.slane %v8837_v2, 5  ;;  %v3971_v2 = vrot.slane %v8849_v6, 5  ;;  %v9150_v0 = vld [vmem:[#allocation2 + $0x20] sm:$0x1]  ;;  %v5472_v7 = vrot.slane %v9152_v3, 5 }
 0x1df   : > { %v9028_v53 = vsel %vm8069_vm9, %v3949_v1, %v3950_v5  ;;  %10731 = vst [vmem:[#allocation5_spill] sm:$0xff] %v9037_v9  ;;  %v7786_v5 = vld [vmem:[#allocation2 + $0x9c] sm:$0xff]   ;;  %v5389_v22 = vld [vmem:[#allocation2 + $0x48] sm:$0xe] }
 0x1e0   : > { %v9052_v34 = vpop.f32.mrf.mxu0 }
 0x1e1   : > { %10732 = vst [vmem:[#allocation6_spill] sm:$0xff] %v9052_v34 }
 0x1e2   : > { %7588 = vmatmul.mubr.msk.bf16.vlgmr.msra.gmra.mxu0 %vm1760_vm6, %v7777_v27  ;;  %v6791_v27 = vrot.slane %v3828_v31, 9  ;;  %v7787_v31 = vld [vmem:[#allocation2 + $0x60] sm:$0xff]  }
 0x1e3   : > { %7498 = vmatmul.mubr.msk.bf16.gmra.mxu1 %vm1760_vm6, %v7776_v38  ;;  %7591 = vmatprep.mubr.msk.bf16.mxu0 %vm1760_vm6, %v7779_v25  ;;  %v3956_v38 = vrot.slane %v3954_v4, 4  ;;  %v6792_v25 = vrot.slane %v3829_v24, 9 }
 0x1e4   : > { %7501 = vmatprep.mubr.msk.bf16.mxu1 %vm1760_vm6, %v7778_v43  ;;  %7654 = vmatpush3.bf16.msra.mxu0 %v8731_v54  ;;  %v7780_v54 = vld [vmem:[#allocation2 + $0x78] sm:$0xff]   ;;  %v9041_v59 = vsel %vm8069_vm9, %v6791_v27, %v3954_v4  ;;  %v3961_v43 = vrot.slane %v8825_v23, 5  ;;  %v3831_v4 = vld [vmem:[#allocation2 + $0xa8] sm:$0xe]  ;;  %v3975_v27 = vrot.slane %v8858_v16, 5 }
 0x1e5   : > { %v9045_v51 = vsel %vm8069_vm9, %v3956_v38, %v3957_v62  ;;  %v6794_v62 = vrot.slane %v3831_v4, 9  ;;  %v3833_v4 = vld [vmem:[#allocation2 + $0xc0] sm:$0xe] }
 0x1e6   : > { %v3963_v56 = vrot.slane %v3961_v43, 4  ;;  %v9056_v1 = vsel %vm8069_vm9, %v6792_v25, %v3961_v43  ;;  %v3977_v24 = vrot.slane %v3975_v27, 4  ;;  %v3978_v43 = vrot.slane %v8866_v42, 5  ;;  %v3832_v25 = vld [vmem:[#allocation2 + $0xb4] sm:$0xe] }
 0x1e8   : > { %v9060_v23 = vsel %vm8069_vm9, %v3963_v56, %v3964_v15  ;;  %v7817_v56 = vld [vmem:[#allocation2 + $0x10] sm:$0xf]  ;;  %v9090_v16 = vsel %vm8069_vm9, %v3977_v24, %v3978_v43  ;;  %v3989_v43 = vrot.slane %v8887_v18, 5 }
 0x1e9   : > { %v3884_v15 = vrot.slane %v7817_v56, 5  ;;  %10734 = vst [vmem:[#allocation8_spill] sm:$0xff] %v9090_v16  ;;  %v3992_v56 = vrot.slane %v8901_v57, 5  ;;  %v9137_v57 = vld [vmem:[#allocation2 + $0x1c] sm:$0xf] }
 0x1ea   : > { %7592 = vmatmul.mubr.msk.bf16.gmra.mxu0 %vm1760_vm6, %v7781_v26  ;;  %v3970_v26 = vrot.slane %v3968_v49, 4  ;;  %v3991_v42 = vrot.slane %v3989_v43, 4 }
 0x1eb   : > { %7502 = vmatmul.mubr.msk.bf16.gmra.mxu1 %vm1760_vm6, %v7780_v54  ;;  %7595 = vmatprep.mubr.msk.bf16.mxu0 %vm1760_vm6, %v7783_v8  ;;  %v6793_v54 = vrot.slane %v3830_v28, 9  ;;  %v3982_v28 = vrot.slane %v8872_v37, 5  ;;  %v7790_v37 = vld [vmem:[#allocation2 + $0xb4] sm:$0xff]  }
 0x1ec   : > { %7505 = vmatprep.mubr.msk.bf16.mxu1 %vm1760_vm6, %v7782_v52  ;;  %v9075_v8 = vsel %vm8069_vm9, %v3970_v26, %v3971_v2  ;;  %v3985_v26 = vrot.slane %v8879_v48, 5  ;;  %v7791_v2 = vld [vmem:[#allocation2 + $0x78] sm:$0xff]   ;;  %v3818_v48 = vld [vmem:[#allocation2 + $0xc] sm:$0xe] }
 0x1ed   : > { %v9071_v52 = vsel %vm8069_vm9, %v6793_v54, %v3968_v49  ;;  %v9086_v49 = vsel %vm8069_vm9, %v6794_v62, %v3975_v27  ;;  %v3984_v54 = vrot.slane %v3982_v28, 4  ;;  %v3886_v27 = vrot.slane %v3884_v15, 4 }
 0x1ee   : > { %v9078_v6 = vpop.f32.mrf.mxu0  ;;  %v6781_v38 = vrot.slane %v3818_v48, 9 }
 0x1ef   : > { %10733 = vst [vmem:[#allocation7_spill] sm:$0xff] %v9078_v6  ;;  %v9105_v24 = vsel %vm8069_vm9, %v3984_v54, %v3985_v26  ;;  %v7819_v54 = vld [vmem:[#allocation2 + $0x1c] sm:$0xf]  ;;  %v9191_v6 = vld [vmem:[#allocation2 + $0x50] sm:$0x1] }
 0x1f0   : > { %10737 = vst [vmem:[#allocation11_spill] sm:$0xff] %v9105_v24  ;;  %v3891_v26 = vrot.slane %v7819_v54, 5  ;;  %v3885_v54 = vsel %vm8069_vm9, %v6781_v38, %v3884_v15 }
 0x1f2   : > { %7596 = vmatmul.mubr.msk.bf16.gmra.mxu0 %vm1760_vm6, %v7785_v19  ;;  %v7789_v19 = vld [vmem:[#allocation2 + $0x6c] sm:$0xff]  }
 0x1f3   : > { %7506 = vmatmul.mubr.msk.bf16.gmra.mxu1 %vm1760_vm6, %v7784_v13  ;;  %7599 = vmatprep.mubr.msk.bf16.mxu0 %vm1760_vm6, %v7787_v31  ;;  %v7788_v13 = vld [vmem:[#allocation2 + $0xa8] sm:$0xff]   ;;  %v6795_v31 = vrot.slane %v3832_v25, 9 }
 0x1f4   : > { %7509 = vmatprep.mubr.msk.bf16.mxu1 %vm1760_vm6, %v7786_v5  ;;  %v9092_v5 = vpop.f32.mrf.mxu0 }
 0x1f5   : > { %10735 = vst [vmem:[#allocation9_spill] sm:$0xff] %v9092_v5  ;;  %v9101_v62 = vsel %vm8069_vm9, %v6795_v31, %v3982_v28  ;;  %v6796_v31 = vrot.slane %v3833_v4, 9  ;;  %v7793_v4 = vld [vmem:[#allocation2 + $0x84] sm:$0xff]  }
 0x1f6   : > { %10736 = vst [vmem:[#allocation10_spill] sm:$0xff] %v9101_v62  ;;  %v9113_v28 = vpop.f32.mrf.mxu0 }
 0x1f7   : > { %10738 = vst [vmem:[#allocation12_spill] sm:$0xff] %v9113_v28  ;;  %v7799_v28 = vld [vmem:[#allocation2 + $0xb4] sm:$0xff]  }
 0x1f8   : > { %v9129_v48 = vpop.f32.mrf.mxu0 }
 0x1f9   : > { %10741 = vst [vmem:[#allocation15_spill] sm:$0xff] %v9129_v48  ;;  %v10748_v48 = vcombine.low %v8939_v29, %v8944_v47  ;;  %v9216_v29 = vld [vmem:[#allocation2 + $0x5c] sm:$0x1]  ;;  %v5390_v47 = vld [vmem:[#allocation2 + $0x54] sm:$0xe] }
 0x1fa   : > { %7600 = vmatmul.mubr.msk.bf16.gmra.mxu0 %vm1760_vm6, %v7789_v19  ;;  %10750 = vst [vmem:[#allocation23_spill] sm:$0xff] %v9216_v29 }
 0x1fb   : > { %7510 = vmatmul.mubr.msk.bf16.gmra.mxu1 %vm1760_vm6, %v7788_v13  ;;  %7603 = vmatprep.mubr.msk.bf16.mxu0 %vm1760_vm6, %v7791_v2  ;;  %v7818_v13 = vld [vmem:[#allocation2 + $0x14] sm:$0x1]  ;;  %v9123_v2 = vsel %vm8069_vm9, %v3991_v42, %v3992_v56  ;;  %v7820_v42 = vld [vmem:[#allocation2 + $0x20] sm:$0x1] }
 0x1fc   : > { %7513 = vmatprep.mubr.msk.bf16.mxu1 %vm1760_vm6, %v7790_v37  ;;  %v3887_v19 = vrot.slane %v7818_v13, 5  ;;  %v9119_v37 = vsel %vm8069_vm9, %v6796_v31, %v3989_v43  ;;  %10740 = vst [vmem:[#allocation14_spill] sm:$0xff] %v9123_v2  ;;  %v7792_v13 = vld [vmem:[#allocation2 + $0xc0] sm:$0xff]   ;;  %v3819_v43 = vld [vmem:[#allocation2 + $0x18] sm:$0xe]  ;;  %v3894_v56 = vrot.slane %v7820_v42, 5 }
 0x1fd   : > { %10739 = vst [vmem:[#allocation13_spill] sm:$0xff] %v9119_v37  ;;  %v6782_v38 = vrot.slane %v3819_v43, 9  ;;  %v7796_v42 = vld [vmem:[#allocation2 + $0x9c] sm:$0xff]   ;;  %v5385_v43 = vld [vmem:[#allocation2 + $0x18] sm:$0xe] }
 0x1fe   : > { %v3888_v18 = vsel %vm8069_vm9, %v3886_v27, %v3887_v19  ;;  %v7794_v27 = vld [vmem:[#allocation2 + $0x90] sm:$0xff]   ;;  %v3893_v19 = vrot.slane %v3891_v26, 4  ;;  %v5392_v2 = vld [vmem:[#allocation2 + $0x6c] sm:$0xe] }
 0x1ff   : > { %v6799_v25 = vcombine.low %v3885_v54, %v3888_v18  ;;  %v9148_v54 = vld [vmem:[#allocation2 + $0x34] sm:$0xf] }
 0x200   : > { %v3895_v15 = vsel %vm8069_vm9, %v3893_v19, %v3894_v56  ;;  %v7797_v19 = vld [vmem:[#allocation2 + $0xa8] sm:$0xff]  }
 0x202   : > { %7604 = vmatmul.mubr.msk.bf16.gmra.mxu0 %vm1760_vm6, %v7793_v4  ;;  %v5451_v4 = vrot.slane %v9137_v57, 5 }
 0x203   : > { %7514 = vmatmul.mubr.msk.bf16.gmra.mxu1 %vm1760_vm6, %v7792_v13  ;;  %7607 = vmatprep.mubr.msk.bf16.mxu0 %vm1760_vm6, %v7794_v27  ;;  %v3892_v13 = vsel %vm8069_vm9, %v6782_v38, %v3891_v26  ;;  %v5465_v38 = vrot.slane %v9148_v54, 5 }
 0x204   : > { %7553 = vmatprep.mubr.msk.bf16.mxu1 %vm1760_vm6, %v6799_v25  ;;  %v9135_v31 = vpop.f32.mrf.mxu0  ;;  %v9146_v25 = vld [vmem:[#allocation2 + $0x28] sm:$0xf]  ;;  %v6800_v27 = vcombine.low %v3892_v13, %v3895_v15  ;;  %v5453_v15 = vrot.slane %v5451_v4, 4  ;;  %v9165_v13 = vld [vmem:[#allocation2 + $0x2c] sm:$0x1] }
 0x205   : > { %10742 = vst [vmem:[#allocation16_spill] sm:$0xff] %v9135_v31  ;;  %v5458_v26 = vrot.slane %v9146_v25, 5  ;;  %v5467_v41 = vrot.slane %v5465_v38, 4  ;;  %v5388_v31 = vld [vmem:[#allocation2 + $0x3c] sm:$0xe] }
 0x206   : > { %v9141_v18 = vpop.f32.mrf.mxu0 }
 0x207   : > { %10743 = vst [vmem:[#allocation17_spill] sm:$0xff] %v9141_v18  ;;  %v5461_v18 = vrot.slane %v9165_v13, 5 }
 0x208   : > { %v9156_v56 = vpop.f32.mrf.mxu0 }
 0x209   : > { %10744 = vst [vmem:[#allocation18_spill] sm:$0xff] %v9156_v56 }
 0x20a   : > { %7608 = vmatmul.mubr.msk.bf16.gmra.mxu0 %vm1760_vm6, %v7796_v42  ;;  %v5386_v42 = vld [vmem:[#allocation2 + $0x24] sm:$0xe]  ;;  %v9178_v36 = vpop.f32.mrf.mxu0 }
 0x20b   : > { %7554 = vmatmul.mubr.msk.bf16.vlgmr.msra.gmra.mxu1 %vm1760_vm6, %v6800_v27  ;;  %v9167_v27 = vld [vmem:[#allocation2 + $0x38] sm:$0x1]  ;;  %7611 = vmatprep.mubr.msk.bf16.mxu0 %vm1760_vm6, %v7797_v19  ;;  %10745 = vst [vmem:[#allocation19_spill] sm:$0xff] %v9178_v36  ;;  %v6902_v19 = vrot.slane %v5385_v43, 9  ;;  %v5474_v36 = vrot.slane %v5472_v7, 4  ;;  %v7800_v43 = vld [vmem:[#allocation2 + $0xc0] sm:$0xff]  }
 0x20c   : > { %7620 = vmatpush3.bf16.msra.mxu1 %v8892_v14  ;;  %7557 = vmatprep.mubr.msk.bf16.mxu1 %vm1760_vm6, %v6801_v33  ;;  %v5454_v14 = vrot.slane %v9150_v0, 5  ;;  %v5460_v33 = vrot.slane %v5458_v26, 4  ;;  %v5468_v5 = vrot.slane %v9167_v27, 5 }
 0x20d   : > { %v5452_v34 = vsel %vm8069_vm9, %v6902_v19, %v5451_v4  ;;  %v10753_v4 = vrot.slane %v9171_v55, 5 }
 0x20e   : > { %v9186_v56 = vsel %vm8069_vm9, %v5453_v15, %v5454_v14  ;;  %v6903_v15 = vrot.slane %v5386_v42, 9  ;;  %v6904_v14 = vrot.slane %v5387_v10, 9  ;;  %v9209_v9 = vsel %vm8069_vm9, %v5460_v33, %v5461_v18 }
 0x20f   : > { %v9213_v10 = vsel %vm8069_vm9, %v5467_v41, %v5468_v5  ;;  %v5475_v42 = vrot.slane %v9180_v11, 5  ;;  %v5481_v33 = vrot.slane %v10753_v4, 4 }
 0x210   : > { %v9226_v18 = vsel %vm8069_vm9, %v6903_v15, %v5458_v26  ;;  %v9230_v41 = vsel %vm8069_vm9, %v6904_v14, %v5465_v38  ;;  %v10757_v38 = vrot.slane %v9176_v58, 5  ;;  %v9248_v14 = vld [vmem:[#allocation2 + $0x74] sm:$0x1] }
 0x211   : > { %10758 = vst [vmem:[#allocation27_spill] sm:$0xff] %v9248_v14  ;;  %v5503_v16 = vrot.slane %v9248_v14, 5 }
 0x212   : > { %v9195_v32 = vpop.f32.mrf.mxu1  ;;  %7612 = vmatmul.mubr.msk.bf16.gmra.mxu0 %vm1760_vm6, %v7799_v28  ;;  %v9205_v37 = vpop.f32.mrf.mxu0  ;;  %v10751_v28 = vcombine.low %v8957_v40, %v8961_v30  ;;  %v9236_v40 = vld [vmem:[#allocation2 + $0x68] sm:$0x1]  ;;  %v5391_v30 = vld [vmem:[#allocation2 + $0x60] sm:$0xe]  ;;  %v5495_v15 = vrot.slane %v10757_v38, 4 }
 0x213   : > { %10747 = vst [vmem:[#allocation21_spill] sm:$0xff] %v9195_v32  ;;  %7558 = vmatmul.mubr.msk.bf16.gmra.mxu1 %vm1760_vm6, %v10748_v48  ;;  %10749 = vst [vmem:[#allocation22_spill] sm:$0xff] %v9205_v37  ;;  %7615 = vmatprep.mubr.msk.bf16.mxu0 %vm1760_vm6, %v7800_v43  ;;  %v6920_v48 = vcombine.low %v5452_v34, %v9186_v56  ;;  %v6905_v43 = vrot.slane %v5388_v31, 9  ;;  %v9242_v34 = vsel %vm8069_vm9, %v5474_v36, %v5475_v42  ;;  %v4655_v37 = vld [vmem:[#allocation2 + $0x18] sm:$0xf] }
 0x214   : > { %7561 = vmatprep.mubr.msk.bf16.mxu1 %vm1760_vm6, %v10751_v28  ;;  %v9232_v5 = vpop.f32.mrf.mxu1  ;;  %10754 = vst [vmem:[#allocation25_spill] sm:$0xff] %v9236_v40  ;;  %v9238_v19 = vpop.f32.mrf.mxu0  ;;  %v10756_v56 = vrot.slane %v9174_v45, 5  ;;  %v5482_v31 = vrot.slane %v9191_v6, 5  ;;  %v10759_v36 = vrot.slane %v9182_v46, 5  ;;  %v5489_v28 = vrot.slane %v9216_v29, 5 }
 0x215   : > { %10752 = vst [vmem:[#allocation24_spill] sm:$0xff] %v9232_v5  ;;  %10755 = vst [vmem:[#allocation26_spill] sm:$0xff] %v9238_v19  ;;  %v9257_v5 = vld [vmem:[#allocation2 + $0x7c] sm:$0xf]  ;;  %v9263_v38 = vsel %vm8069_vm9, %v6905_v43, %v5472_v7  ;;  %v6906_v19 = vrot.slane %v5389_v22, 9  ;;  %v5496_v4 = vrot.slane %v9236_v40, 5  ;;  %v10765_v29 = vcombine.low %v8965_v21, %v8971_v12 }
 0x216   : > { %v5488_v26 = vrot.slane %v10756_v56, 4  ;;  %v5502_v42 = vrot.slane %v10759_v36, 4  ;;  %10760 = vst [vmem:[#allocation28_spill] sm:$0xff] %v9257_v5  ;;  %v7801_v56 = vld [vmem:[#allocation2 + $0xcc] sm:$0xff]   ;;  %v9259_v32 = vpop.f32.mrf.mxu0  ;;  %v9267_v24 = vpop.f32.mrf.mxu1  ;;  %v9273_v62 = vsel %vm8069_vm9, %v5481_v33, %v5482_v31  ;;  %v9276_v7 = vld [vmem:[#allocation2 + $0x88] sm:$0xf]  ;;  %v10768_v21 = vcombine.low %v8978_v61, %v8982_v35 }
 0x217   : > { %10761 = vst [vmem:[#allocation29_spill] sm:$0xff] %v9259_v32  ;;  %10762 = vst [vmem:[#allocation30_spill] sm:$0xff] %v9267_v24  ;;  %v6907_v32 = vrot.slane %v5390_v47, 9  ;;  %v6908_v43 = vrot.slane %v5391_v30, 9  ;;  %v9284_v24 = vsel %vm8069_vm9, %v5495_v15, %v5496_v4  ;;  %v6909_v40 = vrot.slane %v5392_v2, 9 }
 0x218   : > { %10763 = vst [vmem:[#allocation31_spill] sm:$0xff] %v9276_v7  ;;  %v9280_v22 = vsel %vm8069_vm9, %v5488_v26, %v5489_v28  ;;  %v5393_v36 = vld [vmem:[#allocation2 + $0x78] sm:$0xe]  ;;  %v9288_v33 = vsel %vm8069_vm9, %v5502_v42, %v5503_v16  ;;  %v5507_v47 = vrot.slane %v9257_v5, 5  ;;  %v4704_v31 = vshrl.u32 %v4655_v37, 16  ;;  %v9296_v30 = vpop.f32.mrf.mxu0  ;;  %v9312_v12 = vpop.f32.mrf.mxu1 }
 0x219   : > { %10764 = vst [vmem:[#allocation32_spill] sm:$0xff] %v9288_v33  ;;  %v4707_v14 = vshll.u32 %v4655_v37, 16  ;;  %10766 = vst [vmem:[#allocation33_spill] sm:$0xff] %v9296_v30  ;;  %v10767_v2 = vrot.slane %v9171_v55, 5  ;;  %v5514_v16 = vrot.slane %v9276_v7, 5  ;;  %v4713_v15 = vshll.u32 %v9137_v57, 16 }
 0x21a   : > { %7616 = vmatmul.mubr.msk.bf16.gmra.mxu0 %vm1760_vm6, %v7801_v56  ;;  %v4717_v37 = vshrl.u32 %v9137_v57, 16  ;;  %10769 = vst [vmem:[#allocation34_spill] sm:$0xff] %v9312_v12  ;;  %v10771_v28 = vrot.slane %v9176_v58, 5  ;;  %v10772_v61 = vrot.slane %v9182_v46, 5  ;;  %v6910_v4 = vrot.slane %v5393_v36, 9 }
 0x21b   : > { %7562 = vmatmul.mubr.msk.bf16.gmra.mxu1 %vm1760_vm6, %v10765_v29  ;;  %v9302_v26 = vsel %vm8069_vm9, %v6906_v19, %v10767_v2  ;;  %7655 = vmatprep.mubr.msk.bf16.mxu0 %vm1760_vm6, %v6920_v48  ;;  %v10770_v29 = vrot.slane %v9174_v45, 5  ;;  %v9332_v48 = vld [vmem:[#allocation2 + $0x80] sm:$0x1]  ;;  %v5394_v2 = vld [vmem:[#allocation2 + $0x84] sm:$0xe]  ;;  %v5516_v12 = vrot.slane %v5514_v16, 4 }
 0x21c   : > { %7565 = vmatprep.mubr.msk.bf16.mxu1 %vm1760_vm6, %v10768_v21  ;;  %v9324_v57 = vsel %vm8069_vm9, %v6908_v43, %v10771_v28  ;;  %v9330_v35 = vsel %vm8069_vm9, %v6909_v40, %v10772_v61  ;;  %10774 = vst [vmem:[#allocation36_spill] sm:$0xff] %v9332_v48  ;;  %v4658_v21 = vld [vmem:[#allocation2 + $0x24] sm:$0xf]  ;;  %v9344_v40 = vsel %vm8069_vm9, %v6910_v4, %v5507_v47  ;;  %v9346_v36 = vld [vmem:[#allocation2 + $0x8c] sm:$0x1]  ;;  %v4706_v28 = vrot.slane %v4704_v31, 4 }
 0x21d   : > { %v9318_v19 = vsel %vm8069_vm9, %v6907_v32, %v10770_v29  ;;  %10773 = vst [vmem:[#allocation35_spill] sm:$0xff] %v9330_v35  ;;  %v5509_v29 = vrot.slane %v5507_v47, 4  ;;  %v4709_v61 = vrot.slane %v4707_v14, 5  ;;  %v5510_v32 = vrot.slane %v9332_v48, 5  ;;  %v9353_v43 = vld [vmem:[#allocation2 + $0x94] sm:$0xf] }
 0x21e   : > { %v9348_v42 = vpop.f32.mrf.mxu0  ;;  %v9351_v56 = vrot.slane %v4713_v15, 5  ;;  %v4719_v30 = vrot.slane %v4717_v37, 4  ;;  %v4728_v5 = vshrl.u32 %v4658_v21, 16  ;;  %v4731_v4 = vshll.u32 %v4658_v21, 16  ;;  %v4661_v31 = vld [vmem:[#allocation2 + $0x30] sm:$0xf] }
 0x21f   : > { %10775 = vst [vmem:[#allocation37_spill] sm:$0xff] %v9348_v42  ;;  %v4737_v47 = vshll.u32 %v9146_v25, 16  ;;  %v4741_v46 = vshrl.u32 %v9146_v25, 16  ;;  %v6911_v42 = vrot.slane %v5394_v2, 9  ;;  %v5517_v48 = vrot.slane %v9346_v36, 5 }
 0x220   : > { %v9355_v7 = vpop.f32.mrf.mxu1  ;;  %v9359_v14 = vpop.f32.mrf.mxu0  ;;  %v4761_v15 = vshll.u32 %v9148_v54, 16  ;;  %v4765_v37 = vshrl.u32 %v9148_v54, 16  ;;  %v4710_v21 = vor.u32 %v4709_v61, %v4706_v28  ;;  %v4723_v35 = vshll.u32 %v9150_v0, 16 }
 0x221   : > { %10776 = vst [vmem:[#allocation38_spill] sm:$0xff] %v9355_v7  ;;  %10777 = vst [vmem:[#allocation39_spill] sm:$0xff] %v9359_v14  ;;  %v9368_v7 = vsel %vm8069_vm9, %v5509_v29, %v5510_v32  ;;  %v5521_v25 = vrot.slane %v9353_v43, 5  ;;  %v10779_v2 = vcombine.low %v8993_v20, %v8997_v17  ;;  %v10780_v14 = vcombine.low %v9226_v18, %v9209_v9  ;;  %v5395_v18 = vld [vmem:[#allocation2 + $0x90] sm:$0xe] }
 0x222   : > { %v9364_v33 = vpop.f32.mrf.mxu1  ;;  %v9380_v54 = vpop.f32.mrf.mxu0  ;;  %v9384_v32 = vsel %vm8069_vm9, %v5516_v12, %v5517_v48  ;;  %v4720_v0 = vor.u32 %v4719_v30, %v9351_v56  ;;  %v4752_v29 = vshrl.u32 %v4661_v31, 16  ;;  %v4755_v28 = vshll.u32 %v4661_v31, 16 }
 0x223   : > { %10778 = vst [vmem:[#allocation40_spill] sm:$0xff] %v9364_v33  ;;  %7566 = vmatmul.mubr.msk.bf16.gmra.mxu1 %vm1760_vm6, %v10779_v2  ;;  %7656 = vmatmul.mubr.msk.bf16.vlgmr.msra.gmra.mxu0 %vm1760_vm6, %v10780_v14  ;;  %10781 = vst [vmem:[#allocation41_spill] sm:$0xff] %v9380_v54  ;;  %v10782_v20 = vcombine.low %v9009_v63, %v9013_v44  ;;  %v10783_v17 = vcombine.low %v9230_v41, %v9213_v10  ;;  %v4730_v61 = vrot.slane %v4728_v5, 4  ;;  %v9405_v44 = vld [vmem:[#allocation2 + $0x98] sm:$0x1] }
 0x224   : > { %v9395_v9 = vpop.f32.mrf.mxu1  ;;  %v4733_v12 = vrot.slane %v4731_v4, 5  ;;  %v9397_v48 = vrot.slane %v4737_v47, 5  ;;  %v4743_v30 = vrot.slane %v4741_v46, 4  ;;  %v9403_v63 = vsel %vm8069_vm9, %v6911_v42, %v5514_v16  ;;  %v9407_v10 = vld [vmem:[#allocation2 + $0xa0] sm:$0xf] }
 0x225   : > { %7569 = vmatprep.mubr.msk.bf16.mxu1 %vm1760_vm6, %v10782_v20  ;;  %7659 = vmatprep.mubr.msk.bf16.mxu0 %vm1760_vm6, %v10783_v17  ;;  %10784 = vst [vmem:[#allocation42_spill] sm:$0xff] %v9395_v9  ;;  %v9409_v41 = vrot.slane %v4761_v15, 5  ;;  %v4767_v14 = vrot.slane %v4765_v37, 4  ;;  %v4711_v4 = vrot.slane %v4710_v21, 4  ;;  %v4725_v47 = vrot.slane %v4723_v35, 5  ;;  %v9413_v20 = vpop.f32.mrf.mxu0 }
 0x226   : > { %v5523_v46 = vrot.slane %v5521_v25, 4  ;;  %v4664_v2 = vld [vmem:[#allocation2 + $0x3c] sm:$0xf]  ;;  %v4721_v17 = vrot.slane %v4720_v0, 4  ;;  %v6912_v31 = vrot.slane %v5395_v18, 9  ;;  %v4754_v16 = vrot.slane %v4752_v29, 4  ;;  %v9417_v33 = vpop.f32.mrf.mxu1 }
 0x227   : > { %v4757_v42 = vrot.slane %v4755_v28, 5  ;;  %v9415_v9 = vld [vmem:[#allocation2 + $0xac] sm:$0xf]  ;;  %10785 = vst [vmem:[#allocation43_spill] sm:$0xff] %v9417_v33  ;;  %v5524_v15 = vrot.slane %v9405_v44, 5  ;;  %v4734_v37 = vor.u32 %v4733_v12, %v4730_v61  ;;  %v4744_v54 = vor.u32 %v4743_v30, %v9397_v48 }
 0x228   : > { %v5396_v5 = vld [vmem:[#allocation2 + $0x9c] sm:$0xe]  ;;  %v5528_v35 = vrot.slane %v9407_v10, 5  ;;  %v9424_v21 = vsel %vm8069_vm9, %v6912_v31, %v5521_v25  ;;  %v4768_v0 = vor.u32 %v4767_v14, %v9409_v41  ;;  %v4776_v29 = vshrl.u32 %v4664_v2, 16  ;;  %v5398_v33 = vld [vmem:[#allocation2 + $0xb4] sm:$0xe] }
 0x229   : > { %v4779_v28 = vshll.u32 %v4664_v2, 16  ;;  %v4716_v18 = vsel %vm8043_vm5, %v4711_v4, %v9351_v56  ;;  %v9432_v61 = vsel %vm8069_vm9, %v5523_v46, %v5524_v15  ;;  %v4747_v12 = vshll.u32 %v9165_v13, 16  ;;  %v9448_v4 = vld [vmem:[#allocation2 + $0xa4] sm:$0x1] }
 0x22a   : > { %v10712_v30 = vrot.slane %v9415_v9, 5  ;;  %v10786_v25 = vcombine.low %v9024_v50, %v9028_v53  ;;  %v10787_v31 = vcombine.low %v9263_v38, %v9242_v34  ;;  %v4726_v56 = vsel %vm8043_vm5, %v4721_v17, %v4725_v47 }
 0x22b   : > { %v9444_v14 = vpop.f32.mrf.mxu0  ;;  %v6913_v13 = vrot.slane %v5396_v5, 9  ;;  %v4758_v46 = vor.u32 %v4757_v42, %v4754_v16  ;;  %v4771_v2 = vshll.u32 %v9167_v27, 16  ;;  %v10788_v50 = vcombine.low %v9041_v59, %v9045_v51  ;;  %v9459_v34 = vpop.f32.mrf.mxu1  ;;  %v9464_v42 = vld [vmem:[#allocation2 + $0xb0] sm:$0x1] }
 0x22c   : > { %7570 = vmatmul.mubr.msk.bf16.gmra.mxu1 %vm1760_vm6, %v10786_v25  ;;  %7660 = vmatmul.mubr.msk.bf16.gmra.mxu0 %vm1760_vm6, %v10787_v31  ;;  %v10789_v53 = vcombine.low %v9302_v26, %v9273_v62  ;;  %10790 = vst [vmem:[#allocation44_spill] sm:$0xff] %v9459_v34  ;;  %v4735_v38 = vrot.slane %v4734_v37, 4  ;;  %v4745_v47 = vrot.slane %v4744_v54, 4  ;;  %v5530_v17 = vrot.slane %v5528_v35, 4 }
 0x22d   : > { %7573 = vmatprep.mubr.msk.bf16.mxu1 %vm1760_vm6, %v10788_v50  ;;  %v4785_v5 = vshll.u32 %v9152_v3, 16  ;;  %v9462_v16 = vpop.f32.mrf.mxu0  ;;  %v4769_v27 = vrot.slane %v4768_v0, 4  ;;  %v4778_v59 = vrot.slane %v4776_v29, 4  ;;  %v4781_v51 = vrot.slane %v4779_v28, 5  ;;  %v9467_v25 = vpop.f32.mrf.mxu1  ;;  %v5397_v50 = vld [vmem:[#allocation2 + $0xa8] sm:$0xe] }
 0x22e   : > { %7663 = vmatprep.mubr.msk.bf16.mxu0 %vm1760_vm6, %v10789_v53  ;;  %v4789_v15 = vshrl.u32 %v9152_v3, 16  ;;  %10791 = vst [vmem:[#allocation45_spill] sm:$0xff] %v9467_v25  ;;  %v4749_v26 = vrot.slane %v4747_v12, 5  ;;  %v5531_v54 = vrot.slane %v9448_v4, 5  ;;  %v5537_v37 = vrot.slane %v10712_v30, 4 }
 0x22f   : > { %v9474_v31 = vpop.f32.mrf.mxu0  ;;  %v9476_v0 = vcombine.low %v4716_v18, %v4726_v56  ;;  %v9480_v29 = vsel %vm8069_vm9, %v6913_v13, %v5528_v35  ;;  %v4759_v3 = vrot.slane %v4758_v46, 4  ;;  %v4773_v28 = vrot.slane %v4771_v2, 5  ;;  %v9482_v53 = vld [vmem:[#allocation2 + $0xb8] sm:$0xf]  ;;  %v9484_v62 = vpop.f32.mrf.mxu1 }
 0x230   : > { %10792 = vst [vmem:[#allocation46_spill] sm:$0xff] %v9482_v53  ;;  %10793 = vst [vmem:[#allocation47_spill] sm:$0xff] %v9484_v62  ;;  %v4740_v12 = vsel %vm8043_vm5, %v4735_v38, %v9397_v48  ;;  %v4750_v30 = vsel %vm8043_vm5, %v4745_v47, %v4749_v26  ;;  %v9493_v18 = vsel %vm8069_vm9, %v5530_v17, %v5531_v54  ;;  %v5538_v35 = vrot.slane %v9464_v42, 5  ;;  %v4667_v17 = vld [vmem:[#allocation2 + $0x48] sm:$0xf] }
 0x231   : > { %v4774_v56 = vsel %vm8043_vm5, %v4769_v27, %v4773_v28  ;;  %v4782_v13 = vor.u32 %v4781_v51, %v4778_v59  ;;  %v9498_v46 = vrot.slane %v4785_v5, 5  ;;  %v4791_v2 = vrot.slane %v4789_v15, 4  ;;  %v9514_v27 = vpop.f32.mrf.mxu1  ;;  %v9516_v59 = vpop.f32.mrf.mxu0  ;;  %v9523_v15 = vld [vmem:[#allocation2 + $0xbc] sm:$0x1] }
 0x232   : > { %v6914_v62 = vrot.slane %v5397_v50, 9  ;;  %v9502_v48 = vsel %vm8069_vm9, %v5537_v37, %v5538_v35  ;;  %v4795_v38 = vshll.u32 %v9180_v11, 16  ;;  %v5542_v47 = vrot.slane %v9482_v53, 5  ;;  %10796 = vst [vmem:[#allocation48_spill] sm:$0xff] %v9514_v27  ;;  %10797 = vst [vmem:[#allocation49_spill] sm:$0xff] %v9523_v15 }
 0x233   : > { %v10794_v26 = vcombine.low %v9056_v1, %v9060_v23  ;;  %v10795_v5 = vcombine.low %v9318_v19, %v9280_v22  ;;  %v9518_v51 = vcombine.low %v4740_v12, %v4750_v30  ;;  %v4764_v11 = vsel %vm8043_vm5, %v4759_v3, %v9409_v41  ;;  %v4670_v3 = vld [vmem:[#allocation2 + $0x54] sm:$0xf]  ;;  %v4676_v30 = vld [vmem:[#allocation2 + $0x6c] sm:$0xf] }
 0x234   : > { %v4809_v1 = vshll.u32 %v9171_v55, 16  ;;  %v4813_v23 = vshrl.u32 %v9171_v55, 16  ;;  %v10798_v22 = vcombine.low %v9071_v52, %v9075_v8  ;;  %v10799_v19 = vcombine.low %v9324_v57, %v9284_v24 }
 0x235   : > { %7574 = vmatmul.mubr.msk.bf16.gmra.mxu1 %vm1760_vm6, %v10794_v26  ;;  %7664 = vmatmul.mubr.msk.bf16.gmra.mxu0 %vm1760_vm6, %v10795_v5  ;;  %v9537_v41 = vcombine.low %v4764_v11, %v4774_v56  ;;  %v10800_v54 = vrot.slane %v9415_v9, 5  ;;  %v6915_v37 = vrot.slane %v5398_v33, 9  ;;  %v9547_v8 = vrot.slane %v4782_v13, 4  ;;  %v9565_v5 = vld [vmem:[#allocation2 + $0xc4] sm:$0xf] }
 0x236   : > { %7577 = vmatprep.mubr.msk.bf16.mxu1 %vm1760_vm6, %v10798_v22  ;;  %7667 = vmatprep.mubr.msk.bf16.mxu0 %vm1760_vm6, %v10799_v19  ;;  %v4792_v24 = vor.u32 %v4791_v2, %v9498_v46  ;;  %v4800_v57 = vshrl.u32 %v4667_v17, 16  ;;  %v9550_v28 = vrot.slane %v4795_v38, 5  ;;  %v5545_v12 = vrot.slane %v9523_v15, 5  ;;  %v9557_v35 = vpop.f32.mrf.mxu1  ;;  %v4673_v38 = vld [vmem:[#allocation2 + $0x60] sm:$0xf]  ;;  %10803 = vst [vmem:[#allocation52_spill] sm:$0xff] %v9565_v5 }
 0x237   : > { %v9543_v55 = vsel %vm8069_vm9, %v6914_v62, %v10800_v54  ;;  %v9554_v50 = vsel %vm8069_vm9, %v6915_v37, %v5542_v47  ;;  %v4803_v62 = vshll.u32 %v4667_v17, 16  ;;  %10801 = vst [vmem:[#allocation50_spill] sm:$0xff] %v9557_v35  ;;  %v9559_v33 = vpop.f32.mrf.mxu0  ;;  %v9561_v56 = vrot.slane %v4809_v1, 5  ;;  %v9578_v35 = vld [vmem:[#allocation2 + $0xc0] sm:$0xe]  ;;  %v10808_v15 = vld [vmem:[#allocation35_spill] sm:$0xff] }
 0x238   : > { %10802 = vst [vmem:[#allocation51_spill] sm:$0xff] %v9559_v33  ;;  %v4815_v13 = vrot.slane %v4813_v23, 4  ;;  %v4833_v2 = vshll.u32 %v9174_v45, 16  ;;  %v4837_v26 = vshrl.u32 %v9174_v45, 16  ;;  %v4824_v11 = vshrl.u32 %v4670_v3, 16  ;;  %v9569_v54 = vpop.f32.mrf.mxu1 }
 0x239   : > { %v4827_v22 = vshll.u32 %v4670_v3, 16  ;;  %v4857_v19 = vshll.u32 %v9176_v58, 16  ;;  %v4861_v17 = vshrl.u32 %v9176_v58, 16  ;;  %10804 = vst [vmem:[#allocation53_spill] sm:$0xff] %v9569_v54  ;;  %v9571_v37 = vpop.f32.mrf.mxu0  ;;  %v4788_v1 = vsel %vm8043_vm5, %v9547_v8, %v9498_v46  ;;  %v10806_v54 = vld [vmem:[#allocation8_spill] sm:$0xff] }
 0x23a   : > { %10805 = vst [vmem:[#allocation54_spill] sm:$0xff] %v9571_v37  ;;  %v4793_v23 = vrot.slane %v4792_v24, 4  ;;  %v5544_v45 = vrot.slane %v5542_v47, 4  ;;  %v4802_v52 = vrot.slane %v4800_v57, 4  ;;  %v4805_v27 = vrot.slane %v4803_v62, 5  ;;  %v10809_v37 = vld [vmem:[#allocation32_spill] sm:$0xff]  ;;  %v9588_v46 = vpop.f32.mrf.mxu1 }
 0x23b   : > { %v4819_v3 = vshll.u32 %v9191_v6, 16  ;;  %v4848_v25 = vshrl.u32 %v4673_v38, 16  ;;  %v4851_v58 = vshll.u32 %v4673_v38, 16  ;;  %v10807_v34 = vcombine.low %v9086_v49, %v10806_v54  ;;  %10811 = vst [vmem:[#allocation8_spill] sm:$0xff] %v9588_v46  ;;  %v9590_v47 = vpop.f32.mrf.mxu0  ;;  %v10813_v62 = vld [vmem:[#allocation10_spill] sm:$0xff]  ;;  %v10814_v49 = vld [vmem:[#allocation11_spill] sm:$0xff] }
 0x23c   : > { %v10810_v33 = vcombine.low %v10808_v15, %v10809_v37  ;;  %10812 = vst [vmem:[#allocation35_spill] sm:$0xff] %v9590_v47  ;;  %v4816_v6 = vor.u32 %v4815_v13, %v9561_v56  ;;  %v5549_v8 = vrot.slane %v9565_v5, 5  ;;  %v9594_v24 = vrot.slane %v4833_v2, 5  ;;  %v10823_v5 = vld [vmem:[#allocation14_spill] sm:$0xff] }
 0x23d   : > { %7578 = vmatmul.mubr.msk.bf16.gmra.mxu1 %vm1760_vm6, %v10807_v34  ;;  %v4839_v57 = vrot.slane %v4837_v26, 4  ;;  %v10815_v38 = vcombine.low %v10813_v62, %v10814_v49  ;;  %v10816_v34 = vcombine.low %v9344_v40, %v9368_v7  ;;  %v4826_v15 = vrot.slane %v4824_v11, 4  ;;  %v9614_v40 = vld [vmem:[#allocation2 + $0xc8] sm:$0x1] }
 0x23e   : > { %7668 = vmatmul.mubr.msk.bf16.gmra.mxu0 %vm1760_vm6, %v10810_v33  ;;  %v4829_v33 = vrot.slane %v4827_v22, 5  ;;  %v9604_v54 = vrot.slane %v4857_v19, 5  ;;  %v4863_v13 = vrot.slane %v4861_v17, 4  ;;  %v9608_v2 = vsel %vm8069_vm9, %v5544_v45, %v5545_v12  ;;  %v9616_v19 = vpop.f32.mrf.mxu1  ;;  %v9618_v17 = vpop.f32.mrf.mxu0 }
 0x23f   : > { %7581 = vmatprep.mubr.msk.bf16.mxu1 %vm1760_vm6, %v10815_v38  ;;  %7671 = vmatprep.mubr.msk.bf16.mxu0 %vm1760_vm6, %v10816_v34  ;;  %v6916_v26 = vrot.slane %v9578_v35, 9  ;;  %v4872_v37 = vshrl.u32 %v4676_v30, 16  ;;  %v4875_v62 = vshll.u32 %v4676_v30, 16  ;;  %v4798_v49 = vsel %vm8043_vm5, %v4793_v23, %v9550_v28  ;;  %10817 = vst [vmem:[#allocation32_spill] sm:$0xff] %v9616_v19  ;;  %10818 = vst [vmem:[#allocation10_spill] sm:$0xff] %v9618_v17  ;;  %v10819_v30 = vld [vmem:[#allocation23_spill] sm:$0xff] }
 0x240   : > { %v4806_v7 = vor.u32 %v4805_v27, %v4802_v52  ;;  %v4850_v11 = vrot.slane %v4848_v25, 4  ;;  %v4853_v22 = vrot.slane %v4851_v58, 5  ;;  %v4817_v38 = vrot.slane %v4816_v6, 4  ;;  %v10820_v28 = vld [vmem:[#allocation20_spill] sm:$0xff]  ;;  %v10821_v17 = vld [vmem:[#allocation25_spill] sm:$0xff] }
 0x241   : > { %v4821_v12 = vrot.slane %v4819_v3, 5  ;;  %v5551_v45 = vrot.slane %v5549_v8, 4  ;;  %v4840_v35 = vor.u32 %v4839_v57, %v9594_v24  ;;  %v4830_v34 = vor.u32 %v4829_v33, %v4826_v15  ;;  %v4679_v15 = vld [vmem:[#allocation2 + $0x78] sm:$0xf] }
 0x242   : > { %v4843_v46 = vshll.u32 %v10819_v30, 16  ;;  %v4864_v47 = vor.u32 %v4863_v13, %v9604_v54  ;;  %v4881_v27 = vshll.u32 %v10820_v28, 16  ;;  %v5552_v52 = vrot.slane %v9614_v40, 5  ;;  %v9631_v30 = vpop.f32.mrf.mxu0  ;;  %v10822_v13 = vld [vmem:[#allocation13_spill] sm:$0xff] }
 0x243   : > { %v4874_v25 = vrot.slane %v4872_v37, 4  ;;  %v4877_v23 = vrot.slane %v4875_v62, 5  ;;  %v4885_v58 = vshrl.u32 %v10820_v28, 16  ;;  %v4807_v3 = vrot.slane %v4806_v7, 4  ;;  %v9629_v33 = vpop.f32.mrf.mxu1 }
 0x244   : > { %v4854_v19 = vor.u32 %v4853_v22, %v4850_v11  ;;  %v4867_v57 = vshll.u32 %v10821_v17, 16  ;;  %v10824_v53 = vcombine.low %v10822_v13, %v10823_v5  ;;  %v10825_v37 = vcombine.low %v9403_v63, %v9384_v32  ;;  %v9659_v17 = vpop.f32.mrf.mxu0 }
 0x245   : > { %v9641_v62 = vcombine.low %v4788_v1, %v4798_v49  ;;  %v4822_v7 = vsel %vm8043_vm5, %v4817_v38, %v4821_v12  ;;  %v9647_v11 = vsel %vm8069_vm9, %v5551_v45, %v5552_v52  ;;  %v4841_v22 = vrot.slane %v4840_v35, 4  ;;  %v9657_v49 = vpop.f32.mrf.mxu1  ;;  %v10829_v52 = vld [vmem:[#allocation28_spill] sm:$0xff] }
 0x246   : > { %7582 = vmatmul.mubr.msk.bf16.gmra.mxu1 %vm1760_vm6, %v10824_v53  ;;  %7672 = vmatmul.mubr.msk.bf16.gmra.mxu0 %vm1760_vm6, %v10825_v37  ;;  %v10826_v53 = vcombine.low %v9424_v21, %v9432_v61  ;;  %v4831_v32 = vrot.slane %v4830_v34, 4  ;;  %v4845_v63 = vrot.slane %v4843_v46, 5  ;;  %v4865_v5 = vrot.slane %v4864_v47, 4  ;;  %10827 = vst [vmem:[#allocation11_spill] sm:$0xff] %v9657_v49  ;;  %v9670_v34 = vpop.f32.mrf.mxu0 }
 0x247   : > { %7621 = vmatprep.mubr.msk.bf16.mxu1 %vm1760_vm6, %v9476_v0  ;;  %v9655_v1 = vrot.slane %v4881_v27, 5  ;;  %v4878_v38 = vor.u32 %v4877_v23, %v4874_v25  ;;  %v4887_v12 = vrot.slane %v4885_v58, 4  ;;  %v4896_v45 = vshrl.u32 %v4679_v15, 16  ;;  %v9668_v47 = vpop.f32.mrf.mxu1  ;;  %v4682_v23 = vld [vmem:[#allocation2 + $0x84] sm:$0xf] }
 0x248   : > { %7675 = vmatprep.mubr.msk.bf16.mxu0 %vm1760_vm6, %v10826_v53  ;;  %v4899_v35 = vshll.u32 %v4679_v15, 16  ;;  %v4812_v0 = vsel %vm8043_vm5, %v4807_v3, %v9561_v56  ;;  %v9666_v21 = vsel %vm8069_vm9, %v6916_v26, %v5549_v8  ;;  %v4855_v61 = vrot.slane %v4854_v19, 4  ;;  %10828 = vst [vmem:[#allocation23_spill] sm:$0xff] %v9668_v47  ;;  %v10830_v19 = vld [vmem:[#allocation27_spill] sm:$0xff]  ;;  %v9688_v15 = vpop.f32.mrf.mxu0  ;;  %v9693_v53 = vld [vmem:[#allocation2 + $0xd0] sm:$0xf] }
 0x249   : > { %v4869_v46 = vrot.slane %v4867_v57, 5  ;;  %v4846_v27 = vsel %vm8043_vm5, %v4841_v22, %v4845_v63  ;;  %v4905_v25 = vshll.u32 %v10829_v52, 16  ;;  %v4909_v56 = vshrl.u32 %v10829_v52, 16  ;;  %v9686_v57 = vpop.f32.mrf.mxu1  ;;  %10832 = vst [vmem:[#allocation25_spill] sm:$0xff] %v9688_v15 }
 0x24a   : > { %v9678_v58 = vcombine.low %v4812_v0, %v4822_v7  ;;  %v4836_v8 = vsel %vm8043_vm5, %v4831_v32, %v9594_v24  ;;  %v4891_v3 = vshll.u32 %v10830_v19, 16  ;;  %10831 = vst [vmem:[#allocation20_spill] sm:$0xff] %v9686_v57  ;;  %v9690_v13 = vrot.slane %v4878_v38, 4  ;;  %v10833_v32 = vld [vmem:[#allocation36_spill] sm:$0xff]  ;;  %v9701_v52 = vpop.f32.mrf.mxu0 }
 0x24b   : > { %v4870_v26 = vsel %vm8043_vm5, %v4865_v5, %v4869_v46  ;;  %v4888_v37 = vor.u32 %v4887_v12, %v9655_v1  ;;  %v4898_v22 = vrot.slane %v4896_v45, 4  ;;  %v4901_v7 = vrot.slane %v4899_v35, 5  ;;  %v7419_v46 = vpop.f32.mrf.mxu1 }
 0x24c   : > { %v9695_v63 = vcombine.low %v4836_v8, %v4846_v27  ;;  %v4860_v24 = vsel %vm8043_vm5, %v4855_v61, %v9604_v54  ;;  %v4915_v5 = vshll.u32 %v10833_v32, 16  ;;  %v4920_v0 = vshrl.u32 %v4682_v23, 16  ;;  %v10835_v27 = vld [vmem:[#allocation31_spill] sm:$0xff] }
 0x24d   : > { %v10834_v38 = vcombine.low %v9480_v29, %v9493_v18  ;;  %v9709_v12 = vrot.slane %v4905_v25, 5  ;;  %v4911_v45 = vrot.slane %v4909_v56, 4  ;;  %v4923_v35 = vshll.u32 %v4682_v23, 16  ;;  %v10836_v61 = vld [vmem:[#allocation3_spill] sm:$0xff]  ;;  %v5400_v18 = vld [vmem:[#allocation2 + $0xcc] sm:$0xe]  ;;  %v2138_v56 = vpop.f32.mrf.mxu1  ;;  %v9724_v23 = vpop.f32.mrf.mxu0 }
 0x24e   : > { %7622 = vmatmul.mubr.msk.bf16.vlgmr.msra.gmra.mxu1 %vm1760_vm6, %v9518_v51  ;;  %v4929_v54 = vshll.u32 %v10835_v27, 16  ;;  %v2147_v8 = vadd.f32 %v7419_v46, %v10836_v61  ;;  %v10837_v19 = vcombine.low %v9543_v55, %v9502_v48  ;;  %v9719_v51 = vcombine.low %v4860_v24, %v4870_v26  ;;  %v9733_v26 = vld [vmem:[#allocation2 + $0xd4] sm:$0x1]  ;;  %v4685_v61 = vld [vmem:[#allocation2 + $0x90] sm:$0xf] }
 0x24f   : > { %7676 = vmatmul.mubr.msk.bf16.gmra.mxu0 %vm1760_vm6, %v10834_v38  ;;  %7625 = vmatprep.mubr.msk.bf16.mxu1 %vm1760_vm6, %v9537_v41  ;;  %v9721_v29 = vrot.slane %v4891_v3, 5  ;;  %v5556_v25 = vrot.slane %v9693_v53, 5  ;;  %v9730_v32 = vrot.slane %v4888_v37, 4  ;;  %v4902_v48 = vor.u32 %v4901_v7, %v4898_v22  ;;  %v10838_v3 = vld [vmem:[#allocation4_spill] sm:$0xff]  ;;  %v7420_v6 = vpop.f32.mrf.mxu1  ;;  %v9741_v15 = vpop.f32.mrf.mxu0 }
 0x250   : > { %7679 = vmatprep.mubr.msk.bf16.mxu0 %vm1760_vm6, %v10837_v19  ;;  %v4933_v55 = vshrl.u32 %v10835_v27, 16  ;;  %v2139_v24 = vadd.f32 %v2138_v56, %v10838_v3  ;;  %v9736_v46 = vrot.slane %v4915_v5, 5  ;;  %v4922_v38 = vrot.slane %v4920_v0, 4  ;;  %v10839_v19 = vld [vmem:[#allocation22_spill] sm:$0xff]  ;;  %v10841_v27 = vld [vmem:[#allocation5_spill] sm:$0xff] }
 0x251   : > { %v9739_v28 = vadd.f32 %v10839_v19, %v2147_v8  ;;  %v4912_v37 = vor.u32 %v4911_v45, %v9709_v12  ;;  %v4925_v41 = vrot.slane %v4923_v35, 5  ;;  %v9744_v22 = vrot.slane %v4929_v54, 5  ;;  %v10842_v56 = vld [vmem:[#allocation26_spill] sm:$0xff]  ;;  %v2141_v3 = vpop.f32.mrf.mxu1  ;;  %v9751_v8 = vpop.f32.mrf.mxu0 }
 0x252   : > { %v6917_v7 = vrot.slane %v5400_v18, 9  ;;  %v2150_v57 = vadd.f32 %v7420_v6, %v10841_v27  ;;  %v5558_v47 = vrot.slane %v5556_v25, 4  ;;  %v5559_v5 = vrot.slane %v9733_v26, 5  ;;  %10844 = vst [vmem:[#allocation28_spill] sm:$0xff] %v9751_v8  ;;  %v10845_v35 = vld [vmem:[#allocation6_spill] sm:$0xff]  ;;  %v10846_v27 = vld [vmem:[#allocation29_spill] sm:$0xff] }
 0x253   : > { %10840 = vst [vmem:[#allocation13_spill] sm:$0xff] %v9739_v28  ;;  %v9749_v0 = vadd.f32 %v10842_v56, %v2139_v24  ;;  %v4935_v19 = vrot.slane %v4933_v55, 4  ;;  %v4944_v28 = vshrl.u32 %v4685_v61, 16  ;;  %v4953_v49 = vshll.u32 %v9353_v43, 16  ;;  %v7423_v56 = vpop.f32.mrf.mxu1 }
 0x254   : > { %v4957_v45 = vshrl.u32 %v9353_v43, 16  ;;  %v2142_v54 = vadd.f32 %v2141_v3, %v10845_v35  ;;  %v4947_v18 = vshll.u32 %v4685_v61, 16  ;;  %v9761_v24 = vadd.f32 %v10846_v27, %v2150_v57  ;;  %v4688_v61 = vld [vmem:[#allocation2 + $0x9c] sm:$0xf] }
 0x255   : > { %10843 = vst [vmem:[#allocation14_spill] sm:$0xff] %v9749_v0  ;;  %v9763_v0 = vpop.f32.mrf.mxu0  ;;  %v10847_v43 = vcombine.low %v9554_v50, %v9608_v2  ;;  %v9771_v55 = vrot.slane %v4902_v48, 4  ;;  %v4926_v3 = vor.u32 %v4925_v41, %v4922_v38  ;;  %v4939_v35 = vshll.u32 %v9346_v36, 16  ;;  %v10848_v27 = vld [vmem:[#allocation7_spill] sm:$0xff]  ;;  %v10850_v36 = vld [vmem:[#allocation33_spill] sm:$0xff]  ;;  %v2154_v48 = vpop.f32.mrf.mxu1 }
 0x256   : > { %7626 = vmatmul.mubr.msk.bf16.gmra.mxu1 %vm1760_vm6, %v9641_v62  ;;  %v5557_v57 = vsel %vm8069_vm9, %v6917_v7, %v5556_v25  ;;  %v2163_v6 = vadd.f32 %v7423_v56, %v10848_v27  ;;  %v10849_v62 = vcombine.low %v9666_v21, %v9647_v11  ;;  %v9783_v50 = vrot.slane %v4912_v37, 4  ;;  %v10851_v11 = vld [vmem:[#allocation9_spill] sm:$0xff] }
 0x257   : > { %7680 = vmatmul.mubr.msk.bf16.gmra.mxu0 %vm1760_vm6, %v10847_v43  ;;  %7629 = vmatprep.mubr.msk.bf16.mxu1 %vm1760_vm6, %v9678_v58  ;;  %v5560_v2 = vsel %vm8069_vm9, %v5558_v47, %v5559_v5  ;;  %v9788_v41 = vadd.f32 %v10850_v36, %v2142_v54  ;;  %v9790_v25 = vpop.f32.mrf.mxu0  ;;  %v4936_v38 = vor.u32 %v4935_v19, %v9744_v22  ;;  %v4946_v7 = vrot.slane %v4944_v28, 4  ;;  %v10852_v27 = vld [vmem:[#allocation37_spill] sm:$0xff]  ;;  %v7424_v60 = vpop.f32.mrf.mxu1  ;;  %v10854_v28 = vld [vmem:[#allocation12_spill] sm:$0xff] }
 0x258   : > { %7683 = vmatprep.mubr.msk.bf16.mxu0 %vm1760_vm6, %v10849_v62  ;;  %v9793_v58 = vrot.slane %v4953_v49, 5  ;;  %v4959_v56 = vrot.slane %v4957_v45, 4  ;;  %v2155_v21 = vadd.f32 %v2154_v48, %v10851_v11  ;;  %v4949_v43 = vrot.slane %v4947_v18, 5  ;;  %v10855_v48 = vld [vmem:[#allocation39_spill] sm:$0xff] }
 0x259   : > { %v4968_v37 = vshrl.u32 %v4688_v61, 16  ;;  %v9797_v62 = vadd.f32 %v10852_v27, %v2163_v6  ;;  %v9799_v47 = vpop.f32.mrf.mxu0  ;;  %v4971_v5 = vshll.u32 %v4688_v61, 16  ;;  %v4977_v54 = vshll.u32 %v9407_v10, 16  ;;  %v2157_v11 = vpop.f32.mrf.mxu1 }
 0x25a   : > { %v4981_v36 = vshrl.u32 %v9407_v10, 16  ;;  %v6935_v19 = vcombine.low %v5557_v57, %v5560_v2  ;;  %v2166_v49 = vadd.f32 %v7424_v60, %v10854_v28  ;;  %v4908_v45 = vsel %vm8043_vm5, %v9771_v55, %v9709_v12  ;;  %v4691_v57 = vld [vmem:[#allocation2 + $0xa8] sm:$0xf]  ;;  %v10856_v2 = vld [vmem:[#allocation15_spill] sm:$0xff] }
 0x25b   : > { %10853 = vst [vmem:[#allocation27_spill] sm:$0xff] %v9797_v62  ;;  %v4927_v18 = vrot.slane %v4926_v3, 4  ;;  %v9809_v6 = vadd.f32 %v10855_v48, %v2155_v21  ;;  %v9811_v27 = vpop.f32.mrf.mxu0  ;;  %v4937_v61 = vrot.slane %v4936_v38, 4  ;;  %v4941_v8 = vrot.slane %v4939_v35, 5  ;;  %v10857_v3 = vld [vmem:[#allocation41_spill] sm:$0xff]  ;;  %v7427_v28 = vpop.f32.mrf.mxu1 }
 0x25c   : > { %v4960_v62 = vor.u32 %v4959_v56, %v9793_v58  ;;  %v4963_v10 = vshll.u32 %v9405_v44, 16  ;;  %v2158_v60 = vadd.f32 %v2157_v11, %v10856_v2  ;;  %v4918_v12 = vsel %vm8043_vm5, %v9783_v50, %v9736_v46  ;;  %v10858_v11 = vld [vmem:[#allocation16_spill] sm:$0xff] }
 0x25d   : > { %v4950_v55 = vor.u32 %v4949_v43, %v4946_v7  ;;  %v9821_v21 = vadd.f32 %v10857_v3, %v2166_v49  ;;  %v9823_v48 = vpop.f32.mrf.mxu0  ;;  %v4970_v35 = vrot.slane %v4968_v37, 4  ;;  %v4973_v44 = vrot.slane %v4971_v5, 5  ;;  %v2170_v43 = vpop.f32.mrf.mxu1 }
 0x25e   : > { %7630 = vmatmul.mubr.msk.bf16.gmra.mxu1 %vm1760_vm6, %v9695_v63  ;;  %v9827_v38 = vrot.slane %v4977_v54, 5  ;;  %v4983_v56 = vrot.slane %v4981_v36, 4  ;;  %v2179_v2 = vadd.f32 %v7427_v28, %v10858_v11  ;;  %v4992_v46 = vshrl.u32 %v4691_v57, 16  ;;  %v7802_v63 = vld [vmem:[%s10692_s5] sm:$0xff]  }
 0x25f   : > { %7684 = vmatmul.mubr.msk.bf16.gmra.mxu0 %vm1760_vm6, %v6935_v19  ;;  %7633 = vmatprep.mubr.msk.bf16.mxu1 %vm1760_vm6, %v9719_v51  ;;  %v4995_v50 = vshll.u32 %v4691_v57, 16  ;;  %v9834_v7 = vadd.f32 %v9413_v20, %v2158_v60  ;;  %v9839_v37 = vpop.f32.mrf.mxu0  ;;  %v4932_v5 = vsel %vm8043_vm5, %v4927_v18, %v9744_v22  ;;  %v4942_v54 = vsel %vm8043_vm5, %v4937_v61, %v4941_v8  ;;  %v10859_v19 = vld [vmem:[#allocation17_spill] sm:$0xff]  ;;  %v7428_v3 = vpop.f32.mrf.mxu1 }
 0x260   : > { %v4961_v51 = vrot.slane %v4960_v62, 4  ;;  %v4965_v36 = vrot.slane %v4963_v10, 5  ;;  %v2171_v49 = vadd.f32 %v2170_v43, %v10859_v19  ;;  %v5001_v20 = vshll.u32 %v9415_v9, 16  ;;  %7687 = vmatprep.subr.bf16.mxu1 %v7802_v63  ;;  %v10861_v62 = vld [vmem:[#allocation18_spill] sm:$0xff] }
 0x261   : > { %v5005_v57 = vshrl.u32 %v9415_v9, 16  ;;  %v9850_v60 = vadd.f32 %v9444_v14, %v2179_v2  ;;  %v9852_v28 = vpop.f32.mrf.mxu0  ;;  %v4951_v11 = vrot.slane %v4950_v55, 4  ;;  %v4974_v22 = vor.u32 %v4973_v44, %v4970_v35  ;;  %7688 = vmatpush3.bf16.msra.mxu1 %v7802_v63  ;;  %v2173_v14 = vpop.f32.mrf.mxu1 }
 0x262   : > { %v4984_v18 = vor.u32 %v4983_v56, %v9827_v38  ;;  %v4987_v8 = vshll.u32 %v9448_v4, 16  ;;  %v2182_v61 = vadd.f32 %v7428_v3, %v10861_v62  ;;  %v4994_v10 = vrot.slane %v4992_v46, 4  ;;  %v4694_v46 = vld [vmem:[#allocation2 + $0xb4] sm:$0xf] }
 0x263   : > { %10860 = vst [vmem:[#allocation36_spill] sm:$0xff] %v9850_v60  ;;  %v4997_v43 = vrot.slane %v4995_v50, 5  ;;  %v9858_v9 = vadd.f32 %v9462_v16, %v2171_v49  ;;  %v9860_v2 = vpop.f32.mrf.mxu0  ;;  %v10863_v55 = vsel %vm8043_vm5, %v9730_v32, %v9721_v29  ;;  %v10864_v4 = vsel %vm8043_vm5, %v9690_v13, %v9655_v1  ;;  %v10865_v50 = vld [vmem:[#allocation19_spill] sm:$0xff]  ;;  %v7431_v29 = vpop.f32.mrf.mxu1 }
 0x264   : > { %v6876_v35 = vcombine.low %v10864_v4, %v10863_v55  ;;  %v6877_v44 = vcombine.low %v4908_v45, %v4918_v12  ;;  %v6878_v56 = vcombine.low %v4932_v5, %v4942_v54  ;;  %v4966_v16 = vsel %vm8043_vm5, %v4961_v51, %v4965_v36  ;;  %v10867_v5 = vld [vmem:[#allocation21_spill] sm:$0xff] }
 0x265   : > { %10862 = vst [vmem:[#allocation31_spill] sm:$0xff] %v9858_v9  ;;  %v2174_v63 = vadd.f32 %v2173_v14, %v10865_v50  ;;  %v9875_v19 = vrot.slane %v5001_v20, 5  ;;  %v5007_v49 = vrot.slane %v5005_v57, 4  ;;  %v9878_v3 = vadd.f32 %v9474_v31, %v2182_v61  ;;  %v9880_v32 = vpop.f32.mrf.mxu0  ;;  %v2186_v20 = vpop.f32.mrf.mxu1 }
 0x266   : > { %7634 = vmatmul.mubr.msk.bf16.gmra.mxu1 %vm1760_vm6, %v6876_v35  ;;  %v4956_v1 = vsel %vm8043_vm5, %v4951_v11, %v9793_v58  ;;  %v9886_v13 = vrot.slane %v4974_v22, 4  ;;  %v9888_v45 = vrot.slane %v4984_v18, 4  ;;  %v9890_v12 = vrot.slane %v4987_v8, 5  ;;  %v10869_v22 = vld [vmem:[#allocation46_spill] sm:$0xff]  ;;  %v10870_v8 = vld [vmem:[#allocation24_spill] sm:$0xff] }
 0x267   : > { %10866 = vst [vmem:[#allocation3_spill] sm:$0xff] %v9878_v3  ;;  %v2195_v54 = vadd.f32 %v7431_v29, %v10867_v5  ;;  %7637 = vmatprep.mubr.msk.bf16.mxu1 %vm1760_vm6, %v6877_v44  ;;  %v4998_v31 = vor.u32 %v4997_v43, %v4994_v10  ;;  %v5016_v51 = vshrl.u32 %v4694_v46, 16  ;;  %v9895_v36 = vadd.f32 %v9516_v59, %v2174_v63  ;;  %v9897_v57 = vpop.f32.mrf.mxu0  ;;  %v4697_v10 = vld [vmem:[#allocation2 + $0xc0] sm:$0xf]  ;;  %v10871_v43 = vld [vmem:[#allocation51_spill] sm:$0xff]  ;;  %v7432_v59 = vpop.f32.mrf.mxu1  ;;  %v10874_v63 = vld [vmem:[#allocation30_spill] sm:$0xff] }
 0x268   : > { %v6879_v62 = vcombine.low %v4956_v1, %v4966_v16  ;;  %v5011_v58 = vshll.u32 %v9464_v42, 16  ;;  %v5019_v11 = vshll.u32 %v4694_v46, 16  ;;  %v5025_v18 = vshll.u32 %v10869_v22, 16  ;;  %v10873_v16 = vld [vmem:[#allocation52_spill] sm:$0xff]  ;;  %v4700_v5 = vld [vmem:[#allocation2 + $0xcc] sm:$0xf] }
 0x269   : > { %10868 = vst [vmem:[#allocation4_spill] sm:$0xff] %v9895_v36  ;;  %v2187_v61 = vadd.f32 %v2186_v20, %v10870_v8  ;;  %v5008_v14 = vor.u32 %v5007_v49, %v9875_v19  ;;  %v5029_v55 = vshrl.u32 %v10869_v22, 16  ;;  %v9905_v4 = vadd.f32 %v10871_v43, %v2195_v54  ;;  %v9907_v35 = vpop.f32.mrf.mxu0  ;;  %v10875_v54 = vld [vmem:[#allocation54_spill] sm:$0xff]  ;;  %v2189_v22 = vpop.f32.mrf.mxu1  ;;  %v10878_v3 = vld [vmem:[#allocation35_spill] sm:$0xff] }
 0x26a   : > { %v4980_v42 = vsel %vm8043_vm5, %v9886_v13, %v9827_v38  ;;  %v4990_v44 = vsel %vm8043_vm5, %v9888_v45, %v9890_v12  ;;  %v5049_v46 = vshll.u32 %v10873_v16, 16  ;;  %v5053_v50 = vshrl.u32 %v10873_v16, 16  ;;  %v10877_v12 = vld [vmem:[#allocation34_spill] sm:$0xff] }
 0x26b   : > { %10872 = vst [vmem:[#allocation22_spill] sm:$0xff] %v9905_v4  ;;  %v2198_v49 = vadd.f32 %v7432_v59, %v10874_v63  ;;  %v4999_v29 = vrot.slane %v4998_v31, 4  ;;  %v5018_v1 = vrot.slane %v5016_v51, 4  ;;  %v9921_v20 = vadd.f32 %v10875_v54, %v2187_v61  ;;  %v9923_v8 = vpop.f32.mrf.mxu0  ;;  %v7435_v31 = vpop.f32.mrf.mxu1  ;;  %v10880_v54 = vld [vmem:[#allocation38_spill] sm:$0xff] }
 0x26c   : > { %v5021_v38 = vrot.slane %v5019_v11, 5  ;;  %v9925_v13 = vrot.slane %v5025_v18, 5  ;;  %v5040_v43 = vshrl.u32 %v4697_v10, 16  ;;  %v5043_v45 = vshll.u32 %v4697_v10, 16 }
 0x26d   : > { %10876 = vst [vmem:[#allocation5_spill] sm:$0xff] %v9921_v20  ;;  %v2190_v4 = vadd.f32 %v2189_v22, %v10877_v12  ;;  %v5009_v36 = vrot.slane %v5008_v14, 4  ;;  %v5031_v16 = vrot.slane %v5029_v55, 4  ;;  %v9929_v59 = vadd.f32 %v10878_v3, %v2198_v49  ;;  %v9931_v51 = vpop.f32.mrf.mxu0  ;;  %v10881_v3 = vld [vmem:[#allocation10_spill] sm:$0xff]  ;;  %v2202_v49 = vpop.f32.mrf.mxu1 }
 0x26e   : > { %7638 = vmatmul.mubr.msk.bf16.gmra.mxu1 %vm1760_vm6, %v6878_v56  ;;  %v9934_v61 = vrot.slane %v5049_v46, 5  ;;  %v5055_v63 = vrot.slane %v5053_v50, 4  ;;  %v5064_v11 = vshrl.u32 %v4700_v5, 16  ;;  %v5067_v18 = vshll.u32 %v4700_v5, 16  ;;  %v10883_v46 = vld [vmem:[#allocation49_spill] sm:$0xff]  ;;  %v10884_v5 = vld [vmem:[#allocation40_spill] sm:$0xff] }
 0x26f   : > { %10879 = vst [vmem:[#allocation26_spill] sm:$0xff] %v9929_v59  ;;  %v2211_v20 = vadd.f32 %v7435_v31, %v10880_v54  ;;  %7641 = vmatprep.mubr.msk.bf16.mxu1 %vm1760_vm6, %v6879_v62  ;;  %v5073_v14 = vshll.u32 %v9693_v53, 16  ;;  %v5077_v55 = vshrl.u32 %v9693_v53, 16  ;;  %v9941_v10 = vadd.f32 %v10881_v3, %v2190_v4  ;;  %v9943_v22 = vpop.f32.mrf.mxu0  ;;  %v7436_v53 = vpop.f32.mrf.mxu1 }
 0x270   : > { %v5013_v56 = vrot.slane %v5011_v58, 5  ;;  %v5035_v12 = vshll.u32 %v10883_v46, 16  ;;  %v5042_v50 = vrot.slane %v5040_v43, 4  ;;  %v5045_v59 = vrot.slane %v5043_v45, 5  ;;  %v10885_v43 = vld [vmem:[#allocation42_spill] sm:$0xff] }
 0x271   : > { %10882 = vst [vmem:[#allocation6_spill] sm:$0xff] %v9941_v10  ;;  %v2203_v9 = vadd.f32 %v2202_v49, %v10884_v5  ;;  %v5022_v31 = vor.u32 %v5021_v38, %v5018_v1  ;;  %v5032_v62 = vor.u32 %v5031_v16, %v9925_v13  ;;  %v9949_v54 = vadd.f32 %v9631_v30, %v2211_v20  ;;  %v9951_v60 = vpop.f32.mrf.mxu0  ;;  %v9960_v38 = vpop.f32.mrf.mxu1 }
 0x272   : > { %v5014_v4 = vsel %vm8043_vm5, %v5009_v36, %v5013_v56  ;;  %v5056_v58 = vor.u32 %v5055_v63, %v9934_v61  ;;  %v5066_v3 = vrot.slane %v5064_v11, 4  ;;  %v5069_v46 = vrot.slane %v5067_v18, 5 }
 0x273   : > { %v2214_v45 = vadd.f32 %v7436_v53, %v10885_v43  ;;  %v5075_v10 = vrot.slane %v5073_v14, 5  ;;  %v5079_v49 = vrot.slane %v5077_v55, 4  ;;  %v9958_v1 = vadd.f32 %v9659_v17, %v2203_v9  ;;  %v9962_v30 = vpop.f32.mrf.mxu0  ;;  %v7439_v55 = vpop.f32.mrf.mxu1  ;;  %v10887_v53 = vld [vmem:[#allocation45_spill] sm:$0xff] }
 0x274   : > { %v6880_v20 = vcombine.low %v4980_v42, %v4990_v44  ;;  %v5004_v36 = vsel %vm8043_vm5, %v4999_v29, %v9875_v19  ;;  %v5046_v16 = vor.u32 %v5045_v59, %v5042_v50  ;;  %v5059_v63 = vshll.u32 %v9614_v40, 16  ;;  %v10886_v44 = vld [vmem:[#allocation44_spill] sm:$0xff] }
 0x275   : > { %v6881_v11 = vcombine.low %v5004_v36, %v5014_v4  ;;  %v5033_v18 = vrot.slane %v5032_v62, 4  ;;  %v9969_v14 = vadd.f32 %v9670_v34, %v2214_v45  ;;  %v9971_v17 = vpop.f32.mrf.mxu0  ;;  %v5023_v9 = vrot.slane %v5022_v31, 4  ;;  %v2218_v59 = vpop.f32.mrf.mxu1  ;;  %v10888_v45 = vld [vmem:[#allocation47_spill] sm:$0xff] }
 0x276   : > { %7642 = vmatmul.mubr.msk.bf16.gmra.mxu1 %vm1760_vm6, %v6880_v20  ;;  %v5057_v56 = vrot.slane %v5056_v58, 4  ;;  %v5083_v42 = vshll.u32 %v9733_v26, 16  ;;  %v2227_v5 = vadd.f32 %v7439_v55, %v10886_v44  ;;  %v5037_v19 = vrot.slane %v5035_v12, 5 }
 0x277   : > { %7645 = vmatprep.mubr.msk.bf16.mxu1 %vm1760_vm6, %v6881_v11  ;;  %v5070_v40 = vor.u32 %v5069_v46, %v5066_v3  ;;  %v5080_v29 = vor.u32 %v5079_v49, %v5075_v10  ;;  %v9977_v50 = vpop.f32.mrf.mxu0  ;;  %v5047_v34 = vrot.slane %v5046_v16, 4  ;;  %v5061_v62 = vrot.slane %v5059_v63, 5  ;;  %v7440_v26 = vpop.f32.mrf.mxu1 }
 0x278   : > { %v2219_v4 = vadd.f32 %v2218_v59, %v10887_v53  ;;  %v5038_v31 = vsel %vm8043_vm5, %v5033_v18, %v5037_v19  ;;  %v9983_v58 = vadd.f32 %v9701_v52, %v2227_v5  ;;  %v5028_v12 = vsel %vm8043_vm5, %v5023_v9, %v9925_v13  ;;  %v10891_v53 = vld [vmem:[#allocation8_spill] sm:$0xff] }
 0x279   : > { %v9985_v43 = vpop.f32.mrf.mxu0  ;;  %v5062_v3 = vsel %vm8043_vm5, %v5057_v56, %v5061_v62  ;;  %v5085_v46 = vrot.slane %v5083_v42, 5  ;;  %v2230_v49 = vadd.f32 %v7440_v26, %v10888_v45  ;;  %v5071_v20 = vrot.slane %v5070_v40, 4  ;;  %v9996_v52 = vpop.f32.mrf.mxu1  ;;  %v10892_v26 = vld [vmem:[#allocation32_spill] sm:$0xff] }
 0x27a   : > { %v5081_v36 = vrot.slane %v5080_v29, 4  ;;  %v9994_v16 = vadd.f32 %v9724_v23, %v2219_v4  ;;  %v6882_v11 = vcombine.low %v5028_v12, %v5038_v31  ;;  %v5052_v13 = vsel %vm8043_vm5, %v5047_v34, %v9934_v61  ;;  %v10889_v23 = vld [vmem:[#allocation50_spill] sm:$0xff] }
 0x27b   : > { %v9998_v63 = vpop.f32.mrf.mxu0  ;;  %v6883_v18 = vcombine.low %v5052_v13, %v5062_v3  ;;  %v10004_v55 = vadd.f32 %v9741_v15, %v2230_v49  ;;  %v7443_v9 = vpop.f32.mrf.mxu1  ;;  %v5076_v44 = vsel %vm8043_vm5, %v5071_v20, %v5075_v10  ;;  %v10890_v15 = vld [vmem:[#allocation53_spill] sm:$0xff] }
 0x27c   : > { %v2243_v42 = vadd.f32 %v7443_v9, %v10889_v23  ;;  %v5086_v5 = vsel %vm8043_vm5, %v5081_v36, %v5085_v46  ;;  %v10893_v36 = vld [vmem:[#allocation11_spill] sm:$0xff] }
 0x27d   : > { %v10006_v56 = vpop.f32.mrf.mxu0  ;;  %v2234_v61 = vpop.f32.mrf.mxu1  ;;  %v6884_v62 = vcombine.low %v5076_v44, %v5086_v5  ;;  %v10894_v9 = vld [vmem:[#allocation23_spill] sm:$0xff] }
 0x27e   : > { %7646 = vmatmul.mubr.msk.bf16.gmra.mxu1 %vm1760_vm6, %v6882_v11  ;;  %v2235_v40 = vadd.f32 %v2234_v61, %v10890_v15  ;;  %v10019_v29 = vadd.f32 %v9763_v0, %v2243_v42 }
 0x27f   : > { %7649 = vmatprep.mubr.msk.bf16.mxu1 %vm1760_vm6, %v6883_v18  ;;  %v10015_v19 = vpop.f32.mrf.mxu0  ;;  %v7444_v59 = vpop.f32.mrf.mxu1 }
 0x280   : > { %v2246_v4 = vadd.f32 %v7444_v59, %v10891_v53  ;;  %v10025_v31 = vadd.f32 %v9790_v25, %v2235_v40 }
 0x281   : > { %v10021_v34 = vpop.f32.mrf.mxu0  ;;  %v2237_v10 = vpop.f32.mrf.mxu1 }
 0x282   : > { %v2238_v12 = vadd.f32 %v2237_v10, %v10892_v26  ;;  %v10031_v3 = vadd.f32 %v9799_v47, %v2246_v4 }
 0x283   : > { %v10027_v39 = vpop.f32.mrf.mxu0  ;;  %v7447_v46 = vpop.f32.mrf.mxu1 }
 0x284   : > { %v2259_v45 = vadd.f32 %v7447_v46, %v9629_v33  ;;  %v10038_v49 = vadd.f32 %v9811_v27, %v2238_v12  ;;  %v10895_v27 = vld [vmem:[#allocation20_spill] sm:$0xff] }
 0x285   : > { %v10033_v0 = vpop.f32.mrf.mxu0  ;;  %v2250_v25 = vpop.f32.mrf.mxu1 }
 0x286   : > { %7650 = vmatmul.mubr.msk.bf16.gmra.mxu1 %vm1760_vm6, %v6884_v62  ;;  %v2251_v11 = vadd.f32 %v2250_v25, %v10893_v36  ;;  %v10044_v13 = vadd.f32 %v9823_v48, %v2259_v45  ;;  %v10896_v48 = vld [vmem:[#allocation13_spill] sm:$0xff] }
 0x287   : > { %v10040_v20 = vpop.f32.mrf.mxu0  ;;  %v7448_v47 = vpop.f32.mrf.mxu1 }
 0x288   : > { %v2262_v23 = vadd.f32 %v7448_v47, %v10894_v9  ;;  %v10050_v42 = vadd.f32 %v9839_v37, %v2251_v11  ;;  %v10897_v37 = vld [vmem:[#allocation14_spill] sm:$0xff] }
 0x289   : > { %v10046_v18 = vpop.f32.mrf.mxu0  ;;  %v2253_v33 = vpop.f32.mrf.mxu1 }
 0x28a   : > { %v2254_v5 = vadd.f32 %v2253_v33, %v10895_v27  ;;  %v10056_v61 = vadd.f32 %v9852_v28, %v2262_v23 }
 0x28b   : > { %v10052_v44 = vpop.f32.mrf.mxu0  ;;  %v7487_v15 = vpop.f32.mrf.mxu1 }
 0x28c   : > { %v3058_v59 = vadd.f32 %v7487_v15, %v10896_v48  ;;  %v10062_v62 = vadd.f32 %v9860_v2, %v2254_v5 }
 0x28d   : > { %v10058_v40 = vpop.f32.mrf.mxu0  ;;  %v2929_v53 = vpop.f32.mrf.mxu1 }
 0x28e   : > { %v3056_v10 = vadd.f32 %v2929_v53, %v10897_v37  ;;  %v10068_v26 = vadd.f32 %v9880_v32, %v3058_v59  ;;  %v10898_v32 = vld [vmem:[#allocation27_spill] sm:$0xff] }
 0x28f   : > { %v10064_v4 = vpop.f32.mrf.mxu0  ;;  %v7488_v12 = vpop.f32.mrf.mxu1 }
 0x290   : > { %v3059_v28 = vadd.f32 %v7488_v12, %v9761_v24  ;;  %v10074_v45 = vadd.f32 %v9897_v57, %v3056_v10 }
 0x291   : > { %v10070_v46 = vpop.f32.mrf.mxu0  ;;  %v2932_v25 = vpop.f32.mrf.mxu1 }
 0x292   : > { %v3057_v2 = vadd.f32 %v2932_v25, %v9788_v41  ;;  %v10080_v11 = vadd.f32 %v9907_v35, %v3059_v28 }
 0x293   : > { %v10076_v36 = vpop.f32.mrf.mxu0  ;;  %v7491_v47 = vpop.f32.mrf.mxu1 }
 0x294   : > { %v3062_v23 = vadd.f32 %v7491_v47, %v10898_v32  ;;  %v10086_v33 = vadd.f32 %v9923_v8, %v3057_v2 }
 0x295   : > { %v10082_v9 = vpop.f32.mrf.mxu0  ;;  %v2945_v24 = vpop.f32.mrf.mxu1 }
 0x296   : > { %v3060_v57 = vadd.f32 %v2945_v24, %v9809_v6  ;;  %v10092_v5 = vadd.f32 %v9931_v51, %v3062_v23  ;;  %v10900_v51 = vld [vmem:[#allocation36_spill] sm:$0xff] }
 0x297   : > { %v10088_v27 = vpop.f32.mrf.mxu0  ;;  %v7492_v41 = vpop.f32.mrf.mxu1 }
 0x298   : > { %v3063_v35 = vadd.f32 %v7492_v41, %v9821_v21  ;;  %v10098_v48 = vadd.f32 %v9943_v22, %v3060_v57  ;;  %v10902_v22 = vld [vmem:[#allocation31_spill] sm:$0xff] }
 0x299   : > { %v10094_v15 = vpop.f32.mrf.mxu0  ;;  %v2948_v59 = vpop.f32.mrf.mxu1 }
 0x29a   : > { %v3061_v8 = vadd.f32 %v2948_v59, %v9834_v7  ;;  %v10104_v37 = vadd.f32 %v9951_v60, %v3063_v35  ;;  %v10903_v60 = vld [vmem:[#allocation3_spill] sm:$0xff] }
 0x29b   : > { %v10100_v53 = vpop.f32.mrf.mxu0  ;;  %v7495_v6 = vpop.f32.mrf.mxu1 }
 0x29c   : > { %10899 = vst [vmem:[#allocation29_spill] sm:$0xff] %v10104_v37  ;;  %v3066_v12 = vadd.f32 %v7495_v6, %v10900_v51  ;;  %v10110_v28 = vadd.f32 %v9962_v30, %v3061_v8  ;;  %v10904_v30 = vld [vmem:[#allocation4_spill] sm:$0xff]  ;;  %v10911_v37 = vld [vmem:[#allocation25_spill] sm:$0xff] }
 0x29d   : > { %v10106_v10 = vpop.f32.mrf.mxu0  ;;  %v2961_v21 = vpop.f32.mrf.mxu1 }
 0x29e   : > { %10901 = vst [vmem:[#allocation7_spill] sm:$0xff] %v10110_v28  ;;  %v3064_v2 = vadd.f32 %v2961_v21, %v10902_v22  ;;  %v10116_v47 = vadd.f32 %v9971_v17, %v3066_v12  ;;  %v10905_v17 = vld [vmem:[#allocation22_spill] sm:$0xff] }
 0x29f   : > { %v10112_v25 = vpop.f32.mrf.mxu0  ;;  %v7496_v7 = vpop.f32.mrf.mxu1 }
 0x2a0   : > { %v3067_v23 = vadd.f32 %v7496_v7, %v10903_v60  ;;  %v10122_v24 = vadd.f32 %v9977_v50, %v3064_v2  ;;  %v10907_v50 = vld [vmem:[#allocation5_spill] sm:$0xff] }
 0x2a1   : > { %v10118_v32 = vpop.f32.mrf.mxu0  ;;  %v2964_v57 = vpop.f32.mrf.mxu1 }
 0x2a2   : > { %v3065_v35 = vadd.f32 %v2964_v57, %v10904_v30  ;;  %v10128_v59 = vadd.f32 %v9985_v43, %v3067_v23  ;;  %v10908_v43 = vld [vmem:[#allocation26_spill] sm:$0xff] }
 0x2a3   : > { %v10124_v41 = vpop.f32.mrf.mxu0  ;;  %v7499_v8 = vpop.f32.mrf.mxu1 }
 0x2a4   : > { %v3070_v51 = vadd.f32 %v7499_v8, %v10905_v17  ;;  %v10134_v12 = vadd.f32 %v9998_v63, %v3065_v35  ;;  %v10909_v63 = vld [vmem:[#allocation6_spill] sm:$0xff] }
 0x2a5   : > { %v10130_v6 = vpop.f32.mrf.mxu0  ;;  %v2977_v21 = vpop.f32.mrf.mxu1 }
 0x2a6   : > { %10906 = vst [vmem:[#allocation33_spill] sm:$0xff] %v10134_v12  ;;  %v3068_v2 = vadd.f32 %v2977_v21, %v10907_v50  ;;  %v10140_v7 = vadd.f32 %v10006_v56, %v3070_v51  ;;  %v10910_v56 = vld [vmem:[#allocation43_spill] sm:$0xff] }
 0x2a7   : > { %v10136_v22 = vpop.f32.mrf.mxu0  ;;  %v7500_v60 = vpop.f32.mrf.mxu1  ;;  %v2206_v51 = vadd.f32 %v9960_v38, %v10910_v56 }
 0x2a8   : > { %v3071_v23 = vadd.f32 %v7500_v60, %v10908_v43  ;;  %v10146_v30 = vadd.f32 %v10015_v19, %v3068_v2 }
 0x2a9   : > { %v10142_v57 = vpop.f32.mrf.mxu0  ;;  %v2980_v8 = vpop.f32.mrf.mxu1  ;;  %v2711_v38 = vadd.f32 %v10911_v37, %v2206_v51 }
 0x2aa   : > { %v3069_v35 = vadd.f32 %v2980_v8, %v10909_v63  ;;  %v10152_v12 = vadd.f32 %v10021_v34, %v3071_v23 }
 0x2ab   : > { %v10148_v17 = vpop.f32.mrf.mxu0  ;;  %v7503_v21 = vpop.f32.mrf.mxu1 }
 0x2ac   : > { %v3074_v28 = vadd.f32 %v7503_v21, %v9949_v54  ;;  %v10160_v60 = vadd.f32 %v10027_v39, %v3069_v35 }
 0x2ad   : > { %v10154_v50 = vpop.f32.mrf.mxu0  ;;  %v2993_v19 = vpop.f32.mrf.mxu1 }
 0x2ae   : > { %v3072_v43 = vadd.f32 %v2993_v19, %v9958_v1  ;;  %v10166_v8 = vadd.f32 %v10033_v0, %v3074_v28  ;;  %v10912_v28 = vld [vmem:[#allocation48_spill] sm:$0xff] }
 0x2af   : > { %v10162_v2 = vpop.f32.mrf.mxu0  ;;  %v7504_v34 = vpop.f32.mrf.mxu1  ;;  %v2222_v19 = vadd.f32 %v9996_v52, %v10912_v28 }
 0x2b0   : > { %v3075_v63 = vadd.f32 %v7504_v34, %v9969_v14  ;;  %v10173_v54 = vadd.f32 %v10040_v20, %v3072_v43 }
 0x2b1   : > { %v10168_v23 = vpop.f32.mrf.mxu0  ;;  %v2996_v39 = vpop.f32.mrf.mxu1 }
 0x2b2   : > { %v3073_v21 = vadd.f32 %v2996_v39, %v2711_v38  ;;  %v10178_v56 = vadd.f32 %v10046_v18, %v3075_v63  ;;  %v10914_v39 = vld [vmem:[#allocation28_spill] sm:$0xff] }
 0x2b3   : > { %v10175_v35 = vpop.f32.mrf.mxu0  ;;  %v7507_v1 = vpop.f32.mrf.mxu1  ;;  %v2715_v52 = vadd.f32 %v10914_v39, %v2222_v19 }
 0x2b4   : > { %v3078_v14 = vadd.f32 %v7507_v1, %v9983_v58  ;;  %v10186_v37 = vadd.f32 %v10052_v44, %v3073_v21 }
 0x2b5   : > { %v10180_v0 = vpop.f32.mrf.mxu0  ;;  %v3009_v20 = vpop.f32.mrf.mxu1 }
 0x2b6   : > { %10913 = vst [vmem:[#allocation9_spill] sm:$0xff] %v10186_v37  ;;  %v3076_v43 = vadd.f32 %v3009_v20, %v9994_v16  ;;  %v10192_v34 = vadd.f32 %v10058_v40, %v3078_v14 }
 0x2b7   : > { %v10188_v51 = vpop.f32.mrf.mxu0  ;;  %v7508_v18 = vpop.f32.mrf.mxu1 }
 0x2b8   : > { %v3079_v38 = vadd.f32 %v7508_v18, %v10004_v55  ;;  %v10199_v58 = vadd.f32 %v10064_v4, %v3076_v43 }
 0x2b9   : > { %v10194_v63 = vpop.f32.mrf.mxu0  ;;  %v3012_v44 = vpop.f32.mrf.mxu1 }
 0x2ba   : > { %v3077_v1 = vadd.f32 %v3012_v44, %v2715_v52  ;;  %v10204_v28 = vadd.f32 %v10070_v46, %v3079_v38 }
 0x2bb   : > { %v10201_v21 = vpop.f32.mrf.mxu0  ;;  %v7511_v16 = vpop.f32.mrf.mxu1 }
 0x2bc   : > { %v3082_v14 = vadd.f32 %v7511_v16, %v10019_v29  ;;  %v10210_v20 = vadd.f32 %v10076_v36, %v3077_v1 }
 0x2bd   : > { %v10206_v40 = vpop.f32.mrf.mxu0  ;;  %v3025_v55 = vpop.f32.mrf.mxu1 }
 0x2be   : > { %10915 = vst [vmem:[#allocation37_spill] sm:$0xff] %v10210_v20  ;;  %v3080_v4 = vadd.f32 %v3025_v55, %v10025_v31  ;;  %v10216_v43 = vadd.f32 %v10082_v9, %v3082_v14 }
 0x2bf   : > { %v10212_v19 = vpop.f32.mrf.mxu0  ;;  %v7512_v18 = vpop.f32.mrf.mxu1 }
 0x2c0   : > { %v3083_v46 = vadd.f32 %v7512_v18, %v10031_v3  ;;  %v10222_v38 = vadd.f32 %v10088_v27, %v3080_v4 }
 0x2c1   : > { %v10218_v39 = vpop.f32.mrf.mxu0  ;;  %v3028_v29 = vpop.f32.mrf.mxu1 }
 0x2c2   : > { %v3081_v36 = vadd.f32 %v3028_v29, %v10038_v49  ;;  %v10228_v44 = vadd.f32 %v10094_v15, %v3083_v46 }
 0x2c3   : > { %v10224_v52 = vpop.f32.mrf.mxu0  ;;  %v7515_v31 = vpop.f32.mrf.mxu1 }
 0x2c4   : > { %10916 = vst [vmem:[#allocation12_spill] sm:$0xff] %v10224_v52  ;;  %v3086_v9 = vadd.f32 %v7515_v31, %v10044_v13  ;;  %v10234_v16 = vadd.f32 %v10100_v53, %v3081_v36 }
 0x2c5   : > { %v10230_v1 = vpop.f32.mrf.mxu0  ;;  %v3041_v3 = vpop.f32.mrf.mxu1 }
 0x2c6   : > { %10917 = vst [vmem:[#allocation39_spill] sm:$0xff] %v10234_v16  ;;  %v3084_v27 = vadd.f32 %v3041_v3, %v10050_v42  ;;  %v10240_v55 = vadd.f32 %v10106_v10, %v3086_v9 }
 0x2c7   : > { %v10236_v14 = vpop.f32.mrf.mxu0  ;;  %v7516_v49 = vpop.f32.mrf.mxu1 }
 0x2c8   : > { %v3087_v15 = vadd.f32 %v7516_v49, %v10056_v61  ;;  %v10246_v18 = vadd.f32 %v10112_v25, %v3084_v27 }
 0x2c9   : > { %v10242_v4 = vpop.f32.mrf.mxu0  ;;  %v3044_v13 = vpop.f32.mrf.mxu1 }
 0x2ca   : > { %v3085_v53 = vadd.f32 %v3044_v13, %v10062_v62  ;;  %v10252_v29 = vadd.f32 %v10118_v32, %v3087_v15 }
 0x2cb   : > { %v10248_v46 = vpop.f32.mrf.mxu0  ;;  %v7555_v42 = vpop.f32.mrf.mxu1 }
 0x2cc   : > { %10918 = vst [vmem:[#allocation15_spill] sm:$0xff] %v10248_v46  ;;  %v4262_v10 = vadd.f32 %v7555_v42, %v10068_v26  ;;  %v10258_v31 = vadd.f32 %v10124_v41, %v3085_v53 }
 0x2cd   : > { %v10254_v36 = vpop.f32.mrf.mxu0  ;;  %v4133_v61 = vpop.f32.mrf.mxu1 }
 0x2ce   : > { %10919 = vst [vmem:[#allocation41_spill] sm:$0xff] %v10258_v31  ;;  %v4260_v25 = vadd.f32 %v4133_v61, %v10074_v45  ;;  %v10264_v3 = vadd.f32 %v10130_v6, %v4262_v10 }
 0x2cf   : > { %v10260_v9 = vpop.f32.mrf.mxu0  ;;  %v10266_v62 = vpop.f32.mrf.mxu1 }
 0x2d0   : > { %v10271_v27 = vadd.f32 %v10136_v22, %v4260_v25 }
 0x2d1   : > { %v10268_v32 = vpop.f32.mrf.mxu0  ;;  %v10273_v49 = vpop.f32.mrf.mxu1 }
 0x2d3   : > { %v10275_v26 = vpop.f32.mrf.mxu0  ;;  %v7559_v41 = vpop.f32.mrf.mxu1 }
 0x2d4   : > { %10920 = vst [vmem:[#allocation16_spill] sm:$0xff] %v10275_v26  ;;  %v4266_v13 = vadd.f32 %v7559_v41, %v10092_v5 }
 0x2d5   : > { %v10277_v15 = vpop.f32.mrf.mxu0  ;;  %v4149_v45 = vpop.f32.mrf.mxu1 }
 0x2d6   : > { %v4264_v6 = vadd.f32 %v4149_v45, %v10098_v48  ;;  %v10284_v42 = vadd.f32 %v10154_v50, %v4266_v13 }
 0x2d7   : > { %v10280_v53 = vpop.f32.mrf.mxu0  ;;  %v10286_v10 = vpop.f32.mrf.mxu1 }
 0x2d8   : > { %v10291_v61 = vadd.f32 %v10162_v2, %v4264_v6 }
 0x2d9   : > { %v10288_v22 = vpop.f32.mrf.mxu0  ;;  %v10293_v25 = vpop.f32.mrf.mxu1 }
 0x2db   : > { %v10295_v31 = vpop.f32.mrf.mxu0  ;;  %v7563_v5 = vpop.f32.mrf.mxu1 }
 0x2dc   : > { %10921 = vst [vmem:[#allocation17_spill] sm:$0xff] %v10295_v31  ;;  %v4270_v16 = vadd.f32 %v7563_v5, %v10116_v47 }
 0x2dd   : > { %v10297_v41 = vpop.f32.mrf.mxu0  ;;  %v4165_v48 = vpop.f32.mrf.mxu1 }
 0x2de   : > { %v4268_v50 = vadd.f32 %v4165_v48, %v10122_v24  ;;  %v10304_v13 = vadd.f32 %v10180_v0, %v4270_v16 }
 0x2df   : > { %v10300_v45 = vpop.f32.mrf.mxu0  ;;  %v7564_v26 = vpop.f32.mrf.mxu1 }
 0x2e0   : > { %v4271_v6 = vadd.f32 %v7564_v26, %v10128_v59  ;;  %v10310_v31 = vadd.f32 %v10188_v51, %v4268_v50 }
 0x2e1   : > { %v10306_v2 = vpop.f32.mrf.mxu0  ;;  %v10312_v20 = vpop.f32.mrf.mxu1 }
 0x2e2   : > { %v10317_v47 = vadd.f32 %v10194_v63, %v4271_v6 }
 0x2e3   : > { %v10314_v46 = vpop.f32.mrf.mxu0  ;;  %v7567_v5 = vpop.f32.mrf.mxu1 }
 0x2e4   : > { %10922 = vst [vmem:[#allocation18_spill] sm:$0xff] %v10314_v46  ;;  %v4274_v0 = vadd.f32 %v7567_v5, %v10140_v7 }
 0x2e5   : > { %v10319_v24 = vpop.f32.mrf.mxu0  ;;  %v4181_v16 = vpop.f32.mrf.mxu1 }
 0x2e6   : > { %v4272_v59 = vadd.f32 %v4181_v16, %v10146_v30  ;;  %v10326_v51 = vadd.f32 %v10206_v40, %v4274_v0 }
 0x2e7   : > { %v10322_v48 = vpop.f32.mrf.mxu0  ;;  %v7568_v26 = vpop.f32.mrf.mxu1 }
 0x2e8   : > { %v4275_v46 = vadd.f32 %v7568_v26, %v10152_v12  ;;  %v10332_v63 = vadd.f32 %v10212_v19, %v4272_v59 }
 0x2e9   : > { %v10328_v50 = vpop.f32.mrf.mxu0  ;;  %v10334_v6 = vpop.f32.mrf.mxu1 }
 0x2ea   : > { %v10339_v7 = vadd.f32 %v10218_v39, %v4275_v46 }
 0x2eb   : > { %v10336_v37 = vpop.f32.mrf.mxu0 }
 0x2ec   : > { %10923 = vst [vmem:[#allocation19_spill] sm:$0xff] %v10339_v7  ;;  %v7571_v5 = vpop.f32.mrf.mxu1 }
 0x2ed   : > { %v10341_v30 = vpop.f32.mrf.mxu0  ;;  %v4278_v40 = vadd.f32 %v7571_v5, %v10166_v8 }
 0x2ee   : > { %v4197_v0 = vpop.f32.mrf.mxu1 }
 0x2ef   : > { %v10344_v16 = vpop.f32.mrf.mxu0  ;;  %v4276_v12 = vadd.f32 %v4197_v0, %v10173_v54  ;;  %v10348_v19 = vadd.f32 %v10230_v1, %v4278_v40 }
 0x2f0   : > { %v7572_v59 = vpop.f32.mrf.mxu1 }
 0x2f1   : > { %v10350_v26 = vpop.f32.mrf.mxu0  ;;  %v4279_v52 = vadd.f32 %v7572_v59, %v10178_v56  ;;  %v10354_v39 = vadd.f32 %v10236_v14, %v4276_v12 }
 0x2f2   : > { %v10356_v46 = vpop.f32.mrf.mxu1 }
 0x2f3   : > { %10924 = vst [vmem:[#allocation21_spill] sm:$0xff] %v10354_v39  ;;  %v10358_v7 = vpop.f32.mrf.mxu0  ;;  %v10361_v8 = vadd.f32 %v10242_v4, %v4279_v52 }
 0x2f5   : > { %10925 = vst [vmem:[#allocation46_spill] sm:$0xff] %v10361_v8  ;;  %v7575_v5 = vpop.f32.mrf.mxu1  ;;  %v10363_v54 = vpop.f32.mrf.mxu0 }
 0x2f6   : > { %v4282_v1 = vadd.f32 %v7575_v5, %v10192_v34 }
 0x2f7   : > { %v4213_v40 = vpop.f32.mrf.mxu1  ;;  %v10366_v0 = vpop.f32.mrf.mxu0 }
 0x2f8   : > { %v4280_v56 = vadd.f32 %v4213_v40, %v10199_v58  ;;  %v10370_v14 = vadd.f32 %v10254_v36, %v4282_v1 }
 0x2f9   : > { %v7576_v12 = vpop.f32.mrf.mxu1  ;;  %v10376_v52 = vpop.f32.mrf.mxu0 }
 0x2fa   : > { %v4283_v59 = vadd.f32 %v7576_v12, %v10204_v28  ;;  %v10374_v39 = vadd.f32 %v10260_v9, %v4280_v56 }
 0x2fb   : > { %v10378_v4 = vpop.f32.mrf.mxu1  ;;  %v10384_v58 = vpop.f32.mrf.mxu0 }
 0x2fc   : > { %v10381_v34 = vadd.f32 %v10268_v32, %v4283_v59 }
 0x2fd   : > { %v7579_v5 = vpop.f32.mrf.mxu1 }
 0x2fe   : > { %v4286_v8 = vadd.f32 %v7579_v5, %v10216_v43  ;;  %v10394_v12 = vpop.f32.mrf.mxu0 }
 0x2ff   : > { %v4229_v36 = vpop.f32.mrf.mxu1 }
 0x300   : > { %v4284_v1 = vadd.f32 %v4229_v36, %v10222_v38  ;;  %v10388_v28 = vadd.f32 %v10277_v15, %v4286_v8  ;;  %v10402_v38 = vpop.f32.mrf.mxu0 }
 0x301   : > { %v7580_v9 = vpop.f32.mrf.mxu1 }
 0x302   : > { %v4287_v40 = vadd.f32 %v7580_v9, %v10228_v44  ;;  %v10392_v56 = vadd.f32 %v10280_v53, %v4284_v1  ;;  %v10412_v9 = vpop.f32.mrf.mxu0 }
 0x303   : > { %v10396_v32 = vpop.f32.mrf.mxu1 }
 0x304   : > { %v10399_v43 = vadd.f32 %v10288_v22, %v4287_v40 }
 0x306   : > { %v7583_v59 = vpop.f32.mrf.mxu1 }
 0x307   : > { %v4290_v5 = vadd.f32 %v7583_v59, %v10240_v55  ;;  %v4263_v55 = vadd.f32 %v10266_v62, %v10080_v11  ;;  %v10432_v11 = vld [vmem:[%s10691_s4] ss:$0 sm:$0xff] }
 0x308   : > { %v4245_v15 = vpop.f32.mrf.mxu1 }
 0x309   : > { %v4288_v8 = vadd.f32 %v4245_v15, %v10246_v18  ;;  %v10406_v44 = vadd.f32 %v10297_v41, %v4290_v5  ;;  %v4261_v41 = vadd.f32 %v10273_v49, %v10086_v33 }
 0x30a   : > { %v7584_v53 = vpop.f32.mrf.mxu1 }
 0x30b   : > { %v4291_v36 = vadd.f32 %v7584_v53, %v10252_v29  ;;  %v10410_v1 = vadd.f32 %v10300_v45, %v4288_v8  ;;  %v10424_v29 = vpop.f32.mrf.mxu0  ;;  %v4626_v8 = vadd.f32 %v10142_v57, %v4263_v55  ;;  %v10926_v57 = vld [vmem:[#allocation29_spill] sm:$0xff] }
 0x30c   : > { %v10414_v22 = vpop.f32.mrf.mxu1  ;;  %v4267_v55 = vadd.f32 %v10286_v10, %v10926_v57 }
 0x30d   : > { %v10419_v40 = vadd.f32 %v10306_v2, %v4291_v36  ;;  %v10436_v49 = vpop.f32.mrf.mxu0 }
 0x30e   : > { %v7623_v18 = vpop.f32.mrf.mxu1 }
 0x30f   : > { %v5355_v59 = vadd.f32 %v7623_v18, %v10264_v3  ;;  %v4624_v3 = vadd.f32 %v10148_v17, %v4261_v41  ;;  %v10927_v18 = vld [vmem:[#allocation7_spill] sm:$0xff] }
 0x310   : > { %v5226_v45 = vpop.f32.mrf.mxu1 }
 0x311   : > { %v5829_v5 = vadd.f32 %v10319_v24, %v5355_v59  ;;  %v5353_v15 = vadd.f32 %v5226_v45, %v10271_v27  ;;  %v4265_v59 = vadd.f32 %v10293_v25, %v10927_v18 }
 0x312   : > { %v7624_v62 = vpop.f32.mrf.mxu1 }
 0x313   : > { %v5827_v2 = vadd.f32 %v10322_v48, %v5353_v15  ;;  %v5356_v33 = vadd.f32 %v7624_v62, %v4626_v8  ;;  %v5868_v24 = vadd.f32 %v10432_v11, %v5829_v5  ;;  %v10448_v8 = vpop.f32.mrf.mxu0 }
 0x314   : > { %v5229_v53 = vpop.f32.mrf.mxu1 }
 0x315   : > { %v5830_v27 = vadd.f32 %v10328_v50, %v5356_v33  ;;  %v5354_v36 = vadd.f32 %v5229_v53, %v4624_v3  ;;  %v5866_v48 = vadd.f32 %v10432_v11, %v5827_v2  ;;  %v5900_v50 = vmax.f32 %v5868_v24, 0.0  ;;  %v10456_v57 = vpop.f32.mrf.mxu0 }
 0x316   : > { %v7627_v45 = vpop.f32.mrf.mxu1  ;;  %v4630_v3 = vadd.f32 %v10168_v23, %v4267_v55  ;;  %v4628_v53 = vadd.f32 %v10175_v35, %v4265_v59 }
 0x317   : > { %v5869_v15 = vadd.f32 %v10432_v11, %v5830_v27  ;;  %v5828_v17 = vadd.f32 %v10336_v37, %v5354_v36  ;;  %v5359_v41 = vadd.f32 %v7627_v45, %v10284_v42  ;;  %v5898_v27 = vmax.f32 %v5866_v48, 0.0  ;;  %v10466_v48 = vpop.f32.mrf.mxu0 }
 0x318   : > { %v5242_v5 = vpop.f32.mrf.mxu1 }
 0x319   : > { %v5901_v62 = vmax.f32 %v5869_v15, 0.0  ;;  %v5867_v33 = vadd.f32 %v10432_v11, %v5828_v17  ;;  %v5357_v10 = vadd.f32 %v5242_v5, %v10291_v61  ;;  %v5833_v25 = vadd.f32 %v10341_v30, %v5359_v41 }
 0x31a   : > { %v7628_v2 = vpop.f32.mrf.mxu1 }
 0x31b   : > { %v5931_v37 = vpack.c.bf16 %v5901_v62, %v5900_v50  ;;  %v5899_v36 = vmax.f32 %v5867_v33, 0.0  ;;  %v5831_v42 = vadd.f32 %v10344_v16, %v5357_v10  ;;  %v5360_v24 = vadd.f32 %v7628_v2, %v4630_v3  ;;  %v10928_v16 = vld [vmem:[#allocation33_spill] sm:$0xff]  ;;  %v10474_v3 = vpop.f32.mrf.mxu0 }
 0x31c   : > { %v5245_v18 = vpop.f32.mrf.mxu1  ;;  %v5872_v61 = vadd.f32 %v10432_v11, %v5833_v25  ;;  %v4269_v59 = vadd.f32 %v10312_v20, %v10928_v16 }
 0x31d   : > { %v5930_v45 = vpack.c.bf16 %v5899_v36, %v5898_v27  ;;  %v5358_v15 = vadd.f32 %v5245_v18, %v4628_v53  ;;  %v5834_v30 = vadd.f32 %v10350_v26, %v5360_v24  ;;  %v5870_v23 = vadd.f32 %v10432_v11, %v5831_v42 }
 0x31e   : > { %v7631_v17 = vpop.f32.mrf.mxu1  ;;  %v5904_v62 = vmax.f32 %v5872_v61, 0.0  ;;  %v4632_v27 = vadd.f32 %v10201_v21, %v4269_v59  ;;  %v4273_v18 = vadd.f32 %v10334_v6, %v10160_v60  ;;  %v10930_v59 = vld [vmem:[#allocation12_spill] sm:$0xff] }
 0x31f   : > { %v5832_v35 = vadd.f32 %v10358_v7, %v5358_v15  ;;  %v5363_v55 = vadd.f32 %v7631_v17, %v10304_v13  ;;  %7689 = vmatprep.mubr.msk.bf16.mxu1 %vm1760_vm6, %v5930_v45  ;;  %v5873_v41 = vadd.f32 %v10432_v11, %v5834_v30  ;;  %v5902_v10 = vmax.f32 %v5870_v23, 0.0 }
 0x320   : > { %v5258_v5 = vpop.f32.mrf.mxu1  ;;  %7690 = vmatmul.mubr.msk.bf16.vlgmr.msra.gmra.mxu1 %vm1760_vm6, %v5931_v37 }
 0x321   : > { %v5871_v26 = vadd.f32 %v10432_v11, %v5832_v35  ;;  %v5837_v50 = vadd.f32 %v10363_v54, %v5363_v55  ;;  %v5361_v7 = vadd.f32 %v5258_v5, %v10310_v31  ;;  %v5905_v13 = vmax.f32 %v5873_v41, 0.0  ;;  %v10929_v55 = vld [vmem:[#allocation19_spill] sm:$0xff] }
 0x322   : > { %v7632_v33 = vpop.f32.mrf.mxu1  ;;  %v4636_v41 = vadd.f32 %v10930_v59, %v4273_v18 }
 0x323   : > { %v5903_v25 = vmax.f32 %v5871_v26, 0.0  ;;  %v5364_v20 = vadd.f32 %v7632_v33, %v10317_v47  ;;  %v5933_v2 = vpack.c.bf16 %v5905_v13, %v5904_v62  ;;  %v5835_v53 = vadd.f32 %v10366_v0, %v5361_v7  ;;  %v10485_v0 = vpop.f32.mrf.mxu0 }
 0x324   : > { %v5261_v37 = vpop.f32.mrf.mxu1  ;;  %v5876_v54 = vadd.f32 %v10432_v11, %v5837_v50 }
 0x325   : > { %v5932_v36 = vpack.c.bf16 %v5903_v25, %v5902_v10  ;;  %v5838_v31 = vadd.f32 %v10376_v52, %v5364_v20  ;;  %v5362_v42 = vadd.f32 %v5261_v37, %v4632_v27  ;;  %v5874_v21 = vadd.f32 %v10432_v11, %v5835_v53 }
 0x326   : > { %v7635_v24 = vpop.f32.mrf.mxu1  ;;  %v5908_v52 = vmax.f32 %v5876_v54, 0.0  ;;  %v10932_v54 = vld [vmem:[#allocation21_spill] sm:$0xff] }
 0x327   : > { %v5877_v47 = vadd.f32 %v10432_v11, %v5838_v31  ;;  %v5367_v45 = vadd.f32 %v7635_v24, %v10326_v51  ;;  %7693 = vmatprep.mubr.msk.bf16.mxu1 %vm1760_vm6, %v5932_v36  ;;  %v5836_v15 = vadd.f32 %v10384_v58, %v5362_v42  ;;  %v7678_v58 = vpop.f32.mrf.mxu0  ;;  %v5906_v5 = vmax.f32 %v5874_v21, 0.0  ;;  %v10933_v24 = vld [vmem:[#allocation15_spill] sm:$0xff] }
 0x328   : > { %v5274_v61 = vpop.f32.mrf.mxu1  ;;  %7694 = vmatmul.mubr.msk.bf16.gmra.mxu1 %vm1760_vm6, %v5933_v2 }
 0x329   : > { %v5909_v30 = vmax.f32 %v5877_v47, 0.0  ;;  %v5841_v17 = vadd.f32 %v10394_v12, %v5367_v45  ;;  %v5365_v60 = vadd.f32 %v5274_v61, %v10332_v63  ;;  %v5875_v6 = vadd.f32 %v10432_v11, %v5836_v15  ;;  %v10931_v63 = vld [vmem:[#allocation9_spill] sm:$0xff]  ;;  %v5783_v53 = vpop.f32.mrf.mxu0  ;;  %v10934_v15 = vld [vmem:[#allocation46_spill] sm:$0xff] }
 0x32a   : > { %v7636_v51 = vpop.f32.mrf.mxu1  ;;  %v4277_v13 = vadd.f32 %v10356_v46, %v10931_v63 }
 0x32b   : > { %v5935_v23 = vpack.c.bf16 %v5909_v30, %v5908_v52  ;;  %v5839_v35 = vadd.f32 %v10402_v38, %v5365_v60  ;;  %v5368_v16 = vadd.f32 %v7636_v51, %v10929_v55  ;;  %v5907_v26 = vmax.f32 %v5875_v6, 0.0  ;;  %v7681_v21 = vpop.f32.mrf.mxu0 }
 0x32c   : > { %v5277_v50 = vpop.f32.mrf.mxu1  ;;  %v5880_v7 = vadd.f32 %v10432_v11, %v5841_v17  ;;  %v4640_v18 = vadd.f32 %v10933_v24, %v4277_v13 }
 0x32d   : > { %v5842_v12 = vadd.f32 %v10412_v9, %v5368_v16  ;;  %v5366_v62 = vadd.f32 %v5277_v50, %v4636_v41  ;;  %v5934_v33 = vpack.c.bf16 %v5907_v26, %v5906_v5  ;;  %v5878_v38 = vadd.f32 %v10432_v11, %v5839_v35  ;;  %v5796_v16 = vpop.f32.mrf.mxu0 }
 0x32e   : > { %v7639_v10 = vpop.f32.mrf.mxu1  ;;  %v5912_v37 = vmax.f32 %v5880_v7, 0.0 }
 0x32f   : > { %v5881_v25 = vadd.f32 %v10432_v11, %v5842_v12  ;;  %v5840_v20 = vadd.f32 %v10424_v29, %v5366_v62  ;;  %v5371_v2 = vadd.f32 %v7639_v10, %v10348_v19  ;;  %7697 = vmatprep.mubr.msk.bf16.mxu1 %vm1760_vm6, %v5934_v33  ;;  %v5910_v29 = vmax.f32 %v5878_v38, 0.0  ;;  %v10936_v33 = vld [vmem:[#allocation16_spill] sm:$0xff] }
 0x330   : > { %v5290_v27 = vpop.f32.mrf.mxu1  ;;  %7698 = vmatmul.mubr.msk.bf16.gmra.mxu1 %vm1760_vm6, %v5935_v23 }
 0x331   : > { %v5913_v9 = vmax.f32 %v5881_v25, 0.0  ;;  %v5879_v36 = vadd.f32 %v10432_v11, %v5840_v20  ;;  %v5369_v46 = vadd.f32 %v5290_v27, %v10932_v54  ;;  %v5845_v31 = vadd.f32 %v10436_v49, %v5371_v2  ;;  %v10937_v27 = vld [vmem:[#allocation39_spill] sm:$0xff] }
 0x332   : > { %v7640_v42 = vpop.f32.mrf.mxu1 }
 0x333   : > { %v5937_v47 = vpack.c.bf16 %v5913_v9, %v5912_v37  ;;  %v5911_v19 = vmax.f32 %v5879_v36, 0.0  ;;  %v5843_v45 = vadd.f32 %v10448_v8, %v5369_v46  ;;  %v5372_v61 = vadd.f32 %v7640_v42, %v10934_v15  ;;  %v10935_v8 = vld [vmem:[#allocation37_spill] sm:$0xff] }
 0x334   : > { %v5293_v52 = vpop.f32.mrf.mxu1  ;;  %v5884_v60 = vadd.f32 %v10432_v11, %v5845_v31  ;;  %v4281_v55 = vadd.f32 %v10378_v4, %v10935_v8  ;;  %v7682_v4 = vpop.f32.mrf.mxu0  ;;  %v4285_v37 = vadd.f32 %v10396_v32, %v10937_v27 }
 0x335   : > { %v5936_v30 = vpack.c.bf16 %v5911_v19, %v5910_v29  ;;  %v5370_v17 = vadd.f32 %v5293_v52, %v4640_v18  ;;  %v5846_v6 = vadd.f32 %v10456_v57, %v5372_v61  ;;  %v5882_v49 = vadd.f32 %v10432_v11, %v5843_v45  ;;  %v10938_v45 = vld [vmem:[#allocation17_spill] sm:$0xff] }
 0x336   : > { %v7643_v51 = vpop.f32.mrf.mxu1  ;;  %v4644_v10 = vadd.f32 %v10936_v33, %v4281_v55  ;;  %v5799_v36 = vpop.f32.mrf.mxu0  ;;  %v4648_v15 = vadd.f32 %v10938_v45, %v4285_v37 }
 0x337   : > { %v5844_v23 = vadd.f32 %v10466_v48, %v5370_v17  ;;  %v5375_v35 = vadd.f32 %v7643_v51, %v10370_v14  ;;  %7701 = vmatprep.mubr.msk.bf16.mxu1 %vm1760_vm6, %v5936_v30  ;;  %v5885_v59 = vadd.f32 %v10432_v11, %v5846_v6  ;;  %v5916_v48 = vmax.f32 %v5884_v60, 0.0 }
 0x338   : > { %v5306_v41 = vpop.f32.mrf.mxu1  ;;  %7702 = vmatmul.mubr.msk.bf16.gmra.mxu1 %vm1760_vm6, %v5937_v47  ;;  %v5914_v7 = vmax.f32 %v5882_v49, 0.0  ;;  %v7685_v29 = vpop.f32.mrf.mxu0 }
 0x339   : > { %v5883_v5 = vadd.f32 %v10432_v11, %v5844_v23  ;;  %v5849_v57 = vadd.f32 %v10474_v3, %v5375_v35  ;;  %v5373_v26 = vadd.f32 %v5306_v41, %v10374_v39  ;;  %v5917_v50 = vmax.f32 %v5885_v59, 0.0 }
 0x33a   : > { %v7644_v14 = vpop.f32.mrf.mxu1  ;;  %v5812_v51 = vpop.f32.mrf.mxu0 }
 0x33b   : > { %v5915_v12 = vmax.f32 %v5883_v5, 0.0  ;;  %v5376_v62 = vadd.f32 %v7644_v14, %v10381_v34  ;;  %v5939_v63 = vpack.c.bf16 %v5917_v50, %v5916_v48  ;;  %v5847_v13 = vadd.f32 %v10485_v0, %v5373_v26  ;;  %v10940_v48 = vld [vmem:[#allocation18_spill] sm:$0xff] }
 0x33c   : > { %v5309_v38 = vpop.f32.mrf.mxu1  ;;  %v5888_v3 = vadd.f32 %v10432_v11, %v5849_v57  ;;  %v7686_v57 = vpop.f32.mrf.mxu0 }
 0x33d   : > { %v5938_v25 = vpack.c.bf16 %v5915_v12, %v5914_v7  ;;  %v5850_v39 = vadd.f32 %v7678_v58, %v5376_v62  ;;  %v5374_v20 = vadd.f32 %v5309_v38, %v4644_v10  ;;  %v5886_v0 = vadd.f32 %v10432_v11, %v5847_v13 }
 0x33e   : > { %v7647_v2 = vpop.f32.mrf.mxu1  ;;  %v5920_v31 = vmax.f32 %v5888_v3, 0.0  ;;  %v5815_v10 = vpop.f32.mrf.mxu0 }
 0x33f   : > { %v5889_v9 = vadd.f32 %v10432_v11, %v5850_v39  ;;  %v5379_v34 = vadd.f32 %v7647_v2, %v10388_v28  ;;  %7705 = vmatprep.mubr.msk.bf16.mxu1 %vm1760_vm6, %v5938_v25  ;;  %v5848_v54 = vadd.f32 %v5783_v53, %v5374_v20  ;;  %v5918_v61 = vmax.f32 %v5886_v0, 0.0 }
 0x340   : > { %v5322_v46 = vpop.f32.mrf.mxu1  ;;  %7706 = vmatmul.mubr.msk.bf16.gmra.mxu1 %vm1760_vm6, %v5939_v63 }
 0x341   : > { %v5921_v42 = vmax.f32 %v5889_v9, 0.0  ;;  %v5853_v24 = vadd.f32 %v7681_v21, %v5379_v34  ;;  %v5377_v58 = vadd.f32 %v5322_v46, %v10392_v56  ;;  %v5887_v32 = vadd.f32 %v10432_v11, %v5848_v54  ;;  %v10939_v56 = vld [vmem:[#allocation41_spill] sm:$0xff] }
 0x342   : > { %v7648_v18 = vpop.f32.mrf.mxu1  ;;  %v4289_v60 = vadd.f32 %v10414_v22, %v10939_v56  ;;  %v7136_v34 = vld [vmem:[%s7895_s12 + $0x8] sm:$0xff]  }
 0x343   : > { %v5941_v47 = vpack.c.bf16 %v5921_v42, %v5920_v31  ;;  %v5851_v28 = vadd.f32 %v5796_v16, %v5377_v58  ;;  %v5380_v19 = vadd.f32 %v7648_v18, %v10399_v43  ;;  %v5919_v53 = vmax.f32 %v5887_v32, 0.0  ;;  %v7138_v18 = vld [vmem:[%s7895_s12 + $0x18] sm:$0xff]  }
 0x344   : > { %v5325_v52 = vpop.f32.mrf.mxu1  ;;  %v5892_v30 = vadd.f32 %v10432_v11, %v5853_v24  ;;  %v4652_v50 = vadd.f32 %v10940_v48, %v4289_v60  ;;  %v7078_v0 = vunpack.c.l.bf16 %v7136_v34  ;;  %v7079_v32 = vunpack.c.h.bf16 %v7136_v34 }
 0x345   : > { %v5854_v21 = vadd.f32 %v7682_v4, %v5380_v19  ;;  %v5378_v17 = vadd.f32 %v5325_v52, %v4648_v15  ;;  %v5940_v6 = vpack.c.bf16 %v5919_v53, %v5918_v61  ;;  %v5890_v23 = vadd.f32 %v10432_v11, %v5851_v28  ;;  %v7137_v15 = vld [vmem:[%s7895_s12 + $0x10] sm:$0xff]  }
 0x346   : > { %v7651_v49 = vpop.f32.mrf.mxu1  ;;  %v5924_v16 = vmax.f32 %v5892_v30, 0.0  ;;  %v7086_v53 = vunpack.c.l.bf16 %v7138_v18  ;;  %v7082_v60 = vunpack.c.l.bf16 %v7137_v15 }
 0x347   : > { %v5893_v35 = vadd.f32 %v10432_v11, %v5854_v21  ;;  %v5852_v43 = vadd.f32 %v5799_v36, %v5378_v17  ;;  %v5383_v8 = vadd.f32 %v7651_v49, %v10406_v44  ;;  %7709 = vmatprep.mubr.msk.bf16.mxu1 %vm1760_vm6, %v5940_v6  ;;  %v5922_v14 = vmax.f32 %v5890_v23, 0.0  ;;  %v10564_v36 = vld [vmem:[%s10693_s6] ss:$0 sm:$0xff] }
 0x348   : > { %v5338_v55 = vpop.f32.mrf.mxu1  ;;  %7710 = vmatmul.mubr.msk.bf16.gmra.mxu1 %vm1760_vm6, %v5941_v47 }
 0x349   : > { %v5925_v59 = vmax.f32 %v5893_v35, 0.0  ;;  %v5891_v41 = vadd.f32 %v10432_v11, %v5852_v43  ;;  %v5381_v5 = vadd.f32 %v5338_v55, %v10410_v1  ;;  %v5857_v22 = vadd.f32 %v7685_v29, %v5383_v8 }
 0x34a   : > { %v7652_v26 = vpop.f32.mrf.mxu1  ;;  %v7087_v43 = vunpack.c.h.bf16 %v7138_v18 }
 0x34b   : > { %v5943_v7 = vpack.c.bf16 %v5925_v59, %v5924_v16  ;;  %v5923_v12 = vmax.f32 %v5891_v41, 0.0  ;;  %v5855_v44 = vadd.f32 %v5812_v51, %v5381_v5  ;;  %v5384_v62 = vadd.f32 %v7652_v26, %v10419_v40 }
 0x34c   : > { %v5341_v4 = vpop.f32.mrf.mxu1  ;;  %v5896_v33 = vadd.f32 %v10432_v11, %v5857_v22  ;;  %v7083_v5 = vunpack.c.h.bf16 %v7137_v15 }
 0x34d   : > { %v5942_v63 = vpack.c.bf16 %v5923_v12, %v5922_v14  ;;  %v5382_v13 = vadd.f32 %v5341_v4, %v4652_v50  ;;  %v5858_v1 = vadd.f32 %v7686_v57, %v5384_v62  ;;  %v5894_v38 = vadd.f32 %v10432_v11, %v5855_v44  ;;  %v7140_v50 = vld [vmem:[%s7895_s12 + $0x28] sm:$0xff]   ;;  %v7139_v4 = vld [vmem:[%s7895_s12 + $0x20] sm:$0xff]  }
 0x34e   : > { %v5928_v40 = vmax.f32 %v5896_v33, 0.0 }
 0x34f   : > { %v5856_v25 = vadd.f32 %v5815_v10, %v5382_v13  ;;  %7713 = vmatprep.mubr.msk.bf16.mxu1 %vm1760_vm6, %v5942_v63  ;;  %v5897_v3 = vadd.f32 %v10432_v11, %v5858_v1  ;;  %v5926_v2 = vmax.f32 %v5894_v38, 0.0  ;;  %v7094_v63 = vunpack.c.l.bf16 %v7140_v50 }
 0x350   : > { %7714 = vmatmul.mubr.msk.bf16.gmra.mxu1 %vm1760_vm6, %v5943_v7 }
 0x351   : > { %v5895_v39 = vadd.f32 %v10432_v11, %v5856_v25  ;;  %v5929_v20 = vmax.f32 %v5897_v3, 0.0  ;;  %v7073_v11 = vld [vmem:[%s7895_s12] sm:$0xff]   ;;  %v7090_v25 = vunpack.c.l.bf16 %v7139_v4 }
 0x352   : > { %v7074_v31 = vunpack.c.l.bf16 %v7073_v11  ;;  %v7075_v45 = vunpack.c.h.bf16 %v7073_v11 }
 0x353   : > { %v5927_v27 = vmax.f32 %v5895_v39, 0.0  ;;  %v5945_v37 = vpack.c.bf16 %v5929_v20, %v5928_v40 }
 0x355   : > { %v5944_v9 = vpack.c.bf16 %v5927_v27, %v5926_v2  ;;  %v7095_v27 = vunpack.c.h.bf16 %v7140_v50 }
 0x357   : > { %7717 = vmatprep.mubr.msk.bf16.mxu1 %vm1760_vm6, %v5944_v9 }
 0x358   : > { %7718 = vmatmul.mubr.msk.bf16.gmra.mxu1 %vm1760_vm6, %v5945_v37  ;;  %v7142_v37 = vld [vmem:[%s7895_s12 + $0x38] sm:$0xff]  }
 0x3e0   : > { %v7691_v54 = vpop.f32.mrf.mxu1 }
 0x3e1   : > { %v6116_v46 = vadd.f32 %v7691_v54, %v10564_v36 }
 0x3e2   : > { %v6107_v42 = vpop.f32.mrf.mxu1 }
 0x3e3   : > { %v6236_v24 = vadd.f32 %v7078_v0, %v6116_v46  ;;  %v6108_v58 = vadd.f32 %v10564_v36, %v6107_v42  ;;  %v7091_v46 = vunpack.c.h.bf16 %v7139_v4 }
 0x3e4   : > { %v7692_v29 = vpop.f32.mrf.mxu1 }
 0x3e5   : > { %v6268_v47 = vmax.f32 %v6236_v24, 0.0  ;;  %v6234_v28 = vadd.f32 %v7074_v31, %v6108_v58  ;;  %v6119_v19 = vadd.f32 %v7692_v29, %v10564_v36  ;;  %v7141_v31 = vld [vmem:[%s7895_s12 + $0x30] sm:$0xff]   ;;  %v7102_v24 = vunpack.c.l.bf16 %v7142_v37 }
 0x3e6   : > { %v6110_v61 = vpop.f32.mrf.mxu1 }
 0x3e7   : > { %v7042_v52 = vpack.c.bf16 %v6268_v47, %v6268_v47  ;;  %v6266_v30 = vmax.f32 %v6234_v28, 0.0  ;;  %v6237_v21 = vadd.f32 %v7079_v32, %v6119_v19  ;;  %v6111_v17 = vadd.f32 %v10564_v36, %v6110_v61 }
 0x3e8   : > { %v7695_v56 = vpop.f32.mrf.mxu1  ;;  %v7098_v28 = vunpack.c.l.bf16 %v7141_v31 }
 0x3e9   : > { %6429 = vst.msk [vmem:[%s10577_s30 + $0x8] sm:$0xf] %vm6426_vm0, %v7042_v52  ;;  %v7040_v6 = vpack.c.bf16 %v6266_v30, %v6266_v30  ;;  %v6269_v51 = vmax.f32 %v6237_v21, 0.0  ;;  %v6235_v49 = vadd.f32 %v7075_v45, %v6111_v17  ;;  %v6132_v23 = vadd.f32 %v7695_v56, %v10564_v36 }
 0x3ea   : > { %v6123_v35 = vpop.f32.mrf.mxu1  ;;  %v7103_v52 = vunpack.c.h.bf16 %v7142_v37 }
 0x3eb   : > { %6427 = vst.msk [vmem:[%s10577_s30] sm:$0xf] %vm6426_vm0, %v7040_v6  ;;  %v7043_v8 = vpack.c.bf16 %v6269_v51, %v6269_v51  ;;  %v6267_v55 = vmax.f32 %v6235_v49, 0.0  ;;  %v6240_v16 = vadd.f32 %v7086_v53, %v6132_v23  ;;  %v6124_v59 = vadd.f32 %v10564_v36, %v6123_v35 }
 0x3ec   : > { %v7696_v41 = vpop.f32.mrf.mxu1  ;;  %v7099_v51 = vunpack.c.h.bf16 %v7141_v31 }
 0x3ed   : > { %6430 = vst.msk [vmem:[%s10577_s30 + $0xc] sm:$0xf] %vm6426_vm0, %v7043_v8  ;;  %v7041_v22 = vpack.c.bf16 %v6267_v55, %v6267_v55  ;;  %v6272_v57 = vmax.f32 %v6240_v16, 0.0  ;;  %v6238_v26 = vadd.f32 %v7082_v60, %v6124_v59  ;;  %v6135_v48 = vadd.f32 %v7696_v41, %v10564_v36  ;;  %v7144_v60 = vld [vmem:[%s7895_s12 + $0x48] sm:$0xff]   ;;  %v7143_v8 = vld [vmem:[%s7895_s12 + $0x40] sm:$0xff]  }
 0x3ee   : > { %v6126_v14 = vpop.f32.mrf.mxu1  ;;  %v7110_v16 = vunpack.c.l.bf16 %v7144_v60 }
 0x3ef   : > { %6428 = vst.msk [vmem:[%s10577_s30 + $0x4] sm:$0xf] %vm6426_vm0, %v7041_v22  ;;  %v7046_v7 = vpack.c.bf16 %v6272_v57, %v6272_v57  ;;  %v6270_v12 = vmax.f32 %v6238_v26, 0.0  ;;  %v6241_v44 = vadd.f32 %v7087_v43, %v6135_v48  ;;  %v6127_v62 = vadd.f32 %v10564_v36, %v6126_v14 }
 0x3f0   : > { %v7699_v1 = vpop.f32.mrf.mxu1  ;;  %v7106_v26 = vunpack.c.l.bf16 %v7143_v8 }
 0x3f1   : > { %6433 = vst.msk [vmem:[%s10577_s30 + $0x18] sm:$0xf] %vm6426_vm0, %v7046_v7  ;;  %v7044_v13 = vpack.c.bf16 %v6270_v12, %v6270_v12  ;;  %v6273_v33 = vmax.f32 %v6241_v44, 0.0  ;;  %v6239_v10 = vadd.f32 %v7083_v5, %v6127_v62  ;;  %v6148_v38 = vadd.f32 %v7699_v1, %v10564_v36 }
 0x3f2   : > { %v6139_v40 = vpop.f32.mrf.mxu1  ;;  %v7111_v44 = vunpack.c.h.bf16 %v7144_v60  ;;  %v7107_v1 = vunpack.c.h.bf16 %v7143_v8 }
 0x3f3   : > { %6431 = vst.msk [vmem:[%s10577_s30 + $0x10] sm:$0xf] %vm6426_vm0, %v7044_v13  ;;  %v7047_v3 = vpack.c.bf16 %v6273_v33, %v6273_v33  ;;  %v6271_v39 = vmax.f32 %v6239_v10, 0.0  ;;  %v6244_v20 = vadd.f32 %v7094_v63, %v6148_v38  ;;  %v6140_v2 = vadd.f32 %v10564_v36, %v6139_v40  ;;  %v7146_v33 = vld [vmem:[%s7895_s12 + $0x58] sm:$0xff]   ;;  %v7145_v40 = vld [vmem:[%s7895_s12 + $0x50] sm:$0xff]  }
 0x3f4   : > { %v7700_v34 = vpop.f32.mrf.mxu1 }
 0x3f5   : > { %6434 = vst.msk [vmem:[%s10577_s30 + $0x1c] sm:$0xf] %vm6426_vm0, %v7047_v3  ;;  %v7045_v9 = vpack.c.bf16 %v6271_v39, %v6271_v39  ;;  %v6276_v11 = vmax.f32 %v6244_v20, 0.0  ;;  %v6242_v0 = vadd.f32 %v7090_v25, %v6140_v2  ;;  %v6151_v54 = vadd.f32 %v7700_v34, %v10564_v36 }
 0x3f6   : > { %v6142_v42 = vpop.f32.mrf.mxu1  ;;  %v7118_v2 = vunpack.c.l.bf16 %v7146_v33 }
 0x3f7   : > { %6432 = vst.msk [vmem:[%s10577_s30 + $0x14] sm:$0xf] %vm6426_vm0, %v7045_v9  ;;  %v7050_v58 = vpack.c.bf16 %v6276_v11, %v6276_v11  ;;  %v6274_v32 = vmax.f32 %v6242_v0, 0.0  ;;  %v6245_v18 = vadd.f32 %v7095_v27, %v6151_v54  ;;  %v6143_v29 = vadd.f32 %v10564_v36, %v6142_v42 }
 0x3f8   : > { %v7703_v47 = vpop.f32.mrf.mxu1  ;;  %v7114_v0 = vunpack.c.l.bf16 %v7145_v40 }
 0x3f9   : > { %6437 = vst.msk [vmem:[%s10577_s30 + $0x28] sm:$0xf] %vm6426_vm0, %v7050_v58  ;;  %v7048_v19 = vpack.c.bf16 %v6274_v32, %v6274_v32  ;;  %v6277_v45 = vmax.f32 %v6245_v18, 0.0  ;;  %v6243_v15 = vadd.f32 %v7091_v46, %v6143_v29  ;;  %v6164_v61 = vadd.f32 %v7703_v47, %v10564_v36 }
 0x3fa   : > { %v6155_v53 = vpop.f32.mrf.mxu1  ;;  %v7119_v58 = vunpack.c.h.bf16 %v7146_v33 }
 0x3fb   : > { %6435 = vst.msk [vmem:[%s10577_s30 + $0x20] sm:$0xf] %vm6426_vm0, %v7048_v19  ;;  %v7051_v30 = vpack.c.bf16 %v6277_v45, %v6277_v45  ;;  %v6275_v21 = vmax.f32 %v6243_v15, 0.0  ;;  %v6248_v17 = vadd.f32 %v7102_v24, %v6164_v61  ;;  %v6156_v56 = vadd.f32 %v10564_v36, %v6155_v53 }
 0x3fc   : > { %v7704_v6 = vpop.f32.mrf.mxu1  ;;  %v7115_v45 = vunpack.c.h.bf16 %v7145_v40 }
 0x3fd   : > { %6438 = vst.msk [vmem:[%s10577_s30 + $0x2c] sm:$0xf] %vm6426_vm0, %v7051_v30  ;;  %v7049_v49 = vpack.c.bf16 %v6275_v21, %v6275_v21  ;;  %v6280_v23 = vmax.f32 %v6248_v17, 0.0  ;;  %v6246_v35 = vadd.f32 %v7098_v28, %v6156_v56  ;;  %v6167_v43 = vadd.f32 %v7704_v6, %v10564_v36  ;;  %v7148_v28 = vld [vmem:[%s7895_s12 + $0x68] sm:$0xff]   ;;  %v7147_v30 = vld [vmem:[%s7895_s12 + $0x60] sm:$0xff]  }
 0x3fe   : > { %v6158_v55 = vpop.f32.mrf.mxu1  ;;  %v7126_v17 = vunpack.c.l.bf16 %v7148_v28 }
 0x3ff   : > { %6436 = vst.msk [vmem:[%s10577_s30 + $0x24] sm:$0xf] %vm6426_vm0, %v7049_v49  ;;  %v7054_v59 = vpack.c.bf16 %v6280_v23, %v6280_v23  ;;  %v6278_v41 = vmax.f32 %v6246_v35, 0.0  ;;  %v6249_v5 = vadd.f32 %v7103_v52, %v6167_v43  ;;  %v6159_v22 = vadd.f32 %v10564_v36, %v6158_v55 }
 0x400   : > { %v7707_v57 = vpop.f32.mrf.mxu1  ;;  %v7122_v23 = vunpack.c.l.bf16 %v7147_v30 }
 0x401   : > { %6441 = vst.msk [vmem:[%s10577_s30 + $0x38] sm:$0xf] %vm6426_vm0, %v7054_v59  ;;  %v7052_v48 = vpack.c.bf16 %v6278_v41, %v6278_v41  ;;  %v6281_v50 = vmax.f32 %v6249_v5, 0.0  ;;  %v6247_v14 = vadd.f32 %v7099_v51, %v6159_v22  ;;  %v6180_v7 = vadd.f32 %v7707_v57, %v10564_v36 }
 0x402   : > { %v6171_v12 = vpop.f32.mrf.mxu1  ;;  %v7127_v59 = vunpack.c.h.bf16 %v7148_v28 }
 0x403   : > { %6439 = vst.msk [vmem:[%s10577_s30 + $0x30] sm:$0xf] %vm6426_vm0, %v7052_v48  ;;  %v7055_v62 = vpack.c.bf16 %v6281_v50, %v6281_v50  ;;  %v6279_v4 = vmax.f32 %v6247_v14, 0.0  ;;  %v6252_v63 = vadd.f32 %v7110_v16, %v6180_v7  ;;  %v6172_v13 = vadd.f32 %v10564_v36, %v6171_v12 }
 0x404   : > { %v7708_v10 = vpop.f32.mrf.mxu1  ;;  %v7123_v50 = vunpack.c.h.bf16 %v7147_v30 }
 0x405   : > { %6442 = vst.msk [vmem:[%s10577_s30 + $0x3c] sm:$0xf] %vm6426_vm0, %v7055_v62  ;;  %v7053_v38 = vpack.c.bf16 %v6279_v4, %v6279_v4  ;;  %v6284_v25 = vmax.f32 %v6252_v63, 0.0  ;;  %v6250_v3 = vadd.f32 %v7106_v26, %v6172_v13  ;;  %v6183_v39 = vadd.f32 %v7708_v10, %v10564_v36  ;;  %v7150_v26 = vld [vmem:[%s7895_s12 + $0x78] sm:$0xff]   ;;  %v7149_v62 = vld [vmem:[%s7895_s12 + $0x70] sm:$0xff]  }
 0x406   : > { %v6174_v20 = vpop.f32.mrf.mxu1  ;;  %v7134_v63 = vunpack.c.l.bf16 %v7150_v26 }
 0x407   : > { %6440 = vst.msk [vmem:[%s10577_s30 + $0x34] sm:$0xf] %vm6426_vm0, %v7053_v38  ;;  %v7058_v27 = vpack.c.bf16 %v6284_v25, %v6284_v25  ;;  %v6282_v37 = vmax.f32 %v6250_v3, 0.0  ;;  %v6253_v9 = vadd.f32 %v7111_v44, %v6183_v39  ;;  %v6175_v34 = vadd.f32 %v10564_v36, %v6174_v20 }
 0x408   : > { %v7711_v11 = vpop.f32.mrf.mxu1  ;;  %v7130_v25 = vunpack.c.l.bf16 %v7149_v62 }
 0x409   : > { %6445 = vst.msk [vmem:[%s10577_s30 + $0x48] sm:$0xf] %vm6426_vm0, %v7058_v27  ;;  %v7056_v54 = vpack.c.bf16 %v6282_v37, %v6282_v37  ;;  %v6285_v46 = vmax.f32 %v6253_v9, 0.0  ;;  %v6251_v31 = vadd.f32 %v7107_v1, %v6175_v34  ;;  %v6196_v42 = vadd.f32 %v7711_v11, %v10564_v36 }
 0x40a   : > { %v6187_v24 = vpop.f32.mrf.mxu1  ;;  %v7135_v27 = vunpack.c.h.bf16 %v7150_v26 }
 0x40b   : > { %6443 = vst.msk [vmem:[%s10577_s30 + $0x40] sm:$0xf] %vm6426_vm0, %v7056_v54  ;;  %v7059_v32 = vpack.c.bf16 %v6285_v46, %v6285_v46  ;;  %v6283_v18 = vmax.f32 %v6251_v31, 0.0  ;;  %v6256_v29 = vadd.f32 %v7118_v2, %v6196_v42  ;;  %v6188_v47 = vadd.f32 %v10564_v36, %v6187_v24 }
 0x40c   : > { %v7712_v19 = vpop.f32.mrf.mxu1  ;;  %v7131_v54 = vunpack.c.h.bf16 %v7149_v62 }
 0x40d   : > { %6446 = vst.msk [vmem:[%s10577_s30 + $0x4c] sm:$0xf] %vm6426_vm0, %v7059_v32  ;;  %v7057_v15 = vpack.c.bf16 %v6283_v18, %v6283_v18  ;;  %v6288_v61 = vmax.f32 %v6256_v29, 0.0  ;;  %v6254_v53 = vadd.f32 %v7114_v0, %v6188_v47  ;;  %v6199_v52 = vadd.f32 %v7712_v19, %v10564_v36 }
 0x40e   : > { %v6190_v21 = vpop.f32.mrf.mxu1 }
 0x40f   : > { %6444 = vst.msk [vmem:[%s10577_s30 + $0x44] sm:$0xf] %vm6426_vm0, %v7057_v15  ;;  %v7062_v56 = vpack.c.bf16 %v6288_v61, %v6288_v61  ;;  %v6286_v60 = vmax.f32 %v6254_v53, 0.0  ;;  %v6257_v6 = vadd.f32 %v7119_v58, %v6199_v52  ;;  %v6191_v51 = vadd.f32 %v10564_v36, %v6190_v21 }
 0x410   : > { %v7715_v49 = vpop.f32.mrf.mxu1 }
 0x411   : > { %6449 = vst.msk [vmem:[%s10577_s30 + $0x58] sm:$0xf] %vm6426_vm0, %v7062_v56  ;;  %v7060_v35 = vpack.c.bf16 %v6286_v60, %v6286_v60  ;;  %v6289_v43 = vmax.f32 %v6257_v6, 0.0  ;;  %v6255_v8 = vadd.f32 %v7115_v45, %v6191_v51  ;;  %v6212_v55 = vadd.f32 %v7715_v49, %v10564_v36 }
 0x412   : > { %v6203_v16 = vpop.f32.mrf.mxu1 }
 0x413   : > { %6447 = vst.msk [vmem:[%s10577_s30 + $0x50] sm:$0xf] %vm6426_vm0, %v7060_v35  ;;  %v7063_v41 = vpack.c.bf16 %v6289_v43, %v6289_v43  ;;  %v6287_v5 = vmax.f32 %v6255_v8, 0.0  ;;  %v6260_v22 = vadd.f32 %v7126_v17, %v6212_v55  ;;  %v6204_v57 = vadd.f32 %v10564_v36, %v6203_v16 }
 0x414   : > { %v7716_v48 = vpop.f32.mrf.mxu1 }
 0x415   : > { %6450 = vst.msk [vmem:[%s10577_s30 + $0x5c] sm:$0xf] %vm6426_vm0, %v7063_v41  ;;  %v7061_v14 = vpack.c.bf16 %v6287_v5, %v6287_v5  ;;  %v6292_v7 = vmax.f32 %v6260_v22, 0.0  ;;  %v6258_v12 = vadd.f32 %v7122_v23, %v6204_v57  ;;  %v6215_v44 = vadd.f32 %v7716_v48, %v10564_v36 }
 0x416   : > { %v6206_v4 = vpop.f32.mrf.mxu1 }
 0x417   : > { %6448 = vst.msk [vmem:[%s10577_s30 + $0x54] sm:$0xf] %vm6426_vm0, %v7061_v14  ;;  %v7066_v13 = vpack.c.bf16 %v6292_v7, %v6292_v7  ;;  %v6290_v33 = vmax.f32 %v6258_v12, 0.0  ;;  %v6261_v10 = vadd.f32 %v7127_v59, %v6215_v44  ;;  %v6207_v1 = vadd.f32 %v10564_v36, %v6206_v4 }
 0x418   : > { %v7719_v38 = vpop.f32.mrf.mxu1 }
 0x419   : > { %6453 = vst.msk [vmem:[%s10577_s30 + $0x68] sm:$0xf] %vm6426_vm0, %v7066_v13  ;;  %v7064_v3 = vpack.c.bf16 %v6290_v33, %v6290_v33  ;;  %v6293_v39 = vmax.f32 %v6261_v10, 0.0  ;;  %v6259_v40 = vadd.f32 %v7123_v50, %v6207_v1  ;;  %v6228_v20 = vadd.f32 %v7719_v38, %v10564_v36 }
 0x41a   : > { %v6219_v2 = vpop.f32.mrf.mxu1 }
 0x41b   : > { %6451 = vst.msk [vmem:[%s10577_s30 + $0x60] sm:$0xf] %vm6426_vm0, %v7064_v3  ;;  %v7067_v37 = vpack.c.bf16 %v6293_v39, %v6293_v39  ;;  %v6291_v9 = vmax.f32 %v6259_v40, 0.0  ;;  %v6264_v34 = vadd.f32 %v7134_v63, %v6228_v20  ;;  %v6220_v11 = vadd.f32 %v10564_v36, %v6219_v2 }
 0x41c   : > { %v7720_v0 = vpop.f32.mrf.mxu1 }
 0x41d   : > { %6454 = vst.msk [vmem:[%s10577_s30 + $0x6c] sm:$0xf] %vm6426_vm0, %v7067_v37  ;;  %v7065_v46 = vpack.c.bf16 %v6291_v9, %v6291_v9  ;;  %v6296_v31 = vmax.f32 %v6264_v34, 0.0  ;;  %v6262_v42 = vadd.f32 %v7130_v25, %v6220_v11  ;;  %v6231_v24 = vadd.f32 %v7720_v0, %v10564_v36 }
 0x41e   : > { %v6222_v58 = vpop.f32.mrf.mxu1 }
 0x41f   : > { %6452 = vst.msk [vmem:[%s10577_s30 + $0x64] sm:$0xf] %vm6426_vm0, %v7065_v46  ;;  %v7070_v32 = vpack.c.bf16 %v6296_v31, %v6296_v31  ;;  %v6294_v18 = vmax.f32 %v6262_v42, 0.0  ;;  %v6265_v29 = vadd.f32 %v7135_v27, %v6231_v24  ;;  %v6223_v47 = vadd.f32 %v10564_v36, %v6222_v58 }
 0x421   : > { %6457 = vst.msk [vmem:[%s10577_s30 + $0x78] sm:$0xf] %vm6426_vm0, %v7070_v32  ;;  %v7068_v28 = vpack.c.bf16 %v6294_v18, %v6294_v18  ;;  %v6297_v19 = vmax.f32 %v6265_v29, 0.0  ;;  %v6263_v45 = vadd.f32 %v7131_v54, %v6223_v47 }
 0x423   : > { %6455 = vst.msk [vmem:[%s10577_s30 + $0x70] sm:$0xf] %vm6426_vm0, %v7068_v28  ;;  %v7071_v15 = vpack.c.bf16 %v6297_v19, %v6297_v19  ;;  %v6295_v61 = vmax.f32 %v6263_v45, 0.0 }
 0x425   : > { %6458 = vst.msk [vmem:[%s10577_s30 + $0x7c] sm:$0xf] %vm6426_vm0, %v7071_v15  ;;  %v7069_v53 = vpack.c.bf16 %v6295_v61, %v6295_v61 }
 0x427   : > { %6456 = vst.msk [vmem:[%s10577_s30 + $0x74] sm:$0xf] %vm6426_vm0, %v7069_v53 }
 0x428 PF: > { %s17_s24 = sadd.s32 1, %s7827_s24  }
 0x429   : > { %p14_p4 = scmp.ge.s32.totalorder %s17_s24, 4  }
 0x42b   :  { %16 = sbr.rel (!%p14_p4) target bundleno = 1 (0x1), region = 88 }

</bundles_post_ra>
